<compile_context>
chip_gen: v6e
topology: v6e:2x2x1
jax: 0.10.0
libtpu: 0.0.40
codegen_flags: <defaults>
</compile_context>

<pallas_src>
import functools

import jax
import jax.numpy as jnp
from jax.experimental import pallas as pl
from jax.experimental.pallas import tpu as pltpu

_LN_EPS = 1e-5          # torch.nn.LayerNorm default
_MXU_TILE = 256         # native MXU tile on v6e/v7x (conservative for v5e)


def _vmem_budget_and_limit():
    """Per-generation VMEM sizing.  v5e/v6e: 128 MiB physical, v7x: 64 MiB."""
    cap = 64 * 1024 * 1024                       # conservative fallback (v7x)
    try:
        cap = int(pltpu.get_tpu_info().vmem_capacity_bytes)
    except Exception:
        pass
    limit = min(cap // 2, 64 * 1024 * 1024)      # scoped-VMEM limit we request
    budget = (limit * 3) // 4                    # what kernel blocks may consume
    return budget, limit


_VMEM_BUDGET, _VMEM_LIMIT = _vmem_budget_and_limit()


def _mxu_round(x):
    return ((x + _MXU_TILE - 1) // _MXU_TILE) * _MXU_TILE


def _pick_block(n, per_unit_bytes, fixed_bytes, budget,
                candidates=(1024, 512, 256, 128, 64, 32, 16, 8), multiple=8):
    """Largest block dividing n that fits the budget; prefers >= 2 blocks so
    both v7x TensorCores get work on the parallel axis.  Never silently
    exceeds the budget unless no legal block fits at all."""
    avail = max(budget - fixed_bytes, per_unit_bytes)

    def fits(c):
        return c * per_unit_bytes <= avail

    for want_multi in (True, False):
        for c in candidates:
            if n % c or not fits(c):
                continue
            if want_multi and n // c < 2:
                continue
            return c
        # fall back to any divisor that keeps the (8,128) layout legal
        for c in range(n, 0, -1):
            if n % c or (c % multiple and c != n):
                continue
            if fits(c) and (not want_multi or n // c >= 2):
                return c
    return n


# ----------------------------------------------------------------------------
# Kernels
# ----------------------------------------------------------------------------
def _linear_ln_lif_kernel(*refs, nproj, dout, inv_tau, thr, has_residual):
    """out = [residual +] LIF(LayerNorm(x @ W + b)) for one row tile.

    W holds `nproj` concatenated projections (e.g. q|k|v); LayerNorm is applied
    per Dout slice and everything is written into one wide (bm, nproj*Dout)
    output block.  The membrane potential lives in a VMEM scratch carried
    across the sequential T grid axis (axis 1).
    """
    if has_residual:
        x_ref, res_ref, w_ref, b_ref, g_ref, beta_ref, o_ref, v_ref = refs
    else:
        x_ref, w_ref, b_ref, g_ref, beta_ref, o_ref, v_ref = refs
        res_ref = None
    t = pl.program_id(1)

    @pl.when(t == 0)
    def _():
        v_ref[...] = jnp.zeros_like(v_ref)

    y = jnp.dot(x_ref[0], w_ref[...],
                preferred_element_type=jnp.float32) + b_ref[...]   # (bm, dtot) f32
    g = g_ref[...]
    beta = beta_ref[...]

    aligned = (dout % 128 == 0)          # lane-aligned per-slice stores possible
    pieces = []
    for j in range(nproj):
        cols = slice(j * dout, (j + 1) * dout)
        yj = y[:, cols]
        mu = jnp.mean(yj, axis=-1, keepdims=True)
        var = jnp.mean((yj - mu) ** 2, axis=-1, keepdims=True)
        yln = (yj - mu) * jax.lax.rsqrt(var + _LN_EPS) * g[:, cols] + beta[:, cols]
        # LIF (decay_input=True, hard reset to 0):  v += (x - v)/tau
        vj = v_ref[j] + (yln - v_ref[j]) * inv_tau
        spk = (vj >= thr).astype(jnp.float32)            # heaviside forward
        v_ref[j] = vj * (1.0 - spk)
        if res_ref is not None:                          # fused residual add
            spk = spk + res_ref[0].astype(jnp.float32)
        if aligned:
            o_ref[0, :, cols] = spk.astype(o_ref.dtype)
        else:
            pieces.append(spk)
    if not aligned:
        full = pieces[0] if nproj == 1 else jnp.concatenate(pieces, axis=-1)
        o_ref[0] = full.astype(o_ref.dtype)


def _ssa_lif_kernel(qkv_ref, o_ref, y_ref, vm_ref, *, heads, dh, d, scale,
                    inv_tau, thr, use_kv_first):
    """spikes = attn_LIF((q @ k^T @ v) * scale), all heads handled in-kernel."""
    t = pl.program_id(1)

    @pl.when(t == 0)
    def _():
        vm_ref[...] = jnp.zeros_like(vm_ref)

    qkv = qkv_ref[0]                                     # (gb, A0, 3D) bf16
    aligned = (dh % 128 == 0)
    pieces = []
    for h in range(heads):
        cols = slice(h * dh, (h + 1) * dh)
        q = qkv[:, :, h * dh:(h + 1) * dh]
        k = qkv[:, :, d + h * dh:d + (h + 1) * dh]
        v = qkv[:, :, 2 * d + h * dh:2 * d + (h + 1) * dh]
        if use_kv_first:
            # softmax-free attention is associative: q @ (k^T v)
            kv = jnp.einsum('gmf,gme->gfe', k, v,
                            preferred_element_type=jnp.float32)
            oh = jnp.einsum('gnf,gfe->gne', q.astype(jnp.float32), kv,
                            preferred_element_type=jnp.float32)
        else:
            attn = jnp.einsum('gnf,gmf->gnm', q, k,
                              preferred_element_type=jnp.float32)
            oh = jnp.einsum('gnm,gme->gne', attn, v,
                            preferred_element_type=jnp.float32)
        if aligned:
            y_ref[:, :, cols] = oh * scale               # direct per-head store
        else:
            pieces.append(oh)
    if not aligned:
        y_ref[...] = (pieces[0] if heads == 1
                      else jnp.concatenate(pieces, axis=-1)) * scale

    y = y_ref[...]
    vm = vm_ref[...] + (y - vm_ref[...]) * inv_tau
    spk = (vm >= thr).astype(jnp.float32)
    vm_ref[...] = vm * (1.0 - spk)
    o_ref[0] = spk.astype(o_ref.dtype)


def _ln_mean_kernel(x_ref, g_ref, b_ref, o_ref, *, inv_t):
    """Fused final LayerNorm + mean over T (output resident across T axis)."""
    t = pl.program_id(1)

    @pl.when(t == 0)
    def _():
        o_ref[...] = jnp.zeros_like(o_ref)

    x = x_ref[0].astype(jnp.float32)
    mu = jnp.mean(x, axis=-1, keepdims=True)
    var = jnp.mean((x - mu) ** 2, axis=-1, keepdims=True)
    o_ref[...] += (x - mu) * jax.lax.rsqrt(var + _LN_EPS) * g_ref[...] + b_ref[...]

    @pl.when(t == pl.num_programs(1) - 1)
    def _():
        o_ref[...] *= inv_t


# ----------------------------------------------------------------------------
# Pallas wrappers
# ----------------------------------------------------------------------------
def linear_ln_lif(x, w, b, g, beta, *, nproj, tau, thr, t_steps, residual=None):
    """x: (T or 1, N, Din), w: (Din, nproj*Dout) -> (T, N, nproj*Dout) spikes.

    If `residual` is given (nproj must be 1) it is added to the spike output
    inside the kernel.  An x / residual with leading dim 1 is broadcast over T
    via the index_map (no HBM materialization of the T copies).
    """
    tx, n, din = x.shape
    dtot = w.shape[1]
    dout = dtot // nproj
    assert residual is None or nproj == 1

    act = 2  # bf16 activations
    fixed = 2 * din * dtot * act + 3 * 2 * dtot * 4          # weight + b/g/beta
    per_row = (2 * din * act            # x (double buffered)
               + 2 * dtot * act         # output (double buffered)
               + dtot * 4               # membrane scratch (f32)
               + 4 * dtot * 4)          # f32 matmul result + LN/LIF temporaries
    if residual is not None:
        per_row += 2 * dtot * act
    bm = _pick_block(n, per_row, fixed, _VMEM_BUDGET)

    x_map = (lambda i, tt: (0, i, 0)) if tx == 1 else (lambda i, tt: (tt, i, 0))
    in_specs = [pl.BlockSpec((1, bm, din), x_map)]
    args = [x]
    if residual is not None:
        tr = residual.shape[0]
        r_map = (lambda i, tt: (0, i, 0)) if tr == 1 else (lambda i, tt: (tt, i, 0))
        in_specs.append(pl.BlockSpec((1, bm, dout), r_map))
        args.append(residual)
    in_specs += [
        pl.BlockSpec((din, dtot), lambda i, tt: (0, 0)),
        pl.BlockSpec((1, dtot), lambda i, tt: (0, 0)),
        pl.BlockSpec((1, dtot), lambda i, tt: (0, 0)),
        pl.BlockSpec((1, dtot), lambda i, tt: (0, 0)),
    ]
    args += [w, b, g, beta]

    kern = functools.partial(_linear_ln_lif_kernel, nproj=nproj, dout=dout,
                             inv_tau=1.0 / float(tau), thr=float(thr),
                             has_residual=residual is not None)
    return pl.pallas_call(
        kern,
        out_shape=jax.ShapeDtypeStruct((t_steps, n, dtot), jnp.bfloat16),
        grid=(n // bm, t_steps),
        in_specs=in_specs,
        out_specs=pl.BlockSpec((1, bm, dtot), lambda i, tt: (tt, i, 0)),
        scratch_shapes=[pltpu.VMEM((nproj, bm, dout), jnp.float32)],
        compiler_params=pltpu.CompilerParams(
            dimension_semantics=("parallel", "arbitrary"),
            vmem_limit_bytes=_VMEM_LIMIT),
    )(*args)


def ssa_lif(qkv, *, heads, dim, scale, tau, thr):
    """qkv: spikes (T, A1, A0, 3D); attention over A0 per (T, A1, head)."""
    t_, a1, a0, d3 = qkv.shape
    d = dim
    assert d3 == 3 * d
    dh = d // heads
    # MXU-aware associativity choice: compare padded-tile costs, not raw FLOPs.
    use_kv_first = _mxu_round(dh) < _mxu_round(a0)

    per_grp = (a0 * (2 * d3 * 2      # qkv input (double buffered)
                     + 2 * d * 2     # output (double buffered)
                     + 2 * d * 4     # y + membrane scratches (f32)
                     + 3 * d * 4)    # f32 temporaries
               + a0 * a0 * 4)        # per-head attn matrix (qk-first path)
    gb = _pick_block(a1, per_grp, 0, _VMEM_BUDGET,
                     candidates=(256, 128, 64, 32, 16, 8, 4, 2, 1), multiple=1)

    kern = functools.partial(_ssa_lif_kernel, heads=heads, dh=dh, d=d,
                             scale=float(scale), inv_tau=1.0 / float(tau),
                             thr=float(thr), use_kv_first=use_kv_first)
    return pl.pallas_call(
        kern,
        out_shape=jax.ShapeDtypeStruct((t_, a1, a0, d), jnp.bfloat16),
        grid=(a1 // gb, t_),
        in_specs=[pl.BlockSpec((1, gb, a0, d3), lambda j, tt: (tt, j, 0, 0))],
        out_specs=pl.BlockSpec((1, gb, a0, d), lambda j, tt: (tt, j, 0, 0)),
        scratch_shapes=[pltpu.VMEM((gb, a0, d), jnp.float32),    # y slab
                        pltpu.VMEM((gb, a0, d), jnp.float32)],   # membrane
        compiler_params=pltpu.CompilerParams(
            dimension_semantics=("parallel", "arbitrary"),
            vmem_limit_bytes=_VMEM_LIMIT),
    )(qkv)


def layer_norm_mean(xt, g, b):
    """Fused last LayerNorm + mean over T:  (T, N, D) bf16 -> (N, D) f32."""
    t_, n, d = xt.shape
    per_row = 2 * d * 2 + 2 * d * 4 + 3 * d * 4
    bm = _pick_block(n, per_row, 2 * 2 * d * 4, _VMEM_BUDGET)
    return pl.pallas_call(
        functools.partial(_ln_mean_kernel, inv_t=1.0 / float(t_)),
        out_shape=jax.ShapeDtypeStruct((n, d), jnp.float32),
        grid=(n // bm, t_),
        in_specs=[pl.BlockSpec((1, bm, d), lambda i, tt: (tt, i, 0)),
                  pl.BlockSpec((1, d), lambda i, tt: (0, 0)),
                  pl.BlockSpec((1, d), lambda i, tt: (0, 0))],
        out_specs=pl.BlockSpec((bm, d), lambda i, tt: (i, 0)),
        compiler_params=pltpu.CompilerParams(
            dimension_semantics=("parallel", "arbitrary"),
            vmem_limit_bytes=_VMEM_LIMIT),
    )(xt, g, b)


# ----------------------------------------------------------------------------
# Model (parameter init + forward, mirroring the PyTorch module semantics)
# ----------------------------------------------------------------------------
def init_params(key, depths, dim, heads):
    del heads  # head split has no extra parameters
    hid = dim * 4

    def linear_w(k, din, dout):
        return (jax.random.normal(k, (din, dout), jnp.float32) * 0.02
                ).astype(jnp.bfloat16)

    def zeros(d):
        return jnp.zeros((1, d), jnp.float32)

    def ones(d):
        return jnp.ones((1, d), jnp.float32)

    params = {'blocks': []}
    for _ in range(depths):
        key, kq, kk, kv, kl, k1, k2 = jax.random.split(key, 7)
        attn = {
            # q|k|v fused along Dout; per-slice LayerNorm params concatenated.
            'qkv_w': jnp.concatenate([linear_w(kq, dim, dim),
                                      linear_w(kk, dim, dim),
                                      linear_w(kv, dim, dim)], axis=1),
            'qkv_b': zeros(3 * dim), 'qkv_g': ones(3 * dim),
            'qkv_beta': zeros(3 * dim),
            'last_w': linear_w(kl, dim, dim),
            'last_b': zeros(dim), 'last_g': ones(dim), 'last_beta': zeros(dim),
        }
        mlp_p = {
            'fc1_w': linear_w(k1, dim, hid), 'fc1_b': zeros(hid),
            'ln1_g': ones(hid), 'ln1_b': zeros(hid),
            'fc2_w': linear_w(k2, hid, dim), 'fc2_b': zeros(dim),
            'ln2_g': ones(dim), 'ln2_b': zeros(dim),
        }
        params['blocks'].append({'attn': attn, 'mlp': mlp_p})
    params['last_ln_g'] = ones(dim)
    params['last_ln_b'] = zeros(dim)
    # NOTE: the PyTorch module also builds `transforms` (Linear+LN per depth),
    # but they are never used in forward(), so they are omitted here.
    return params


def spikformer_forward(params, x, *, T, heads, tau, thr, qk_scale):
    # x: (A0, A1, D) in the module's input layout -- attention runs over A0
    # per (A1, head), exactly as in the PyTorch reference.
    a0, a1, d = x.shape
    assert d % heads == 0
    n = a1 * a0

    # Input encoding: heaviside (surrogate.ATan forward).  The T-fold repeat is
    # never materialized -- the first block broadcasts it via its index_map.
    s = (x >= 0).astype(jnp.bfloat16)                    # spikes exact in bf16
    x0 = jnp.transpose(s, (1, 0, 2)).reshape(1, n, d)    # (1, N, D)

    xt = x0                                              # (1, N, D) for block 0
    for blk in params['blocks']:
        # --- spiking self-attention ---
        p = blk['attn']
        qkv = linear_ln_lif(xt, p['qkv_w'], p['qkv_b'], p['qkv_g'],
                            p['qkv_beta'], nproj=3, tau=tau, thr=thr,
                            t_steps=T)                   # (T, N, 3D)
        a_sp = ssa_lif(qkv.reshape(T, a1, a0, 3 * d), heads=heads, dim=d,
                       scale=qk_scale, tau=tau, thr=thr / 2.0)  # attn_lif fused
        # last Linear+LN+LIF with the residual add fused in (x = x + attn(x)).
        xt = linear_ln_lif(a_sp.reshape(T, n, d), p['last_w'], p['last_b'],
                           p['last_g'], p['last_beta'], nproj=1, tau=tau,
                           thr=thr, t_steps=T, residual=xt)      # (T, N, D)

        # --- MLP (residual fused into fc2's kernel: x = x + mlp(x)) ---
        m = blk['mlp']
        h = linear_ln_lif(xt, m['fc1_w'], m['fc1_b'], m['ln1_g'], m['ln1_b'],
                          nproj=1, tau=tau, thr=thr, t_steps=T)
        xt = linear_ln_lif(h, m['fc2_w'], m['fc2_b'], m['ln2_g'], m['ln2_b'],
                           nproj=1, tau=tau, thr=thr, t_steps=T, residual=xt)
        # NOTE: residual values are small non-negative integers (<= 1+2*depth),
        # so the bf16 activation storage stays exact.

    y = layer_norm_mean(xt, params['last_ln_g'], params['last_ln_b'])  # (N, D)
    y = y.reshape(a1, a0, d)
    return jnp.transpose(y, (1, 0, 2))                   # back to (A0, A1, D)


# ----------------------------------------------------------------------------
# Main
# ----------------------------------------------------------------------------
if __name__ == "__main__":
    # Small, shape-consistent config.
    B, L, D = 2, 8, 32
    heads, T, depths = 4, 4, 2
    tau, common_thr, qk_scale = 2.0, 1.0, 0.125

    key = jax.random.PRNGKey(0)
    kp, kx = jax.random.split(key)
    params = init_params(kp, depths, D, heads)
    x = jax.random.normal(kx, (B, L, D), jnp.float32)

    fwd = jax.jit(functools.partial(
        spikformer_forward, T=T, heads=heads, tau=tau, thr=common_thr,
        qk_scale=qk_scale))

    out = jax.block_until_ready(fwd(params, x))
    assert out.shape == (B, L, D), out.shape
    assert bool(jnp.all(jnp.isfinite(out)))
    print("KERNEL_OK")
</pallas_src>

<mosaic_0001>
module attributes {stable_mosaic.version = 11 : i64} {
  func.func @_linear_ln_lif_kernel(%arg0: i32, %arg1: i32, %arg2: memref<1x8x32xbf16, #tpu.memory_space<vmem>>, %arg3: memref<32x96xbf16, #tpu.memory_space<vmem>>, %arg4: memref<1x96xf32, #tpu.memory_space<vmem>>, %arg5: memref<1x96xf32, #tpu.memory_space<vmem>>, %arg6: memref<1x96xf32, #tpu.memory_space<vmem>>, %arg7: memref<1x8x96xbf16, #tpu.memory_space<vmem>>, %arg8: memref<3x8x32xf32, #tpu.memory_space<vmem>>) attributes {dimension_semantics = [#tpu.dimension_semantics<parallel>, #tpu.dimension_semantics<arbitrary>], iteration_bounds = array<i64: 2, 4>, scalar_prefetch = 0 : i64, scratch_operands = 1 : i64, tpu.core_type = #tpu.core_type<tc>, window_params = [{transform_indices = @transform_0, window_bounds = array<i64: 1, 8, 32>}, {pipeline_mode = #tpu.pipeline_mode<synchronous>, transform_indices = @transform_1, window_bounds = array<i64: 32, 96>}, {pipeline_mode = #tpu.pipeline_mode<synchronous>, transform_indices = @transform_2, window_bounds = array<i64: 1, 96>}, {pipeline_mode = #tpu.pipeline_mode<synchronous>, transform_indices = @transform_3, window_bounds = array<i64: 1, 96>}, {pipeline_mode = #tpu.pipeline_mode<synchronous>, transform_indices = @transform_4, window_bounds = array<i64: 1, 96>}, {transform_indices = @transform_5, window_bounds = array<i64: 1, 8, 96>}]} {
    %c0_i32 = arith.constant 0 : i32
    %0 = arith.cmpi eq, %arg1, %c0_i32 : i32
    %1 = arith.extui %0 : i1 to i32
    %c0_i32_0 = arith.constant 0 : i32
    %2 = arith.cmpi ne, %1, %c0_i32_0 : i32
    scf.if %2 {
      %cst_63 = arith.constant 0.000000e+00 : f32
      %146 = vector.broadcast %cst_63 : f32 to vector<3x8x32xf32>
      %c0_64 = arith.constant 0 : index
      %c0_65 = arith.constant 0 : index
      %c0_66 = arith.constant 0 : index
      %147 = vector.load %arg8[%c0_64, %c0_65, %c0_66] : memref<3x8x32xf32, #tpu.memory_space<vmem>>, vector<3x8x32xf32>
      tpu.vector_store %arg8[%c0_64, %c0_65, %c0_66], %146 {strides = array<i32>} : memref<3x8x32xf32, #tpu.memory_space<vmem>>, vector<3x8x32xf32>,
    } else {
    }
    %c0 = arith.constant 0 : index
    %c0_1 = arith.constant 0 : index
    %c0_2 = arith.constant 0 : index
    %3 = vector.load %arg2[%c0, %c0_1, %c0_2] : memref<1x8x32xbf16, #tpu.memory_space<vmem>>, vector<1x8x32xbf16>
    %4 = vector.shape_cast %3 : vector<1x8x32xbf16> to vector<8x32xbf16>
    %c0_3 = arith.constant 0 : index
    %c0_4 = arith.constant 0 : index
    %5 = vector.load %arg3[%c0_3, %c0_4] : memref<32x96xbf16, #tpu.memory_space<vmem>>, vector<32x96xbf16>
    %cst = arith.constant dense<0.000000e+00> : vector<8x96xf32>
    %6 = tpu.matmul %4, %5, %cst {dimension_numbers = #tpu.dot_dimension_numbers<[1], [0], [0], [1], [0, 0, 1, 1], [], []>} : vector<8x32xbf16>, vector<32x96xbf16>, vector<8x96xf32> -> vector<8x96xf32>
    %c0_5 = arith.constant 0 : index
    %c0_6 = arith.constant 0 : index
    %7 = vector.load %arg4[%c0_5, %c0_6] : memref<1x96xf32, #tpu.memory_space<vmem>>, vector<1x96xf32>
    %8 = vector.broadcast %7 : vector<1x96xf32> to vector<8x96xf32>
    %9 = arith.addf %6, %8 : vector<8x96xf32>
    %c0_7 = arith.constant 0 : index
    %c0_8 = arith.constant 0 : index
    %10 = vector.load %arg5[%c0_7, %c0_8] : memref<1x96xf32, #tpu.memory_space<vmem>>, vector<1x96xf32>
    %c0_9 = arith.constant 0 : index
    %c0_10 = arith.constant 0 : index
    %11 = vector.load %arg6[%c0_9, %c0_10] : memref<1x96xf32, #tpu.memory_space<vmem>>, vector<1x96xf32>
    %12 = vector.extract_strided_slice %9 {offsets = [0, 0], sizes = [8, 32], strides = [1, 1]} : vector<8x96xf32> to vector<8x32xf32>
    %cst_11 = arith.constant dense<0.000000e+00> : vector<8xf32>
    %13 = vector.multi_reduction <add>, %12, %cst_11 [1] : vector<8x32xf32> to vector<8xf32>
    %14 = vector.shape_cast %13 : vector<8xf32> to vector<8x1xf32>
    %cst_12 = arith.constant 3.200000e+01 : f32
    %15 = vector.broadcast %cst_12 : f32 to vector<8x1xf32>
    %16 = arith.divf %14, %15 : vector<8x1xf32>
    %17 = vector.broadcast %16 : vector<8x1xf32> to vector<8x32xf32>
    %18 = arith.subf %12, %17 : vector<8x32xf32>
    %19 = arith.mulf %18, %18 : vector<8x32xf32>
    %cst_13 = arith.constant dense<0.000000e+00> : vector<8xf32>
    %20 = vector.multi_reduction <add>, %19, %cst_13 [1] : vector<8x32xf32> to vector<8xf32>
    %21 = vector.shape_cast %20 : vector<8xf32> to vector<8x1xf32>
    %cst_14 = arith.constant 3.200000e+01 : f32
    %22 = vector.broadcast %cst_14 : f32 to vector<8x1xf32>
    %23 = arith.divf %21, %22 : vector<8x1xf32>
    %24 = vector.broadcast %16 : vector<8x1xf32> to vector<8x32xf32>
    %25 = arith.subf %12, %24 : vector<8x32xf32>
    %cst_15 = arith.constant 9.99999974E-6 : f32
    %26 = vector.broadcast %cst_15 : f32 to vector<8x1xf32>
    %27 = arith.addf %23, %26 : vector<8x1xf32>
    %28 = math.rsqrt %27 : vector<8x1xf32>
    %29 = vector.broadcast %28 : vector<8x1xf32> to vector<8x32xf32>
    %30 = arith.mulf %25, %29 : vector<8x32xf32>
    %31 = vector.extract_strided_slice %10 {offsets = [0, 0], sizes = [1, 32], strides = [1, 1]} : vector<1x96xf32> to vector<1x32xf32>
    %32 = vector.broadcast %31 : vector<1x32xf32> to vector<8x32xf32>
    %33 = arith.mulf %30, %32 : vector<8x32xf32>
    %34 = vector.extract_strided_slice %11 {offsets = [0, 0], sizes = [1, 32], strides = [1, 1]} : vector<1x96xf32> to vector<1x32xf32>
    %35 = vector.broadcast %34 : vector<1x32xf32> to vector<8x32xf32>
    %36 = arith.addf %33, %35 : vector<8x32xf32>
    %c0_16 = arith.constant 0 : index
    %c0_17 = arith.constant 0 : index
    %c0_18 = arith.constant 0 : index
    %37 = vector.load %arg8[%c0_16, %c0_17, %c0_18] : memref<3x8x32xf32, #tpu.memory_space<vmem>>, vector<1x8x32xf32>
    %38 = vector.shape_cast %37 : vector<1x8x32xf32> to vector<8x32xf32>
    %c0_19 = arith.constant 0 : index
    %c0_20 = arith.constant 0 : index
    %c0_21 = arith.constant 0 : index
    %39 = vector.load %arg8[%c0_19, %c0_20, %c0_21] : memref<3x8x32xf32, #tpu.memory_space<vmem>>, vector<1x8x32xf32>
    %40 = vector.shape_cast %39 : vector<1x8x32xf32> to vector<8x32xf32>
    %41 = arith.subf %36, %40 : vector<8x32xf32>
    %cst_22 = arith.constant 5.000000e-01 : f32
    %42 = vector.broadcast %cst_22 : f32 to vector<8x32xf32>
    %43 = arith.mulf %41, %42 : vector<8x32xf32>
    %44 = arith.addf %38, %43 : vector<8x32xf32>
    %cst_23 = arith.constant 1.000000e+00 : f32
    %45 = vector.broadcast %cst_23 : f32 to vector<8x32xf32>
    %46 = arith.cmpf oge, %44, %45 : vector<8x32xf32>
    %47 = arith.extui %46 : vector<8x32xi1> to vector<8x32xi32>
    %48 = arith.sitofp %47 : vector<8x32xi32> to vector<8x32xf32>
    %cst_24 = arith.constant 1.000000e+00 : f32
    %49 = vector.broadcast %cst_24 : f32 to vector<8x32xf32>
    %50 = arith.subf %49, %48 : vector<8x32xf32>
    %51 = arith.mulf %44, %50 : vector<8x32xf32>
    %c0_25 = arith.constant 0 : index
    %c0_26 = arith.constant 0 : index
    %c0_27 = arith.constant 0 : index
    %52 = vector.load %arg8[%c0_25, %c0_26, %c0_27] : memref<3x8x32xf32, #tpu.memory_space<vmem>>, vector<1x8x32xf32>
    %53 = vector.shape_cast %52 : vector<1x8x32xf32> to vector<8x32xf32>
    %54 = vector.shape_cast %51 : vector<8x32xf32> to vector<1x8x32xf32>
    tpu.vector_store %arg8[%c0_25, %c0_26, %c0_27], %54 {strides = array<i32>} : memref<3x8x32xf32, #tpu.memory_space<vmem>>, vector<1x8x32xf32>,
    %55 = vector.extract_strided_slice %9 {offsets = [0, 32], sizes = [8, 32], strides = [1, 1]} : vector<8x96xf32> to vector<8x32xf32>
    %cst_28 = arith.constant dense<0.000000e+00> : vector<8xf32>
    %56 = vector.multi_reduction <add>, %55, %cst_28 [1] : vector<8x32xf32> to vector<8xf32>
    %57 = vector.shape_cast %56 : vector<8xf32> to vector<8x1xf32>
    %cst_29 = arith.constant 3.200000e+01 : f32
    %58 = vector.broadcast %cst_29 : f32 to vector<8x1xf32>
    %59 = arith.divf %57, %58 : vector<8x1xf32>
    %60 = vector.broadcast %59 : vector<8x1xf32> to vector<8x32xf32>
    %61 = arith.subf %55, %60 : vector<8x32xf32>
    %62 = arith.mulf %61, %61 : vector<8x32xf32>
    %cst_30 = arith.constant dense<0.000000e+00> : vector<8xf32>
    %63 = vector.multi_reduction <add>, %62, %cst_30 [1] : vector<8x32xf32> to vector<8xf32>
    %64 = vector.shape_cast %63 : vector<8xf32> to vector<8x1xf32>
    %cst_31 = arith.constant 3.200000e+01 : f32
    %65 = vector.broadcast %cst_31 : f32 to vector<8x1xf32>
    %66 = arith.divf %64, %65 : vector<8x1xf32>
    %67 = vector.broadcast %59 : vector<8x1xf32> to vector<8x32xf32>
    %68 = arith.subf %55, %67 : vector<8x32xf32>
    %cst_32 = arith.constant 9.99999974E-6 : f32
    %69 = vector.broadcast %cst_32 : f32 to vector<8x1xf32>
    %70 = arith.addf %66, %69 : vector<8x1xf32>
    %71 = math.rsqrt %70 : vector<8x1xf32>
    %72 = vector.broadcast %71 : vector<8x1xf32> to vector<8x32xf32>
    %73 = arith.mulf %68, %72 : vector<8x32xf32>
    %74 = vector.extract_strided_slice %10 {offsets = [0, 32], sizes = [1, 32], strides = [1, 1]} : vector<1x96xf32> to vector<1x32xf32>
    %75 = vector.broadcast %74 : vector<1x32xf32> to vector<8x32xf32>
    %76 = arith.mulf %73, %75 : vector<8x32xf32>
    %77 = vector.extract_strided_slice %11 {offsets = [0, 32], sizes = [1, 32], strides = [1, 1]} : vector<1x96xf32> to vector<1x32xf32>
    %78 = vector.broadcast %77 : vector<1x32xf32> to vector<8x32xf32>
    %79 = arith.addf %76, %78 : vector<8x32xf32>
    %c1 = arith.constant 1 : index
    %c0_33 = arith.constant 0 : index
    %c0_34 = arith.constant 0 : index
    %80 = vector.load %arg8[%c1, %c0_33, %c0_34] : memref<3x8x32xf32, #tpu.memory_space<vmem>>, vector<1x8x32xf32>
    %81 = vector.shape_cast %80 : vector<1x8x32xf32> to vector<8x32xf32>
    %c1_35 = arith.constant 1 : index
    %c0_36 = arith.constant 0 : index
    %c0_37 = arith.constant 0 : index
    %82 = vector.load %arg8[%c1_35, %c0_36, %c0_37] : memref<3x8x32xf32, #tpu.memory_space<vmem>>, vector<1x8x32xf32>
    %83 = vector.shape_cast %82 : vector<1x8x32xf32> to vector<8x32xf32>
    %84 = arith.subf %79, %83 : vector<8x32xf32>
    %cst_38 = arith.constant 5.000000e-01 : f32
    %85 = vector.broadcast %cst_38 : f32 to vector<8x32xf32>
    %86 = arith.mulf %84, %85 : vector<8x32xf32>
    %87 = arith.addf %81, %86 : vector<8x32xf32>
    %cst_39 = arith.constant 1.000000e+00 : f32
    %88 = vector.broadcast %cst_39 : f32 to vector<8x32xf32>
    %89 = arith.cmpf oge, %87, %88 : vector<8x32xf32>
    %90 = arith.extui %89 : vector<8x32xi1> to vector<8x32xi32>
    %91 = arith.sitofp %90 : vector<8x32xi32> to vector<8x32xf32>
    %cst_40 = arith.constant 1.000000e+00 : f32
    %92 = vector.broadcast %cst_40 : f32 to vector<8x32xf32>
    %93 = arith.subf %92, %91 : vector<8x32xf32>
    %94 = arith.mulf %87, %93 : vector<8x32xf32>
    %c1_41 = arith.constant 1 : index
    %c0_42 = arith.constant 0 : index
    %c0_43 = arith.constant 0 : index
    %95 = vector.load %arg8[%c1_41, %c0_42, %c0_43] : memref<3x8x32xf32, #tpu.memory_space<vmem>>, vector<1x8x32xf32>
    %96 = vector.shape_cast %95 : vector<1x8x32xf32> to vector<8x32xf32>
    %97 = vector.shape_cast %94 : vector<8x32xf32> to vector<1x8x32xf32>
    tpu.vector_store %arg8[%c1_41, %c0_42, %c0_43], %97 {strides = array<i32>} : memref<3x8x32xf32, #tpu.memory_space<vmem>>, vector<1x8x32xf32>,
    %98 = vector.extract_strided_slice %9 {offsets = [0, 64], sizes = [8, 32], strides = [1, 1]} : vector<8x96xf32> to vector<8x32xf32>
    %cst_44 = arith.constant dense<0.000000e+00> : vector<8xf32>
    %99 = vector.multi_reduction <add>, %98, %cst_44 [1] : vector<8x32xf32> to vector<8xf32>
    %100 = vector.shape_cast %99 : vector<8xf32> to vector<8x1xf32>
    %cst_45 = arith.constant 3.200000e+01 : f32
    %101 = vector.broadcast %cst_45 : f32 to vector<8x1xf32>
    %102 = arith.divf %100, %101 : vector<8x1xf32>
    %103 = vector.broadcast %102 : vector<8x1xf32> to vector<8x32xf32>
    %104 = arith.subf %98, %103 : vector<8x32xf32>
    %105 = arith.mulf %104, %104 : vector<8x32xf32>
    %cst_46 = arith.constant dense<0.000000e+00> : vector<8xf32>
    %106 = vector.multi_reduction <add>, %105, %cst_46 [1] : vector<8x32xf32> to vector<8xf32>
    %107 = vector.shape_cast %106 : vector<8xf32> to vector<8x1xf32>
    %cst_47 = arith.constant 3.200000e+01 : f32
    %108 = vector.broadcast %cst_47 : f32 to vector<8x1xf32>
    %109 = arith.divf %107, %108 : vector<8x1xf32>
    %110 = vector.broadcast %102 : vector<8x1xf32> to vector<8x32xf32>
    %111 = arith.subf %98, %110 : vector<8x32xf32>
    %cst_48 = arith.constant 9.99999974E-6 : f32
    %112 = vector.broadcast %cst_48 : f32 to vector<8x1xf32>
    %113 = arith.addf %109, %112 : vector<8x1xf32>
    %114 = math.rsqrt %113 : vector<8x1xf32>
    %115 = vector.broadcast %114 : vector<8x1xf32> to vector<8x32xf32>
    %116 = arith.mulf %111, %115 : vector<8x32xf32>
    %117 = vector.extract_strided_slice %10 {offsets = [0, 64], sizes = [1, 32], strides = [1, 1]} : vector<1x96xf32> to vector<1x32xf32>
    %118 = vector.broadcast %117 : vector<1x32xf32> to vector<8x32xf32>
    %119 = arith.mulf %116, %118 : vector<8x32xf32>
    %120 = vector.extract_strided_slice %11 {offsets = [0, 64], sizes = [1, 32], strides = [1, 1]} : vector<1x96xf32> to vector<1x32xf32>
    %121 = vector.broadcast %120 : vector<1x32xf32> to vector<8x32xf32>
    %122 = arith.addf %119, %121 : vector<8x32xf32>
    %c2 = arith.constant 2 : index
    %c0_49 = arith.constant 0 : index
    %c0_50 = arith.constant 0 : index
    %123 = vector.load %arg8[%c2, %c0_49, %c0_50] : memref<3x8x32xf32, #tpu.memory_space<vmem>>, vector<1x8x32xf32>
    %124 = vector.shape_cast %123 : vector<1x8x32xf32> to vector<8x32xf32>
    %c2_51 = arith.constant 2 : index
    %c0_52 = arith.constant 0 : index
    %c0_53 = arith.constant 0 : index
    %125 = vector.load %arg8[%c2_51, %c0_52, %c0_53] : memref<3x8x32xf32, #tpu.memory_space<vmem>>, vector<1x8x32xf32>
    %126 = vector.shape_cast %125 : vector<1x8x32xf32> to vector<8x32xf32>
    %127 = arith.subf %122, %126 : vector<8x32xf32>
    %cst_54 = arith.constant 5.000000e-01 : f32
    %128 = vector.broadcast %cst_54 : f32 to vector<8x32xf32>
    %129 = arith.mulf %127, %128 : vector<8x32xf32>
    %130 = arith.addf %124, %129 : vector<8x32xf32>
    %cst_55 = arith.constant 1.000000e+00 : f32
    %131 = vector.broadcast %cst_55 : f32 to vector<8x32xf32>
    %132 = arith.cmpf oge, %130, %131 : vector<8x32xf32>
    %133 = arith.extui %132 : vector<8x32xi1> to vector<8x32xi32>
    %134 = arith.sitofp %133 : vector<8x32xi32> to vector<8x32xf32>
    %cst_56 = arith.constant 1.000000e+00 : f32
    %135 = vector.broadcast %cst_56 : f32 to vector<8x32xf32>
    %136 = arith.subf %135, %134 : vector<8x32xf32>
    %137 = arith.mulf %130, %136 : vector<8x32xf32>
    %c2_57 = arith.constant 2 : index
    %c0_58 = arith.constant 0 : index
    %c0_59 = arith.constant 0 : index
    %138 = vector.load %arg8[%c2_57, %c0_58, %c0_59] : memref<3x8x32xf32, #tpu.memory_space<vmem>>, vector<1x8x32xf32>
    %139 = vector.shape_cast %138 : vector<1x8x32xf32> to vector<8x32xf32>
    %140 = vector.shape_cast %137 : vector<8x32xf32> to vector<1x8x32xf32>
    tpu.vector_store %arg8[%c2_57, %c0_58, %c0_59], %140 {strides = array<i32>} : memref<3x8x32xf32, #tpu.memory_space<vmem>>, vector<1x8x32xf32>,
    %141 = tpu.concatenate %48, %91, %134 in 1 : vector<8x32xf32>, vector<8x32xf32>, vector<8x32xf32> -> vector<8x96xf32>
    %142 = arith.truncf %141 : vector<8x96xf32> to vector<8x96xbf16>
    %c0_60 = arith.constant 0 : index
    %c0_61 = arith.constant 0 : index
    %c0_62 = arith.constant 0 : index
    %143 = vector.load %arg7[%c0_60, %c0_61, %c0_62] : memref<1x8x96xbf16, #tpu.memory_space<vmem>>, vector<1x8x96xbf16>
    %144 = vector.shape_cast %143 : vector<1x8x96xbf16> to vector<8x96xbf16>
    %145 = vector.shape_cast %142 : vector<8x96xbf16> to vector<1x8x96xbf16>
    tpu.vector_store %arg7[%c0_60, %c0_61, %c0_62], %145 {strides = array<i32>} : memref<1x8x96xbf16, #tpu.memory_space<vmem>>, vector<1x8x96xbf16>,
    return
  }
  func.func @transform_0(%arg0: i32, %arg1: i32) -> (i32, i32, i32) {
    %c0_i32 = arith.constant 0 : i32
    %c0_i32_0 = arith.constant 0 : i32
    %c0_i32_1 = arith.constant 0 : i32
    return %c0_i32, %arg0, %c0_i32_0 : i32, i32, i32
  }
  func.func @transform_1(%arg0: i32, %arg1: i32) -> (i32, i32) {
    %c0_i32 = arith.constant 0 : i32
    %c0_i32_0 = arith.constant 0 : i32
    %c0_i32_1 = arith.constant 0 : i32
    return %c0_i32, %c0_i32_0 : i32, i32
  }
  func.func @transform_2(%arg0: i32, %arg1: i32) -> (i32, i32) {
    %c0_i32 = arith.constant 0 : i32
    %c0_i32_0 = arith.constant 0 : i32
    %c0_i32_1 = arith.constant 0 : i32
    return %c0_i32, %c0_i32_0 : i32, i32
  }
  func.func @transform_3(%arg0: i32, %arg1: i32) -> (i32, i32) {
    %c0_i32 = arith.constant 0 : i32
    %c0_i32_0 = arith.constant 0 : i32
    %c0_i32_1 = arith.constant 0 : i32
    return %c0_i32, %c0_i32_0 : i32, i32
  }
  func.func @transform_4(%arg0: i32, %arg1: i32) -> (i32, i32) {
    %c0_i32 = arith.constant 0 : i32
    %c0_i32_0 = arith.constant 0 : i32
    %c0_i32_1 = arith.constant 0 : i32
    return %c0_i32, %c0_i32_0 : i32, i32
  }
  func.func @transform_5(%arg0: i32, %arg1: i32) -> (i32, i32, i32) {
    %c0_i32 = arith.constant 0 : i32
    %c0_i32_0 = arith.constant 0 : i32
    return %arg1, %arg0, %c0_i32 : i32, i32, i32
  }
}

module attributes {stable_mosaic.version = 11 : i64} {
  func.func @_linear_ln_lif_kernel(%arg0: i32, %arg1: i32, %arg2: memref<1x8x32xbf16, #tpu.memory_space<vmem>>, %arg3: memref<32x128xbf16, #tpu.memory_space<vmem>>, %arg4: memref<1x128xf32, #tpu.memory_space<vmem>>, %arg5: memref<1x128xf32, #tpu.memory_space<vmem>>, %arg6: memref<1x128xf32, #tpu.memory_space<vmem>>, %arg7: memref<1x8x128xbf16, #tpu.memory_space<vmem>>, %arg8: memref<1x8x128xf32, #tpu.memory_space<vmem>>) attributes {dimension_semantics = [#tpu.dimension_semantics<parallel>, #tpu.dimension_semantics<arbitrary>], iteration_bounds = array<i64: 2, 4>, scalar_prefetch = 0 : i64, scratch_operands = 1 : i64, tpu.core_type = #tpu.core_type<tc>, window_params = [{transform_indices = @transform_0, window_bounds = array<i64: 1, 8, 32>}, {pipeline_mode = #tpu.pipeline_mode<synchronous>, transform_indices = @transform_1, window_bounds = array<i64: 32, 128>}, {pipeline_mode = #tpu.pipeline_mode<synchronous>, transform_indices = @transform_2, window_bounds = array<i64: 1, 128>}, {pipeline_mode = #tpu.pipeline_mode<synchronous>, transform_indices = @transform_3, window_bounds = array<i64: 1, 128>}, {pipeline_mode = #tpu.pipeline_mode<synchronous>, transform_indices = @transform_4, window_bounds = array<i64: 1, 128>}, {transform_indices = @transform_5, window_bounds = array<i64: 1, 8, 128>}]} {
    %c0_i32 = arith.constant 0 : i32
    %0 = arith.cmpi eq, %arg1, %c0_i32 : i32
    %1 = arith.extui %0 : i1 to i32
    %c0_i32_0 = arith.constant 0 : i32
    %2 = arith.cmpi ne, %1, %c0_i32_0 : i32
    scf.if %2 {
      %cst_31 = arith.constant 0.000000e+00 : f32
      %56 = vector.broadcast %cst_31 : f32 to vector<1x8x128xf32>
      %c0_32 = arith.constant 0 : index
      %c0_33 = arith.constant 0 : index
      %c0_34 = arith.constant 0 : index
      %57 = vector.load %arg8[%c0_32, %c0_33, %c0_34] : memref<1x8x128xf32, #tpu.memory_space<vmem>>, vector<1x8x128xf32>
      tpu.vector_store %arg8[%c0_32, %c0_33, %c0_34], %56 {strides = array<i32>} : memref<1x8x128xf32, #tpu.memory_space<vmem>>, vector<1x8x128xf32>,
    } else {
    }
    %c0 = arith.constant 0 : index
    %c0_1 = arith.constant 0 : index
    %c0_2 = arith.constant 0 : index
    %3 = vector.load %arg2[%c0, %c0_1, %c0_2] : memref<1x8x32xbf16, #tpu.memory_space<vmem>>, vector<1x8x32xbf16>
    %4 = vector.shape_cast %3 : vector<1x8x32xbf16> to vector<8x32xbf16>
    %c0_3 = arith.constant 0 : index
    %c0_4 = arith.constant 0 : index
    %5 = vector.load %arg3[%c0_3, %c0_4] : memref<32x128xbf16, #tpu.memory_space<vmem>>, vector<32x128xbf16>
    %cst = arith.constant dense<0.000000e+00> : vector<8x128xf32>
    %6 = tpu.matmul %4, %5, %cst {dimension_numbers = #tpu.dot_dimension_numbers<[1], [0], [0], [1], [0, 0, 1, 1], [], []>} : vector<8x32xbf16>, vector<32x128xbf16>, vector<8x128xf32> -> vector<8x128xf32>
    %c0_5 = arith.constant 0 : index
    %c0_6 = arith.constant 0 : index
    %7 = vector.load %arg4[%c0_5, %c0_6] : memref<1x128xf32, #tpu.memory_space<vmem>>, vector<1x128xf32>
    %8 = vector.broadcast %7 : vector<1x128xf32> to vector<8x128xf32>
    %9 = arith.addf %6, %8 : vector<8x128xf32>
    %c0_7 = arith.constant 0 : index
    %c0_8 = arith.constant 0 : index
    %10 = vector.load %arg5[%c0_7, %c0_8] : memref<1x128xf32, #tpu.memory_space<vmem>>, vector<1x128xf32>
    %c0_9 = arith.constant 0 : index
    %c0_10 = arith.constant 0 : index
    %11 = vector.load %arg6[%c0_9, %c0_10] : memref<1x128xf32, #tpu.memory_space<vmem>>, vector<1x128xf32>
    %cst_11 = arith.constant dense<0.000000e+00> : vector<8xf32>
    %12 = vector.multi_reduction <add>, %9, %cst_11 [1] : vector<8x128xf32> to vector<8xf32>
    %13 = vector.shape_cast %12 : vector<8xf32> to vector<8x1xf32>
    %cst_12 = arith.constant 1.280000e+02 : f32
    %14 = vector.broadcast %cst_12 : f32 to vector<8x1xf32>
    %15 = arith.divf %13, %14 : vector<8x1xf32>
    %16 = vector.broadcast %15 : vector<8x1xf32> to vector<8x128xf32>
    %17 = arith.subf %9, %16 : vector<8x128xf32>
    %18 = arith.mulf %17, %17 : vector<8x128xf32>
    %cst_13 = arith.constant dense<0.000000e+00> : vector<8xf32>
    %19 = vector.multi_reduction <add>, %18, %cst_13 [1] : vector<8x128xf32> to vector<8xf32>
    %20 = vector.shape_cast %19 : vector<8xf32> to vector<8x1xf32>
    %cst_14 = arith.constant 1.280000e+02 : f32
    %21 = vector.broadcast %cst_14 : f32 to vector<8x1xf32>
    %22 = arith.divf %20, %21 : vector<8x1xf32>
    %23 = vector.broadcast %15 : vector<8x1xf32> to vector<8x128xf32>
    %24 = arith.subf %9, %23 : vector<8x128xf32>
    %cst_15 = arith.constant 9.99999974E-6 : f32
    %25 = vector.broadcast %cst_15 : f32 to vector<8x1xf32>
    %26 = arith.addf %22, %25 : vector<8x1xf32>
    %27 = math.rsqrt %26 : vector<8x1xf32>
    %28 = vector.broadcast %27 : vector<8x1xf32> to vector<8x128xf32>
    %29 = arith.mulf %24, %28 : vector<8x128xf32>
    %30 = vector.broadcast %10 : vector<1x128xf32> to vector<8x128xf32>
    %31 = arith.mulf %29, %30 : vector<8x128xf32>
    %32 = vector.broadcast %11 : vector<1x128xf32> to vector<8x128xf32>
    %33 = arith.addf %31, %32 : vector<8x128xf32>
    %c0_16 = arith.constant 0 : index
    %c0_17 = arith.constant 0 : index
    %c0_18 = arith.constant 0 : index
    %34 = vector.load %arg8[%c0_16, %c0_17, %c0_18] : memref<1x8x128xf32, #tpu.memory_space<vmem>>, vector<1x8x128xf32>
    %35 = vector.shape_cast %34 : vector<1x8x128xf32> to vector<8x128xf32>
    %c0_19 = arith.constant 0 : index
    %c0_20 = arith.constant 0 : index
    %c0_21 = arith.constant 0 : index
    %36 = vector.load %arg8[%c0_19, %c0_20, %c0_21] : memref<1x8x128xf32, #tpu.memory_space<vmem>>, vector<1x8x128xf32>
    %37 = vector.shape_cast %36 : vector<1x8x128xf32> to vector<8x128xf32>
    %38 = arith.subf %33, %37 : vector<8x128xf32>
    %cst_22 = arith.constant 5.000000e-01 : f32
    %39 = vector.broadcast %cst_22 : f32 to vector<8x128xf32>
    %40 = arith.mulf %38, %39 : vector<8x128xf32>
    %41 = arith.addf %35, %40 : vector<8x128xf32>
    %cst_23 = arith.constant 1.000000e+00 : f32
    %42 = vector.broadcast %cst_23 : f32 to vector<8x128xf32>
    %43 = arith.cmpf oge, %41, %42 : vector<8x128xf32>
    %44 = arith.extui %43 : vector<8x128xi1> to vector<8x128xi32>
    %45 = arith.sitofp %44 : vector<8x128xi32> to vector<8x128xf32>
    %cst_24 = arith.constant 1.000000e+00 : f32
    %46 = vector.broadcast %cst_24 : f32 to vector<8x128xf32>
    %47 = arith.subf %46, %45 : vector<8x128xf32>
    %48 = arith.mulf %41, %47 : vector<8x128xf32>
    %c0_25 = arith.constant 0 : index
    %c0_26 = arith.constant 0 : index
    %c0_27 = arith.constant 0 : index
    %49 = vector.load %arg8[%c0_25, %c0_26, %c0_27] : memref<1x8x128xf32, #tpu.memory_space<vmem>>, vector<1x8x128xf32>
    %50 = vector.shape_cast %49 : vector<1x8x128xf32> to vector<8x128xf32>
    %51 = vector.shape_cast %48 : vector<8x128xf32> to vector<1x8x128xf32>
    tpu.vector_store %arg8[%c0_25, %c0_26, %c0_27], %51 {strides = array<i32>} : memref<1x8x128xf32, #tpu.memory_space<vmem>>, vector<1x8x128xf32>,
    %52 = arith.truncf %45 : vector<8x128xf32> to vector<8x128xbf16>
    %c0_28 = arith.constant 0 : index
    %c0_29 = arith.constant 0 : index
    %c0_30 = arith.constant 0 : index
    %53 = vector.load %arg7[%c0_28, %c0_29, %c0_30] : memref<1x8x128xbf16, #tpu.memory_space<vmem>>, vector<1x8x128xbf16>
    %54 = vector.shape_cast %53 : vector<1x8x128xbf16> to vector<8x128xbf16>
    %55 = vector.shape_cast %52 : vector<8x128xbf16> to vector<1x8x128xbf16>
    tpu.vector_store %arg7[%c0_28, %c0_29, %c0_30], %55 {strides = array<i32>} : memref<1x8x128xbf16, #tpu.memory_space<vmem>>, vector<1x8x128xbf16>,
    return
  }
  func.func @transform_0(%arg0: i32, %arg1: i32) -> (i32, i32, i32) {
    %c0_i32 = arith.constant 0 : i32
    %c0_i32_0 = arith.constant 0 : i32
    return %arg1, %arg0, %c0_i32 : i32, i32, i32
  }
  func.func @transform_1(%arg0: i32, %arg1: i32) -> (i32, i32) {
    %c0_i32 = arith.constant 0 : i32
    %c0_i32_0 = arith.constant 0 : i32
    %c0_i32_1 = arith.constant 0 : i32
    return %c0_i32, %c0_i32_0 : i32, i32
  }
  func.func @transform_2(%arg0: i32, %arg1: i32) -> (i32, i32) {
    %c0_i32 = arith.constant 0 : i32
    %c0_i32_0 = arith.constant 0 : i32
    %c0_i32_1 = arith.constant 0 : i32
    return %c0_i32, %c0_i32_0 : i32, i32
  }
  func.func @transform_3(%arg0: i32, %arg1: i32) -> (i32, i32) {
    %c0_i32 = arith.constant 0 : i32
    %c0_i32_0 = arith.constant 0 : i32
    %c0_i32_1 = arith.constant 0 : i32
    return %c0_i32, %c0_i32_0 : i32, i32
  }
  func.func @transform_4(%arg0: i32, %arg1: i32) -> (i32, i32) {
    %c0_i32 = arith.constant 0 : i32
    %c0_i32_0 = arith.constant 0 : i32
    %c0_i32_1 = arith.constant 0 : i32
    return %c0_i32, %c0_i32_0 : i32, i32
  }
  func.func @transform_5(%arg0: i32, %arg1: i32) -> (i32, i32, i32) {
    %c0_i32 = arith.constant 0 : i32
    %c0_i32_0 = arith.constant 0 : i32
    return %arg1, %arg0, %c0_i32 : i32, i32, i32
  }
}

module attributes {stable_mosaic.version = 11 : i64} {
  func.func @_ssa_lif_kernel(%arg0: i32, %arg1: i32, %arg2: memref<1x4x2x96xbf16, #tpu.memory_space<vmem>>, %arg3: memref<1x4x2x32xbf16, #tpu.memory_space<vmem>>, %arg4: memref<4x2x32xf32, #tpu.memory_space<vmem>>, %arg5: memref<4x2x32xf32, #tpu.memory_space<vmem>>) attributes {dimension_semantics = [#tpu.dimension_semantics<parallel>, #tpu.dimension_semantics<arbitrary>], iteration_bounds = array<i64: 2, 4>, scalar_prefetch = 0 : i64, scratch_operands = 2 : i64, tpu.core_type = #tpu.core_type<tc>, window_params = [{transform_indices = @transform_0, window_bounds = array<i64: 1, 4, 2, 96>}, {transform_indices = @transform_1, window_bounds = array<i64: 1, 4, 2, 32>}]} {
    %c0_i32 = arith.constant 0 : i32
    %0 = arith.cmpi eq, %arg1, %c0_i32 : i32
    %1 = arith.extui %0 : i1 to i32
    %c0_i32_0 = arith.constant 0 : i32
    %2 = arith.cmpi ne, %1, %c0_i32_0 : i32
    scf.if %2 {
      %cst_34 = arith.constant 0.000000e+00 : f32
      %48 = vector.broadcast %cst_34 : f32 to vector<4x2x32xf32>
      %c0_35 = arith.constant 0 : index
      %c0_36 = arith.constant 0 : index
      %c0_37 = arith.constant 0 : index
      %49 = vector.load %arg5[%c0_35, %c0_36, %c0_37] : memref<4x2x32xf32, #tpu.memory_space<vmem>>, vector<4x2x32xf32>
      tpu.vector_store %arg5[%c0_35, %c0_36, %c0_37], %48 {strides = array<i32>} : memref<4x2x32xf32, #tpu.memory_space<vmem>>, vector<4x2x32xf32>,
    } else {
    }
    %c0 = arith.constant 0 : index
    %c0_1 = arith.constant 0 : index
    %c0_2 = arith.constant 0 : index
    %c0_3 = arith.constant 0 : index
    %3 = vector.load %arg2[%c0, %c0_1, %c0_2, %c0_3] : memref<1x4x2x96xbf16, #tpu.memory_space<vmem>>, vector<1x4x2x96xbf16>
    %4 = vector.shape_cast %3 : vector<1x4x2x96xbf16> to vector<4x2x96xbf16>
    %5 = vector.extract_strided_slice %4 {offsets = [0, 0, 0], sizes = [4, 2, 8], strides = [1, 1, 1]} : vector<4x2x96xbf16> to vector<4x2x8xbf16>
    %6 = vector.extract_strided_slice %4 {offsets = [0, 0, 32], sizes = [4, 2, 8], strides = [1, 1, 1]} : vector<4x2x96xbf16> to vector<4x2x8xbf16>
    %7 = vector.extract_strided_slice %4 {offsets = [0, 0, 64], sizes = [4, 2, 8], strides = [1, 1, 1]} : vector<4x2x96xbf16> to vector<4x2x8xbf16>
    "tpu.trace_start"() <{level = 10 : i32, message = "gnf,gmf->gnm"}> : () -> ()
    %cst = arith.constant dense<0.000000e+00> : vector<4x2x2xf32>
    %8 = tpu.matmul %5, %6, %cst {dimension_numbers = #tpu.dot_dimension_numbers<[2], [2], [1], [1], [0, 0, 0, 1, 1, 1], [0], [0]>} : vector<4x2x8xbf16>, vector<4x2x8xbf16>, vector<4x2x2xf32> -> vector<4x2x2xf32>
    "tpu.trace_stop"() : () -> ()
    "tpu.trace_start"() <{level = 10 : i32, message = "gnm,gme->gne"}> : () -> ()
    %cst_4 = arith.constant dense<0.000000e+00> : vector<4x2x8xf32>
    %9 = tpu.matmul %8, %7, %cst_4 {dimension_numbers = #tpu.dot_dimension_numbers<[2], [1], [1], [2], [0, 0, 0, 1, 1, 2], [0], [0]>} : vector<4x2x2xf32>, vector<4x2x8xbf16>, vector<4x2x8xf32> -> vector<4x2x8xf32>
    "tpu.trace_stop"() : () -> ()
    %10 = vector.extract_strided_slice %4 {offsets = [0, 0, 8], sizes = [4, 2, 8], strides = [1, 1, 1]} : vector<4x2x96xbf16> to vector<4x2x8xbf16>
    %11 = vector.extract_strided_slice %4 {offsets = [0, 0, 40], sizes = [4, 2, 8], strides = [1, 1, 1]} : vector<4x2x96xbf16> to vector<4x2x8xbf16>
    %12 = vector.extract_strided_slice %4 {offsets = [0, 0, 72], sizes = [4, 2, 8], strides = [1, 1, 1]} : vector<4x2x96xbf16> to vector<4x2x8xbf16>
    "tpu.trace_start"() <{level = 10 : i32, message = "gnf,gmf->gnm"}> : () -> ()
    %cst_5 = arith.constant dense<0.000000e+00> : vector<4x2x2xf32>
    %13 = tpu.matmul %10, %11, %cst_5 {dimension_numbers = #tpu.dot_dimension_numbers<[2], [2], [1], [1], [0, 0, 0, 1, 1, 1], [0], [0]>} : vector<4x2x8xbf16>, vector<4x2x8xbf16>, vector<4x2x2xf32> -> vector<4x2x2xf32>
    "tpu.trace_stop"() : () -> ()
    "tpu.trace_start"() <{level = 10 : i32, message = "gnm,gme->gne"}> : () -> ()
    %cst_6 = arith.constant dense<0.000000e+00> : vector<4x2x8xf32>
    %14 = tpu.matmul %13, %12, %cst_6 {dimension_numbers = #tpu.dot_dimension_numbers<[2], [1], [1], [2], [0, 0, 0, 1, 1, 2], [0], [0]>} : vector<4x2x2xf32>, vector<4x2x8xbf16>, vector<4x2x8xf32> -> vector<4x2x8xf32>
    "tpu.trace_stop"() : () -> ()
    %15 = vector.extract_strided_slice %4 {offsets = [0, 0, 16], sizes = [4, 2, 8], strides = [1, 1, 1]} : vector<4x2x96xbf16> to vector<4x2x8xbf16>
    %16 = vector.extract_strided_slice %4 {offsets = [0, 0, 48], sizes = [4, 2, 8], strides = [1, 1, 1]} : vector<4x2x96xbf16> to vector<4x2x8xbf16>
    %17 = vector.extract_strided_slice %4 {offsets = [0, 0, 80], sizes = [4, 2, 8], strides = [1, 1, 1]} : vector<4x2x96xbf16> to vector<4x2x8xbf16>
    "tpu.trace_start"() <{level = 10 : i32, message = "gnf,gmf->gnm"}> : () -> ()
    %cst_7 = arith.constant dense<0.000000e+00> : vector<4x2x2xf32>
    %18 = tpu.matmul %15, %16, %cst_7 {dimension_numbers = #tpu.dot_dimension_numbers<[2], [2], [1], [1], [0, 0, 0, 1, 1, 1], [0], [0]>} : vector<4x2x8xbf16>, vector<4x2x8xbf16>, vector<4x2x2xf32> -> vector<4x2x2xf32>
    "tpu.trace_stop"() : () -> ()
    "tpu.trace_start"() <{level = 10 : i32, message = "gnm,gme->gne"}> : () -> ()
    %cst_8 = arith.constant dense<0.000000e+00> : vector<4x2x8xf32>
    %19 = tpu.matmul %18, %17, %cst_8 {dimension_numbers = #tpu.dot_dimension_numbers<[2], [1], [1], [2], [0, 0, 0, 1, 1, 2], [0], [0]>} : vector<4x2x2xf32>, vector<4x2x8xbf16>, vector<4x2x8xf32> -> vector<4x2x8xf32>
    "tpu.trace_stop"() : () -> ()
    %20 = vector.extract_strided_slice %4 {offsets = [0, 0, 24], sizes = [4, 2, 8], strides = [1, 1, 1]} : vector<4x2x96xbf16> to vector<4x2x8xbf16>
    %21 = vector.extract_strided_slice %4 {offsets = [0, 0, 56], sizes = [4, 2, 8], strides = [1, 1, 1]} : vector<4x2x96xbf16> to vector<4x2x8xbf16>
    %22 = vector.extract_strided_slice %4 {offsets = [0, 0, 88], sizes = [4, 2, 8], strides = [1, 1, 1]} : vector<4x2x96xbf16> to vector<4x2x8xbf16>
    "tpu.trace_start"() <{level = 10 : i32, message = "gnf,gmf->gnm"}> : () -> ()
    %cst_9 = arith.constant dense<0.000000e+00> : vector<4x2x2xf32>
    %23 = tpu.matmul %20, %21, %cst_9 {dimension_numbers = #tpu.dot_dimension_numbers<[2], [2], [1], [1], [0, 0, 0, 1, 1, 1], [0], [0]>} : vector<4x2x8xbf16>, vector<4x2x8xbf16>, vector<4x2x2xf32> -> vector<4x2x2xf32>
    "tpu.trace_stop"() : () -> ()
    "tpu.trace_start"() <{level = 10 : i32, message = "gnm,gme->gne"}> : () -> ()
    %cst_10 = arith.constant dense<0.000000e+00> : vector<4x2x8xf32>
    %24 = tpu.matmul %23, %22, %cst_10 {dimension_numbers = #tpu.dot_dimension_numbers<[2], [1], [1], [2], [0, 0, 0, 1, 1, 2], [0], [0]>} : vector<4x2x2xf32>, vector<4x2x8xbf16>, vector<4x2x8xf32> -> vector<4x2x8xf32>
    "tpu.trace_stop"() : () -> ()
    %25 = tpu.concatenate %9, %14, %19, %24 in 2 : vector<4x2x8xf32>, vector<4x2x8xf32>, vector<4x2x8xf32>, vector<4x2x8xf32> -> vector<4x2x32xf32>
    %cst_11 = arith.constant 1.250000e-01 : f32
    %26 = vector.broadcast %cst_11 : f32 to vector<4x2x32xf32>
    %27 = arith.mulf %25, %26 : vector<4x2x32xf32>
    %c0_12 = arith.constant 0 : index
    %c0_13 = arith.constant 0 : index
    %c0_14 = arith.constant 0 : index
    %28 = vector.load %arg4[%c0_12, %c0_13, %c0_14] : memref<4x2x32xf32, #tpu.memory_space<vmem>>, vector<4x2x32xf32>
    tpu.vector_store %arg4[%c0_12, %c0_13, %c0_14], %27 {strides = array<i32>} : memref<4x2x32xf32, #tpu.memory_space<vmem>>, vector<4x2x32xf32>,
    %c0_15 = arith.constant 0 : index
    %c0_16 = arith.constant 0 : index
    %c0_17 = arith.constant 0 : index
    %29 = vector.load %arg4[%c0_15, %c0_16, %c0_17] : memref<4x2x32xf32, #tpu.memory_space<vmem>>, vector<4x2x32xf32>
    %c0_18 = arith.constant 0 : index
    %c0_19 = arith.constant 0 : index
    %c0_20 = arith.constant 0 : index
    %30 = vector.load %arg5[%c0_18, %c0_19, %c0_20] : memref<4x2x32xf32, #tpu.memory_space<vmem>>, vector<4x2x32xf32>
    %c0_21 = arith.constant 0 : index
    %c0_22 = arith.constant 0 : index
    %c0_23 = arith.constant 0 : index
    %31 = vector.load %arg5[%c0_21, %c0_22, %c0_23] : memref<4x2x32xf32, #tpu.memory_space<vmem>>, vector<4x2x32xf32>
    %32 = arith.subf %29, %31 : vector<4x2x32xf32>
    %cst_24 = arith.constant 5.000000e-01 : f32
    %33 = vector.broadcast %cst_24 : f32 to vector<4x2x32xf32>
    %34 = arith.mulf %32, %33 : vector<4x2x32xf32>
    %35 = arith.addf %30, %34 : vector<4x2x32xf32>
    %cst_25 = arith.constant 5.000000e-01 : f32
    %36 = vector.broadcast %cst_25 : f32 to vector<4x2x32xf32>
    %37 = arith.cmpf oge, %35, %36 : vector<4x2x32xf32>
    %38 = arith.extui %37 : vector<4x2x32xi1> to vector<4x2x32xi32>
    %39 = arith.sitofp %38 : vector<4x2x32xi32> to vector<4x2x32xf32>
    %cst_26 = arith.constant 1.000000e+00 : f32
    %40 = vector.broadcast %cst_26 : f32 to vector<4x2x32xf32>
    %41 = arith.subf %40, %39 : vector<4x2x32xf32>
    %42 = arith.mulf %35, %41 : vector<4x2x32xf32>
    %c0_27 = arith.constant 0 : index
    %c0_28 = arith.constant 0 : index
    %c0_29 = arith.constant 0 : index
    %43 = vector.load %arg5[%c0_27, %c0_28, %c0_29] : memref<4x2x32xf32, #tpu.memory_space<vmem>>, vector<4x2x32xf32>
    tpu.vector_store %arg5[%c0_27, %c0_28, %c0_29], %42 {strides = array<i32>} : memref<4x2x32xf32, #tpu.memory_space<vmem>>, vector<4x2x32xf32>,
    %44 = arith.truncf %39 : vector<4x2x32xf32> to vector<4x2x32xbf16>
    %c0_30 = arith.constant 0 : index
    %c0_31 = arith.constant 0 : index
    %c0_32 = arith.constant 0 : index
    %c0_33 = arith.constant 0 : index
    %45 = vector.load %arg3[%c0_30, %c0_31, %c0_32, %c0_33] : memref<1x4x2x32xbf16, #tpu.memory_space<vmem>>, vector<1x4x2x32xbf16>
    %46 = vector.shape_cast %45 : vector<1x4x2x32xbf16> to vector<4x2x32xbf16>
    %47 = vector.shape_cast %44 : vector<4x2x32xbf16> to vector<1x4x2x32xbf16>
    tpu.vector_store %arg3[%c0_30, %c0_31, %c0_32, %c0_33], %47 {strides = array<i32>} : memref<1x4x2x32xbf16, #tpu.memory_space<vmem>>, vector<1x4x2x32xbf16>,
    return
  }
  func.func @transform_0(%arg0: i32, %arg1: i32) -> (i32, i32, i32, i32) {
    %c0_i32 = arith.constant 0 : i32
    %c0_i32_0 = arith.constant 0 : i32
    %c0_i32_1 = arith.constant 0 : i32
    return %arg1, %arg0, %c0_i32, %c0_i32_0 : i32, i32, i32, i32
  }
  func.func @transform_1(%arg0: i32, %arg1: i32) -> (i32, i32, i32, i32) {
    %c0_i32 = arith.constant 0 : i32
    %c0_i32_0 = arith.constant 0 : i32
    %c0_i32_1 = arith.constant 0 : i32
    return %arg1, %arg0, %c0_i32, %c0_i32_0 : i32, i32, i32, i32
  }
}

module attributes {stable_mosaic.version = 11 : i64} {
  func.func @_linear_ln_lif_kernel(%arg0: i32, %arg1: i32, %arg2: memref<1x8x32xbf16, #tpu.memory_space<vmem>>, %arg3: memref<1x8x32xbf16, #tpu.memory_space<vmem>>, %arg4: memref<32x32xbf16, #tpu.memory_space<vmem>>, %arg5: memref<1x32xf32, #tpu.memory_space<vmem>>, %arg6: memref<1x32xf32, #tpu.memory_space<vmem>>, %arg7: memref<1x32xf32, #tpu.memory_space<vmem>>, %arg8: memref<1x8x32xbf16, #tpu.memory_space<vmem>>, %arg9: memref<1x8x32xf32, #tpu.memory_space<vmem>>) attributes {dimension_semantics = [#tpu.dimension_semantics<parallel>, #tpu.dimension_semantics<arbitrary>], iteration_bounds = array<i64: 2, 4>, scalar_prefetch = 0 : i64, scratch_operands = 1 : i64, tpu.core_type = #tpu.core_type<tc>, window_params = [{transform_indices = @transform_0, window_bounds = array<i64: 1, 8, 32>}, {transform_indices = @transform_1, window_bounds = array<i64: 1, 8, 32>}, {pipeline_mode = #tpu.pipeline_mode<synchronous>, transform_indices = @transform_2, window_bounds = array<i64: 32, 32>}, {pipeline_mode = #tpu.pipeline_mode<synchronous>, transform_indices = @transform_3, window_bounds = array<i64: 1, 32>}, {pipeline_mode = #tpu.pipeline_mode<synchronous>, transform_indices = @transform_4, window_bounds = array<i64: 1, 32>}, {pipeline_mode = #tpu.pipeline_mode<synchronous>, transform_indices = @transform_5, window_bounds = array<i64: 1, 32>}, {transform_indices = @transform_6, window_bounds = array<i64: 1, 8, 32>}]} {
    %c0_i32 = arith.constant 0 : i32
    %0 = arith.cmpi eq, %arg1, %c0_i32 : i32
    %1 = arith.extui %0 : i1 to i32
    %c0_i32_0 = arith.constant 0 : i32
    %2 = arith.cmpi ne, %1, %c0_i32_0 : i32
    scf.if %2 {
      %cst_34 = arith.constant 0.000000e+00 : f32
      %60 = vector.broadcast %cst_34 : f32 to vector<1x8x32xf32>
      %c0_35 = arith.constant 0 : index
      %c0_36 = arith.constant 0 : index
      %c0_37 = arith.constant 0 : index
      %61 = vector.load %arg9[%c0_35, %c0_36, %c0_37] : memref<1x8x32xf32, #tpu.memory_space<vmem>>, vector<1x8x32xf32>
      tpu.vector_store %arg9[%c0_35, %c0_36, %c0_37], %60 {strides = array<i32>} : memref<1x8x32xf32, #tpu.memory_space<vmem>>, vector<1x8x32xf32>,
    } else {
    }
    %c0 = arith.constant 0 : index
    %c0_1 = arith.constant 0 : index
    %c0_2 = arith.constant 0 : index
    %3 = vector.load %arg2[%c0, %c0_1, %c0_2] : memref<1x8x32xbf16, #tpu.memory_space<vmem>>, vector<1x8x32xbf16>
    %4 = vector.shape_cast %3 : vector<1x8x32xbf16> to vector<8x32xbf16>
    %c0_3 = arith.constant 0 : index
    %c0_4 = arith.constant 0 : index
    %5 = vector.load %arg4[%c0_3, %c0_4] : memref<32x32xbf16, #tpu.memory_space<vmem>>, vector<32x32xbf16>
    %cst = arith.constant dense<0.000000e+00> : vector<8x32xf32>
    %6 = tpu.matmul %4, %5, %cst {dimension_numbers = #tpu.dot_dimension_numbers<[1], [0], [0], [1], [0, 0, 1, 1], [], []>} : vector<8x32xbf16>, vector<32x32xbf16>, vector<8x32xf32> -> vector<8x32xf32>
    %c0_5 = arith.constant 0 : index
    %c0_6 = arith.constant 0 : index
    %7 = vector.load %arg5[%c0_5, %c0_6] : memref<1x32xf32, #tpu.memory_space<vmem>>, vector<1x32xf32>
    %8 = vector.broadcast %7 : vector<1x32xf32> to vector<8x32xf32>
    %9 = arith.addf %6, %8 : vector<8x32xf32>
    %c0_7 = arith.constant 0 : index
    %c0_8 = arith.constant 0 : index
    %10 = vector.load %arg6[%c0_7, %c0_8] : memref<1x32xf32, #tpu.memory_space<vmem>>, vector<1x32xf32>
    %c0_9 = arith.constant 0 : index
    %c0_10 = arith.constant 0 : index
    %11 = vector.load %arg7[%c0_9, %c0_10] : memref<1x32xf32, #tpu.memory_space<vmem>>, vector<1x32xf32>
    %cst_11 = arith.constant dense<0.000000e+00> : vector<8xf32>
    %12 = vector.multi_reduction <add>, %9, %cst_11 [1] : vector<8x32xf32> to vector<8xf32>
    %13 = vector.shape_cast %12 : vector<8xf32> to vector<8x1xf32>
    %cst_12 = arith.constant 3.200000e+01 : f32
    %14 = vector.broadcast %cst_12 : f32 to vector<8x1xf32>
    %15 = arith.divf %13, %14 : vector<8x1xf32>
    %16 = vector.broadcast %15 : vector<8x1xf32> to vector<8x32xf32>
    %17 = arith.subf %9, %16 : vector<8x32xf32>
    %18 = arith.mulf %17, %17 : vector<8x32xf32>
    %cst_13 = arith.constant dense<0.000000e+00> : vector<8xf32>
    %19 = vector.multi_reduction <add>, %18, %cst_13 [1] : vector<8x32xf32> to vector<8xf32>
    %20 = vector.shape_cast %19 : vector<8xf32> to vector<8x1xf32>
    %cst_14 = arith.constant 3.200000e+01 : f32
    %21 = vector.broadcast %cst_14 : f32 to vector<8x1xf32>
    %22 = arith.divf %20, %21 : vector<8x1xf32>
    %23 = vector.broadcast %15 : vector<8x1xf32> to vector<8x32xf32>
    %24 = arith.subf %9, %23 : vector<8x32xf32>
    %cst_15 = arith.constant 9.99999974E-6 : f32
    %25 = vector.broadcast %cst_15 : f32 to vector<8x1xf32>
    %26 = arith.addf %22, %25 : vector<8x1xf32>
    %27 = math.rsqrt %26 : vector<8x1xf32>
    %28 = vector.broadcast %27 : vector<8x1xf32> to vector<8x32xf32>
    %29 = arith.mulf %24, %28 : vector<8x32xf32>
    %30 = vector.broadcast %10 : vector<1x32xf32> to vector<8x32xf32>
    %31 = arith.mulf %29, %30 : vector<8x32xf32>
    %32 = vector.broadcast %11 : vector<1x32xf32> to vector<8x32xf32>
    %33 = arith.addf %31, %32 : vector<8x32xf32>
    %c0_16 = arith.constant 0 : index
    %c0_17 = arith.constant 0 : index
    %c0_18 = arith.constant 0 : index
    %34 = vector.load %arg9[%c0_16, %c0_17, %c0_18] : memref<1x8x32xf32, #tpu.memory_space<vmem>>, vector<1x8x32xf32>
    %35 = vector.shape_cast %34 : vector<1x8x32xf32> to vector<8x32xf32>
    %c0_19 = arith.constant 0 : index
    %c0_20 = arith.constant 0 : index
    %c0_21 = arith.constant 0 : index
    %36 = vector.load %arg9[%c0_19, %c0_20, %c0_21] : memref<1x8x32xf32, #tpu.memory_space<vmem>>, vector<1x8x32xf32>
    %37 = vector.shape_cast %36 : vector<1x8x32xf32> to vector<8x32xf32>
    %38 = arith.subf %33, %37 : vector<8x32xf32>
    %cst_22 = arith.constant 5.000000e-01 : f32
    %39 = vector.broadcast %cst_22 : f32 to vector<8x32xf32>
    %40 = arith.mulf %38, %39 : vector<8x32xf32>
    %41 = arith.addf %35, %40 : vector<8x32xf32>
    %cst_23 = arith.constant 1.000000e+00 : f32
    %42 = vector.broadcast %cst_23 : f32 to vector<8x32xf32>
    %43 = arith.cmpf oge, %41, %42 : vector<8x32xf32>
    %44 = arith.extui %43 : vector<8x32xi1> to vector<8x32xi32>
    %45 = arith.sitofp %44 : vector<8x32xi32> to vector<8x32xf32>
    %cst_24 = arith.constant 1.000000e+00 : f32
    %46 = vector.broadcast %cst_24 : f32 to vector<8x32xf32>
    %47 = arith.subf %46, %45 : vector<8x32xf32>
    %48 = arith.mulf %41, %47 : vector<8x32xf32>
    %c0_25 = arith.constant 0 : index
    %c0_26 = arith.constant 0 : index
    %c0_27 = arith.constant 0 : index
    %49 = vector.load %arg9[%c0_25, %c0_26, %c0_27] : memref<1x8x32xf32, #tpu.memory_space<vmem>>, vector<1x8x32xf32>
    %50 = vector.shape_cast %49 : vector<1x8x32xf32> to vector<8x32xf32>
    %51 = vector.shape_cast %48 : vector<8x32xf32> to vector<1x8x32xf32>
    tpu.vector_store %arg9[%c0_25, %c0_26, %c0_27], %51 {strides = array<i32>} : memref<1x8x32xf32, #tpu.memory_space<vmem>>, vector<1x8x32xf32>,
    %c0_28 = arith.constant 0 : index
    %c0_29 = arith.constant 0 : index
    %c0_30 = arith.constant 0 : index
    %52 = vector.load %arg3[%c0_28, %c0_29, %c0_30] : memref<1x8x32xbf16, #tpu.memory_space<vmem>>, vector<1x8x32xbf16>
    %53 = vector.shape_cast %52 : vector<1x8x32xbf16> to vector<8x32xbf16>
    %54 = arith.extf %53 : vector<8x32xbf16> to vector<8x32xf32>
    %55 = arith.addf %45, %54 : vector<8x32xf32>
    %56 = arith.truncf %55 : vector<8x32xf32> to vector<8x32xbf16>
    %c0_31 = arith.constant 0 : index
    %c0_32 = arith.constant 0 : index
    %c0_33 = arith.constant 0 : index
    %57 = vector.load %arg8[%c0_31, %c0_32, %c0_33] : memref<1x8x32xbf16, #tpu.memory_space<vmem>>, vector<1x8x32xbf16>
    %58 = vector.shape_cast %57 : vector<1x8x32xbf16> to vector<8x32xbf16>
    %59 = vector.shape_cast %56 : vector<8x32xbf16> to vector<1x8x32xbf16>
    tpu.vector_store %arg8[%c0_31, %c0_32, %c0_33], %59 {strides = array<i32>} : memref<1x8x32xbf16, #tpu.memory_space<vmem>>, vector<1x8x32xbf16>,
    return
  }
  func.func @transform_0(%arg0: i32, %arg1: i32) -> (i32, i32, i32) {
    %c0_i32 = arith.constant 0 : i32
    %c0_i32_0 = arith.constant 0 : i32
    return %arg1, %arg0, %c0_i32 : i32, i32, i32
  }
  func.func @transform_1(%arg0: i32, %arg1: i32) -> (i32, i32, i32) {
    %c0_i32 = arith.constant 0 : i32
    %c0_i32_0 = arith.constant 0 : i32
    %c0_i32_1 = arith.constant 0 : i32
    return %c0_i32, %arg0, %c0_i32_0 : i32, i32, i32
  }
  func.func @transform_2(%arg0: i32, %arg1: i32) -> (i32, i32) {
    %c0_i32 = arith.constant 0 : i32
    %c0_i32_0 = arith.constant 0 : i32
    %c0_i32_1 = arith.constant 0 : i32
    return %c0_i32, %c0_i32_0 : i32, i32
  }
  func.func @transform_3(%arg0: i32, %arg1: i32) -> (i32, i32) {
    %c0_i32 = arith.constant 0 : i32
    %c0_i32_0 = arith.constant 0 : i32
    %c0_i32_1 = arith.constant 0 : i32
    return %c0_i32, %c0_i32_0 : i32, i32
  }
  func.func @transform_4(%arg0: i32, %arg1: i32) -> (i32, i32) {
    %c0_i32 = arith.constant 0 : i32
    %c0_i32_0 = arith.constant 0 : i32
    %c0_i32_1 = arith.constant 0 : i32
    return %c0_i32, %c0_i32_0 : i32, i32
  }
  func.func @transform_5(%arg0: i32, %arg1: i32) -> (i32, i32) {
    %c0_i32 = arith.constant 0 : i32
    %c0_i32_0 = arith.constant 0 : i32
    %c0_i32_1 = arith.constant 0 : i32
    return %c0_i32, %c0_i32_0 : i32, i32
  }
  func.func @transform_6(%arg0: i32, %arg1: i32) -> (i32, i32, i32) {
    %c0_i32 = arith.constant 0 : i32
    %c0_i32_0 = arith.constant 0 : i32
    return %arg1, %arg0, %c0_i32 : i32, i32, i32
  }
}

module attributes {stable_mosaic.version = 11 : i64} {
  func.func @_linear_ln_lif_kernel(%arg0: i32, %arg1: i32, %arg2: memref<1x8x128xbf16, #tpu.memory_space<vmem>>, %arg3: memref<1x8x32xbf16, #tpu.memory_space<vmem>>, %arg4: memref<128x32xbf16, #tpu.memory_space<vmem>>, %arg5: memref<1x32xf32, #tpu.memory_space<vmem>>, %arg6: memref<1x32xf32, #tpu.memory_space<vmem>>, %arg7: memref<1x32xf32, #tpu.memory_space<vmem>>, %arg8: memref<1x8x32xbf16, #tpu.memory_space<vmem>>, %arg9: memref<1x8x32xf32, #tpu.memory_space<vmem>>) attributes {dimension_semantics = [#tpu.dimension_semantics<parallel>, #tpu.dimension_semantics<arbitrary>], iteration_bounds = array<i64: 2, 4>, scalar_prefetch = 0 : i64, scratch_operands = 1 : i64, tpu.core_type = #tpu.core_type<tc>, window_params = [{transform_indices = @transform_0, window_bounds = array<i64: 1, 8, 128>}, {transform_indices = @transform_1, window_bounds = array<i64: 1, 8, 32>}, {pipeline_mode = #tpu.pipeline_mode<synchronous>, transform_indices = @transform_2, window_bounds = array<i64: 128, 32>}, {pipeline_mode = #tpu.pipeline_mode<synchronous>, transform_indices = @transform_3, window_bounds = array<i64: 1, 32>}, {pipeline_mode = #tpu.pipeline_mode<synchronous>, transform_indices = @transform_4, window_bounds = array<i64: 1, 32>}, {pipeline_mode = #tpu.pipeline_mode<synchronous>, transform_indices = @transform_5, window_bounds = array<i64: 1, 32>}, {transform_indices = @transform_6, window_bounds = array<i64: 1, 8, 32>}]} {
    %c0_i32 = arith.constant 0 : i32
    %0 = arith.cmpi eq, %arg1, %c0_i32 : i32
    %1 = arith.extui %0 : i1 to i32
    %c0_i32_0 = arith.constant 0 : i32
    %2 = arith.cmpi ne, %1, %c0_i32_0 : i32
    scf.if %2 {
      %cst_34 = arith.constant 0.000000e+00 : f32
      %60 = vector.broadcast %cst_34 : f32 to vector<1x8x32xf32>
      %c0_35 = arith.constant 0 : index
      %c0_36 = arith.constant 0 : index
      %c0_37 = arith.constant 0 : index
      %61 = vector.load %arg9[%c0_35, %c0_36, %c0_37] : memref<1x8x32xf32, #tpu.memory_space<vmem>>, vector<1x8x32xf32>
      tpu.vector_store %arg9[%c0_35, %c0_36, %c0_37], %60 {strides = array<i32>} : memref<1x8x32xf32, #tpu.memory_space<vmem>>, vector<1x8x32xf32>,
    } else {
    }
    %c0 = arith.constant 0 : index
    %c0_1 = arith.constant 0 : index
    %c0_2 = arith.constant 0 : index
    %3 = vector.load %arg2[%c0, %c0_1, %c0_2] : memref<1x8x128xbf16, #tpu.memory_space<vmem>>, vector<1x8x128xbf16>
    %4 = vector.shape_cast %3 : vector<1x8x128xbf16> to vector<8x128xbf16>
    %c0_3 = arith.constant 0 : index
    %c0_4 = arith.constant 0 : index
    %5 = vector.load %arg4[%c0_3, %c0_4] : memref<128x32xbf16, #tpu.memory_space<vmem>>, vector<128x32xbf16>
    %cst = arith.constant dense<0.000000e+00> : vector<8x32xf32>
    %6 = tpu.matmul %4, %5, %cst {dimension_numbers = #tpu.dot_dimension_numbers<[1], [0], [0], [1], [0, 0, 1, 1], [], []>} : vector<8x128xbf16>, vector<128x32xbf16>, vector<8x32xf32> -> vector<8x32xf32>
    %c0_5 = arith.constant 0 : index
    %c0_6 = arith.constant 0 : index
    %7 = vector.load %arg5[%c0_5, %c0_6] : memref<1x32xf32, #tpu.memory_space<vmem>>, vector<1x32xf32>
    %8 = vector.broadcast %7 : vector<1x32xf32> to vector<8x32xf32>
    %9 = arith.addf %6, %8 : vector<8x32xf32>
    %c0_7 = arith.constant 0 : index
    %c0_8 = arith.constant 0 : index
    %10 = vector.load %arg6[%c0_7, %c0_8] : memref<1x32xf32, #tpu.memory_space<vmem>>, vector<1x32xf32>
    %c0_9 = arith.constant 0 : index
    %c0_10 = arith.constant 0 : index
    %11 = vector.load %arg7[%c0_9, %c0_10] : memref<1x32xf32, #tpu.memory_space<vmem>>, vector<1x32xf32>
    %cst_11 = arith.constant dense<0.000000e+00> : vector<8xf32>
    %12 = vector.multi_reduction <add>, %9, %cst_11 [1] : vector<8x32xf32> to vector<8xf32>
    %13 = vector.shape_cast %12 : vector<8xf32> to vector<8x1xf32>
    %cst_12 = arith.constant 3.200000e+01 : f32
    %14 = vector.broadcast %cst_12 : f32 to vector<8x1xf32>
    %15 = arith.divf %13, %14 : vector<8x1xf32>
    %16 = vector.broadcast %15 : vector<8x1xf32> to vector<8x32xf32>
    %17 = arith.subf %9, %16 : vector<8x32xf32>
    %18 = arith.mulf %17, %17 : vector<8x32xf32>
    %cst_13 = arith.constant dense<0.000000e+00> : vector<8xf32>
    %19 = vector.multi_reduction <add>, %18, %cst_13 [1] : vector<8x32xf32> to vector<8xf32>
    %20 = vector.shape_cast %19 : vector<8xf32> to vector<8x1xf32>
    %cst_14 = arith.constant 3.200000e+01 : f32
    %21 = vector.broadcast %cst_14 : f32 to vector<8x1xf32>
    %22 = arith.divf %20, %21 : vector<8x1xf32>
    %23 = vector.broadcast %15 : vector<8x1xf32> to vector<8x32xf32>
    %24 = arith.subf %9, %23 : vector<8x32xf32>
    %cst_15 = arith.constant 9.99999974E-6 : f32
    %25 = vector.broadcast %cst_15 : f32 to vector<8x1xf32>
    %26 = arith.addf %22, %25 : vector<8x1xf32>
    %27 = math.rsqrt %26 : vector<8x1xf32>
    %28 = vector.broadcast %27 : vector<8x1xf32> to vector<8x32xf32>
    %29 = arith.mulf %24, %28 : vector<8x32xf32>
    %30 = vector.broadcast %10 : vector<1x32xf32> to vector<8x32xf32>
    %31 = arith.mulf %29, %30 : vector<8x32xf32>
    %32 = vector.broadcast %11 : vector<1x32xf32> to vector<8x32xf32>
    %33 = arith.addf %31, %32 : vector<8x32xf32>
    %c0_16 = arith.constant 0 : index
    %c0_17 = arith.constant 0 : index
    %c0_18 = arith.constant 0 : index
    %34 = vector.load %arg9[%c0_16, %c0_17, %c0_18] : memref<1x8x32xf32, #tpu.memory_space<vmem>>, vector<1x8x32xf32>
    %35 = vector.shape_cast %34 : vector<1x8x32xf32> to vector<8x32xf32>
    %c0_19 = arith.constant 0 : index
    %c0_20 = arith.constant 0 : index
    %c0_21 = arith.constant 0 : index
    %36 = vector.load %arg9[%c0_19, %c0_20, %c0_21] : memref<1x8x32xf32, #tpu.memory_space<vmem>>, vector<1x8x32xf32>
    %37 = vector.shape_cast %36 : vector<1x8x32xf32> to vector<8x32xf32>
    %38 = arith.subf %33, %37 : vector<8x32xf32>
    %cst_22 = arith.constant 5.000000e-01 : f32
    %39 = vector.broadcast %cst_22 : f32 to vector<8x32xf32>
    %40 = arith.mulf %38, %39 : vector<8x32xf32>
    %41 = arith.addf %35, %40 : vector<8x32xf32>
    %cst_23 = arith.constant 1.000000e+00 : f32
    %42 = vector.broadcast %cst_23 : f32 to vector<8x32xf32>
    %43 = arith.cmpf oge, %41, %42 : vector<8x32xf32>
    %44 = arith.extui %43 : vector<8x32xi1> to vector<8x32xi32>
    %45 = arith.sitofp %44 : vector<8x32xi32> to vector<8x32xf32>
    %cst_24 = arith.constant 1.000000e+00 : f32
    %46 = vector.broadcast %cst_24 : f32 to vector<8x32xf32>
    %47 = arith.subf %46, %45 : vector<8x32xf32>
    %48 = arith.mulf %41, %47 : vector<8x32xf32>
    %c0_25 = arith.constant 0 : index
    %c0_26 = arith.constant 0 : index
    %c0_27 = arith.constant 0 : index
    %49 = vector.load %arg9[%c0_25, %c0_26, %c0_27] : memref<1x8x32xf32, #tpu.memory_space<vmem>>, vector<1x8x32xf32>
    %50 = vector.shape_cast %49 : vector<1x8x32xf32> to vector<8x32xf32>
    %51 = vector.shape_cast %48 : vector<8x32xf32> to vector<1x8x32xf32>
    tpu.vector_store %arg9[%c0_25, %c0_26, %c0_27], %51 {strides = array<i32>} : memref<1x8x32xf32, #tpu.memory_space<vmem>>, vector<1x8x32xf32>,
    %c0_28 = arith.constant 0 : index
    %c0_29 = arith.constant 0 : index
    %c0_30 = arith.constant 0 : index
    %52 = vector.load %arg3[%c0_28, %c0_29, %c0_30] : memref<1x8x32xbf16, #tpu.memory_space<vmem>>, vector<1x8x32xbf16>
    %53 = vector.shape_cast %52 : vector<1x8x32xbf16> to vector<8x32xbf16>
    %54 = arith.extf %53 : vector<8x32xbf16> to vector<8x32xf32>
    %55 = arith.addf %45, %54 : vector<8x32xf32>
    %56 = arith.truncf %55 : vector<8x32xf32> to vector<8x32xbf16>
    %c0_31 = arith.constant 0 : index
    %c0_32 = arith.constant 0 : index
    %c0_33 = arith.constant 0 : index
    %57 = vector.load %arg8[%c0_31, %c0_32, %c0_33] : memref<1x8x32xbf16, #tpu.memory_space<vmem>>, vector<1x8x32xbf16>
    %58 = vector.shape_cast %57 : vector<1x8x32xbf16> to vector<8x32xbf16>
    %59 = vector.shape_cast %56 : vector<8x32xbf16> to vector<1x8x32xbf16>
    tpu.vector_store %arg8[%c0_31, %c0_32, %c0_33], %59 {strides = array<i32>} : memref<1x8x32xbf16, #tpu.memory_space<vmem>>, vector<1x8x32xbf16>,
    return
  }
  func.func @transform_0(%arg0: i32, %arg1: i32) -> (i32, i32, i32) {
    %c0_i32 = arith.constant 0 : i32
    %c0_i32_0 = arith.constant 0 : i32
    return %arg1, %arg0, %c0_i32 : i32, i32, i32
  }
  func.func @transform_1(%arg0: i32, %arg1: i32) -> (i32, i32, i32) {
    %c0_i32 = arith.constant 0 : i32
    %c0_i32_0 = arith.constant 0 : i32
    return %arg1, %arg0, %c0_i32 : i32, i32, i32
  }
  func.func @transform_2(%arg0: i32, %arg1: i32) -> (i32, i32) {
    %c0_i32 = arith.constant 0 : i32
    %c0_i32_0 = arith.constant 0 : i32
    %c0_i32_1 = arith.constant 0 : i32
    return %c0_i32, %c0_i32_0 : i32, i32
  }
  func.func @transform_3(%arg0: i32, %arg1: i32) -> (i32, i32) {
    %c0_i32 = arith.constant 0 : i32
    %c0_i32_0 = arith.constant 0 : i32
    %c0_i32_1 = arith.constant 0 : i32
    return %c0_i32, %c0_i32_0 : i32, i32
  }
  func.func @transform_4(%arg0: i32, %arg1: i32) -> (i32, i32) {
    %c0_i32 = arith.constant 0 : i32
    %c0_i32_0 = arith.constant 0 : i32
    %c0_i32_1 = arith.constant 0 : i32
    return %c0_i32, %c0_i32_0 : i32, i32
  }
  func.func @transform_5(%arg0: i32, %arg1: i32) -> (i32, i32) {
    %c0_i32 = arith.constant 0 : i32
    %c0_i32_0 = arith.constant 0 : i32
    %c0_i32_1 = arith.constant 0 : i32
    return %c0_i32, %c0_i32_0 : i32, i32
  }
  func.func @transform_6(%arg0: i32, %arg1: i32) -> (i32, i32, i32) {
    %c0_i32 = arith.constant 0 : i32
    %c0_i32_0 = arith.constant 0 : i32
    return %arg1, %arg0, %c0_i32 : i32, i32, i32
  }
}

module attributes {stable_mosaic.version = 11 : i64} {
  func.func @_linear_ln_lif_kernel(%arg0: i32, %arg1: i32, %arg2: memref<1x8x32xbf16, #tpu.memory_space<vmem>>, %arg3: memref<1x8x32xbf16, #tpu.memory_space<vmem>>, %arg4: memref<32x32xbf16, #tpu.memory_space<vmem>>, %arg5: memref<1x32xf32, #tpu.memory_space<vmem>>, %arg6: memref<1x32xf32, #tpu.memory_space<vmem>>, %arg7: memref<1x32xf32, #tpu.memory_space<vmem>>, %arg8: memref<1x8x32xbf16, #tpu.memory_space<vmem>>, %arg9: memref<1x8x32xf32, #tpu.memory_space<vmem>>) attributes {dimension_semantics = [#tpu.dimension_semantics<parallel>, #tpu.dimension_semantics<arbitrary>], iteration_bounds = array<i64: 2, 4>, scalar_prefetch = 0 : i64, scratch_operands = 1 : i64, tpu.core_type = #tpu.core_type<tc>, window_params = [{transform_indices = @transform_0, window_bounds = array<i64: 1, 8, 32>}, {transform_indices = @transform_1, window_bounds = array<i64: 1, 8, 32>}, {pipeline_mode = #tpu.pipeline_mode<synchronous>, transform_indices = @transform_2, window_bounds = array<i64: 32, 32>}, {pipeline_mode = #tpu.pipeline_mode<synchronous>, transform_indices = @transform_3, window_bounds = array<i64: 1, 32>}, {pipeline_mode = #tpu.pipeline_mode<synchronous>, transform_indices = @transform_4, window_bounds = array<i64: 1, 32>}, {pipeline_mode = #tpu.pipeline_mode<synchronous>, transform_indices = @transform_5, window_bounds = array<i64: 1, 32>}, {transform_indices = @transform_6, window_bounds = array<i64: 1, 8, 32>}]} {
    %c0_i32 = arith.constant 0 : i32
    %0 = arith.cmpi eq, %arg1, %c0_i32 : i32
    %1 = arith.extui %0 : i1 to i32
    %c0_i32_0 = arith.constant 0 : i32
    %2 = arith.cmpi ne, %1, %c0_i32_0 : i32
    scf.if %2 {
      %cst_34 = arith.constant 0.000000e+00 : f32
      %60 = vector.broadcast %cst_34 : f32 to vector<1x8x32xf32>
      %c0_35 = arith.constant 0 : index
      %c0_36 = arith.constant 0 : index
      %c0_37 = arith.constant 0 : index
      %61 = vector.load %arg9[%c0_35, %c0_36, %c0_37] : memref<1x8x32xf32, #tpu.memory_space<vmem>>, vector<1x8x32xf32>
      tpu.vector_store %arg9[%c0_35, %c0_36, %c0_37], %60 {strides = array<i32>} : memref<1x8x32xf32, #tpu.memory_space<vmem>>, vector<1x8x32xf32>,
    } else {
    }
    %c0 = arith.constant 0 : index
    %c0_1 = arith.constant 0 : index
    %c0_2 = arith.constant 0 : index
    %3 = vector.load %arg2[%c0, %c0_1, %c0_2] : memref<1x8x32xbf16, #tpu.memory_space<vmem>>, vector<1x8x32xbf16>
    %4 = vector.shape_cast %3 : vector<1x8x32xbf16> to vector<8x32xbf16>
    %c0_3 = arith.constant 0 : index
    %c0_4 = arith.constant 0 : index
    %5 = vector.load %arg4[%c0_3, %c0_4] : memref<32x32xbf16, #tpu.memory_space<vmem>>, vector<32x32xbf16>
    %cst = arith.constant dense<0.000000e+00> : vector<8x32xf32>
    %6 = tpu.matmul %4, %5, %cst {dimension_numbers = #tpu.dot_dimension_numbers<[1], [0], [0], [1], [0, 0, 1, 1], [], []>} : vector<8x32xbf16>, vector<32x32xbf16>, vector<8x32xf32> -> vector<8x32xf32>
    %c0_5 = arith.constant 0 : index
    %c0_6 = arith.constant 0 : index
    %7 = vector.load %arg5[%c0_5, %c0_6] : memref<1x32xf32, #tpu.memory_space<vmem>>, vector<1x32xf32>
    %8 = vector.broadcast %7 : vector<1x32xf32> to vector<8x32xf32>
    %9 = arith.addf %6, %8 : vector<8x32xf32>
    %c0_7 = arith.constant 0 : index
    %c0_8 = arith.constant 0 : index
    %10 = vector.load %arg6[%c0_7, %c0_8] : memref<1x32xf32, #tpu.memory_space<vmem>>, vector<1x32xf32>
    %c0_9 = arith.constant 0 : index
    %c0_10 = arith.constant 0 : index
    %11 = vector.load %arg7[%c0_9, %c0_10] : memref<1x32xf32, #tpu.memory_space<vmem>>, vector<1x32xf32>
    %cst_11 = arith.constant dense<0.000000e+00> : vector<8xf32>
    %12 = vector.multi_reduction <add>, %9, %cst_11 [1] : vector<8x32xf32> to vector<8xf32>
    %13 = vector.shape_cast %12 : vector<8xf32> to vector<8x1xf32>
    %cst_12 = arith.constant 3.200000e+01 : f32
    %14 = vector.broadcast %cst_12 : f32 to vector<8x1xf32>
    %15 = arith.divf %13, %14 : vector<8x1xf32>
    %16 = vector.broadcast %15 : vector<8x1xf32> to vector<8x32xf32>
    %17 = arith.subf %9, %16 : vector<8x32xf32>
    %18 = arith.mulf %17, %17 : vector<8x32xf32>
    %cst_13 = arith.constant dense<0.000000e+00> : vector<8xf32>
    %19 = vector.multi_reduction <add>, %18, %cst_13 [1] : vector<8x32xf32> to vector<8xf32>
    %20 = vector.shape_cast %19 : vector<8xf32> to vector<8x1xf32>
    %cst_14 = arith.constant 3.200000e+01 : f32
    %21 = vector.broadcast %cst_14 : f32 to vector<8x1xf32>
    %22 = arith.divf %20, %21 : vector<8x1xf32>
    %23 = vector.broadcast %15 : vector<8x1xf32> to vector<8x32xf32>
    %24 = arith.subf %9, %23 : vector<8x32xf32>
    %cst_15 = arith.constant 9.99999974E-6 : f32
    %25 = vector.broadcast %cst_15 : f32 to vector<8x1xf32>
    %26 = arith.addf %22, %25 : vector<8x1xf32>
    %27 = math.rsqrt %26 : vector<8x1xf32>
    %28 = vector.broadcast %27 : vector<8x1xf32> to vector<8x32xf32>
    %29 = arith.mulf %24, %28 : vector<8x32xf32>
    %30 = vector.broadcast %10 : vector<1x32xf32> to vector<8x32xf32>
    %31 = arith.mulf %29, %30 : vector<8x32xf32>
    %32 = vector.broadcast %11 : vector<1x32xf32> to vector<8x32xf32>
    %33 = arith.addf %31, %32 : vector<8x32xf32>
    %c0_16 = arith.constant 0 : index
    %c0_17 = arith.constant 0 : index
    %c0_18 = arith.constant 0 : index
    %34 = vector.load %arg9[%c0_16, %c0_17, %c0_18] : memref<1x8x32xf32, #tpu.memory_space<vmem>>, vector<1x8x32xf32>
    %35 = vector.shape_cast %34 : vector<1x8x32xf32> to vector<8x32xf32>
    %c0_19 = arith.constant 0 : index
    %c0_20 = arith.constant 0 : index
    %c0_21 = arith.constant 0 : index
    %36 = vector.load %arg9[%c0_19, %c0_20, %c0_21] : memref<1x8x32xf32, #tpu.memory_space<vmem>>, vector<1x8x32xf32>
    %37 = vector.shape_cast %36 : vector<1x8x32xf32> to vector<8x32xf32>
    %38 = arith.subf %33, %37 : vector<8x32xf32>
    %cst_22 = arith.constant 5.000000e-01 : f32
    %39 = vector.broadcast %cst_22 : f32 to vector<8x32xf32>
    %40 = arith.mulf %38, %39 : vector<8x32xf32>
    %41 = arith.addf %35, %40 : vector<8x32xf32>
    %cst_23 = arith.constant 1.000000e+00 : f32
    %42 = vector.broadcast %cst_23 : f32 to vector<8x32xf32>
    %43 = arith.cmpf oge, %41, %42 : vector<8x32xf32>
    %44 = arith.extui %43 : vector<8x32xi1> to vector<8x32xi32>
    %45 = arith.sitofp %44 : vector<8x32xi32> to vector<8x32xf32>
    %cst_24 = arith.constant 1.000000e+00 : f32
    %46 = vector.broadcast %cst_24 : f32 to vector<8x32xf32>
    %47 = arith.subf %46, %45 : vector<8x32xf32>
    %48 = arith.mulf %41, %47 : vector<8x32xf32>
    %c0_25 = arith.constant 0 : index
    %c0_26 = arith.constant 0 : index
    %c0_27 = arith.constant 0 : index
    %49 = vector.load %arg9[%c0_25, %c0_26, %c0_27] : memref<1x8x32xf32, #tpu.memory_space<vmem>>, vector<1x8x32xf32>
    %50 = vector.shape_cast %49 : vector<1x8x32xf32> to vector<8x32xf32>
    %51 = vector.shape_cast %48 : vector<8x32xf32> to vector<1x8x32xf32>
    tpu.vector_store %arg9[%c0_25, %c0_26, %c0_27], %51 {strides = array<i32>} : memref<1x8x32xf32, #tpu.memory_space<vmem>>, vector<1x8x32xf32>,
    %c0_28 = arith.constant 0 : index
    %c0_29 = arith.constant 0 : index
    %c0_30 = arith.constant 0 : index
    %52 = vector.load %arg3[%c0_28, %c0_29, %c0_30] : memref<1x8x32xbf16, #tpu.memory_space<vmem>>, vector<1x8x32xbf16>
    %53 = vector.shape_cast %52 : vector<1x8x32xbf16> to vector<8x32xbf16>
    %54 = arith.extf %53 : vector<8x32xbf16> to vector<8x32xf32>
    %55 = arith.addf %45, %54 : vector<8x32xf32>
    %56 = arith.truncf %55 : vector<8x32xf32> to vector<8x32xbf16>
    %c0_31 = arith.constant 0 : index
    %c0_32 = arith.constant 0 : index
    %c0_33 = arith.constant 0 : index
    %57 = vector.load %arg8[%c0_31, %c0_32, %c0_33] : memref<1x8x32xbf16, #tpu.memory_space<vmem>>, vector<1x8x32xbf16>
    %58 = vector.shape_cast %57 : vector<1x8x32xbf16> to vector<8x32xbf16>
    %59 = vector.shape_cast %56 : vector<8x32xbf16> to vector<1x8x32xbf16>
    tpu.vector_store %arg8[%c0_31, %c0_32, %c0_33], %59 {strides = array<i32>} : memref<1x8x32xbf16, #tpu.memory_space<vmem>>, vector<1x8x32xbf16>,
    return
  }
  func.func @transform_0(%arg0: i32, %arg1: i32) -> (i32, i32, i32) {
    %c0_i32 = arith.constant 0 : i32
    %c0_i32_0 = arith.constant 0 : i32
    return %arg1, %arg0, %c0_i32 : i32, i32, i32
  }
  func.func @transform_1(%arg0: i32, %arg1: i32) -> (i32, i32, i32) {
    %c0_i32 = arith.constant 0 : i32
    %c0_i32_0 = arith.constant 0 : i32
    return %arg1, %arg0, %c0_i32 : i32, i32, i32
  }
  func.func @transform_2(%arg0: i32, %arg1: i32) -> (i32, i32) {
    %c0_i32 = arith.constant 0 : i32
    %c0_i32_0 = arith.constant 0 : i32
    %c0_i32_1 = arith.constant 0 : i32
    return %c0_i32, %c0_i32_0 : i32, i32
  }
  func.func @transform_3(%arg0: i32, %arg1: i32) -> (i32, i32) {
    %c0_i32 = arith.constant 0 : i32
    %c0_i32_0 = arith.constant 0 : i32
    %c0_i32_1 = arith.constant 0 : i32
    return %c0_i32, %c0_i32_0 : i32, i32
  }
  func.func @transform_4(%arg0: i32, %arg1: i32) -> (i32, i32) {
    %c0_i32 = arith.constant 0 : i32
    %c0_i32_0 = arith.constant 0 : i32
    %c0_i32_1 = arith.constant 0 : i32
    return %c0_i32, %c0_i32_0 : i32, i32
  }
  func.func @transform_5(%arg0: i32, %arg1: i32) -> (i32, i32) {
    %c0_i32 = arith.constant 0 : i32
    %c0_i32_0 = arith.constant 0 : i32
    %c0_i32_1 = arith.constant 0 : i32
    return %c0_i32, %c0_i32_0 : i32, i32
  }
  func.func @transform_6(%arg0: i32, %arg1: i32) -> (i32, i32, i32) {
    %c0_i32 = arith.constant 0 : i32
    %c0_i32_0 = arith.constant 0 : i32
    return %arg1, %arg0, %c0_i32 : i32, i32, i32
  }
}

module attributes {stable_mosaic.version = 11 : i64} {
  func.func @_linear_ln_lif_kernel(%arg0: i32, %arg1: i32, %arg2: memref<1x8x32xbf16, #tpu.memory_space<vmem>>, %arg3: memref<32x96xbf16, #tpu.memory_space<vmem>>, %arg4: memref<1x96xf32, #tpu.memory_space<vmem>>, %arg5: memref<1x96xf32, #tpu.memory_space<vmem>>, %arg6: memref<1x96xf32, #tpu.memory_space<vmem>>, %arg7: memref<1x8x96xbf16, #tpu.memory_space<vmem>>, %arg8: memref<3x8x32xf32, #tpu.memory_space<vmem>>) attributes {dimension_semantics = [#tpu.dimension_semantics<parallel>, #tpu.dimension_semantics<arbitrary>], iteration_bounds = array<i64: 2, 4>, scalar_prefetch = 0 : i64, scratch_operands = 1 : i64, tpu.core_type = #tpu.core_type<tc>, window_params = [{transform_indices = @transform_0, window_bounds = array<i64: 1, 8, 32>}, {pipeline_mode = #tpu.pipeline_mode<synchronous>, transform_indices = @transform_1, window_bounds = array<i64: 32, 96>}, {pipeline_mode = #tpu.pipeline_mode<synchronous>, transform_indices = @transform_2, window_bounds = array<i64: 1, 96>}, {pipeline_mode = #tpu.pipeline_mode<synchronous>, transform_indices = @transform_3, window_bounds = array<i64: 1, 96>}, {pipeline_mode = #tpu.pipeline_mode<synchronous>, transform_indices = @transform_4, window_bounds = array<i64: 1, 96>}, {transform_indices = @transform_5, window_bounds = array<i64: 1, 8, 96>}]} {
    %c0_i32 = arith.constant 0 : i32
    %0 = arith.cmpi eq, %arg1, %c0_i32 : i32
    %1 = arith.extui %0 : i1 to i32
    %c0_i32_0 = arith.constant 0 : i32
    %2 = arith.cmpi ne, %1, %c0_i32_0 : i32
    scf.if %2 {
      %cst_63 = arith.constant 0.000000e+00 : f32
      %146 = vector.broadcast %cst_63 : f32 to vector<3x8x32xf32>
      %c0_64 = arith.constant 0 : index
      %c0_65 = arith.constant 0 : index
      %c0_66 = arith.constant 0 : index
      %147 = vector.load %arg8[%c0_64, %c0_65, %c0_66] : memref<3x8x32xf32, #tpu.memory_space<vmem>>, vector<3x8x32xf32>
      tpu.vector_store %arg8[%c0_64, %c0_65, %c0_66], %146 {strides = array<i32>} : memref<3x8x32xf32, #tpu.memory_space<vmem>>, vector<3x8x32xf32>,
    } else {
    }
    %c0 = arith.constant 0 : index
    %c0_1 = arith.constant 0 : index
    %c0_2 = arith.constant 0 : index
    %3 = vector.load %arg2[%c0, %c0_1, %c0_2] : memref<1x8x32xbf16, #tpu.memory_space<vmem>>, vector<1x8x32xbf16>
    %4 = vector.shape_cast %3 : vector<1x8x32xbf16> to vector<8x32xbf16>
    %c0_3 = arith.constant 0 : index
    %c0_4 = arith.constant 0 : index
    %5 = vector.load %arg3[%c0_3, %c0_4] : memref<32x96xbf16, #tpu.memory_space<vmem>>, vector<32x96xbf16>
    %cst = arith.constant dense<0.000000e+00> : vector<8x96xf32>
    %6 = tpu.matmul %4, %5, %cst {dimension_numbers = #tpu.dot_dimension_numbers<[1], [0], [0], [1], [0, 0, 1, 1], [], []>} : vector<8x32xbf16>, vector<32x96xbf16>, vector<8x96xf32> -> vector<8x96xf32>
    %c0_5 = arith.constant 0 : index
    %c0_6 = arith.constant 0 : index
    %7 = vector.load %arg4[%c0_5, %c0_6] : memref<1x96xf32, #tpu.memory_space<vmem>>, vector<1x96xf32>
    %8 = vector.broadcast %7 : vector<1x96xf32> to vector<8x96xf32>
    %9 = arith.addf %6, %8 : vector<8x96xf32>
    %c0_7 = arith.constant 0 : index
    %c0_8 = arith.constant 0 : index
    %10 = vector.load %arg5[%c0_7, %c0_8] : memref<1x96xf32, #tpu.memory_space<vmem>>, vector<1x96xf32>
    %c0_9 = arith.constant 0 : index
    %c0_10 = arith.constant 0 : index
    %11 = vector.load %arg6[%c0_9, %c0_10] : memref<1x96xf32, #tpu.memory_space<vmem>>, vector<1x96xf32>
    %12 = vector.extract_strided_slice %9 {offsets = [0, 0], sizes = [8, 32], strides = [1, 1]} : vector<8x96xf32> to vector<8x32xf32>
    %cst_11 = arith.constant dense<0.000000e+00> : vector<8xf32>
    %13 = vector.multi_reduction <add>, %12, %cst_11 [1] : vector<8x32xf32> to vector<8xf32>
    %14 = vector.shape_cast %13 : vector<8xf32> to vector<8x1xf32>
    %cst_12 = arith.constant 3.200000e+01 : f32
    %15 = vector.broadcast %cst_12 : f32 to vector<8x1xf32>
    %16 = arith.divf %14, %15 : vector<8x1xf32>
    %17 = vector.broadcast %16 : vector<8x1xf32> to vector<8x32xf32>
    %18 = arith.subf %12, %17 : vector<8x32xf32>
    %19 = arith.mulf %18, %18 : vector<8x32xf32>
    %cst_13 = arith.constant dense<0.000000e+00> : vector<8xf32>
    %20 = vector.multi_reduction <add>, %19, %cst_13 [1] : vector<8x32xf32> to vector<8xf32>
    %21 = vector.shape_cast %20 : vector<8xf32> to vector<8x1xf32>
    %cst_14 = arith.constant 3.200000e+01 : f32
    %22 = vector.broadcast %cst_14 : f32 to vector<8x1xf32>
    %23 = arith.divf %21, %22 : vector<8x1xf32>
    %24 = vector.broadcast %16 : vector<8x1xf32> to vector<8x32xf32>
    %25 = arith.subf %12, %24 : vector<8x32xf32>
    %cst_15 = arith.constant 9.99999974E-6 : f32
    %26 = vector.broadcast %cst_15 : f32 to vector<8x1xf32>
    %27 = arith.addf %23, %26 : vector<8x1xf32>
    %28 = math.rsqrt %27 : vector<8x1xf32>
    %29 = vector.broadcast %28 : vector<8x1xf32> to vector<8x32xf32>
    %30 = arith.mulf %25, %29 : vector<8x32xf32>
    %31 = vector.extract_strided_slice %10 {offsets = [0, 0], sizes = [1, 32], strides = [1, 1]} : vector<1x96xf32> to vector<1x32xf32>
    %32 = vector.broadcast %31 : vector<1x32xf32> to vector<8x32xf32>
    %33 = arith.mulf %30, %32 : vector<8x32xf32>
    %34 = vector.extract_strided_slice %11 {offsets = [0, 0], sizes = [1, 32], strides = [1, 1]} : vector<1x96xf32> to vector<1x32xf32>
    %35 = vector.broadcast %34 : vector<1x32xf32> to vector<8x32xf32>
    %36 = arith.addf %33, %35 : vector<8x32xf32>
    %c0_16 = arith.constant 0 : index
    %c0_17 = arith.constant 0 : index
    %c0_18 = arith.constant 0 : index
    %37 = vector.load %arg8[%c0_16, %c0_17, %c0_18] : memref<3x8x32xf32, #tpu.memory_space<vmem>>, vector<1x8x32xf32>
    %38 = vector.shape_cast %37 : vector<1x8x32xf32> to vector<8x32xf32>
    %c0_19 = arith.constant 0 : index
    %c0_20 = arith.constant 0 : index
    %c0_21 = arith.constant 0 : index
    %39 = vector.load %arg8[%c0_19, %c0_20, %c0_21] : memref<3x8x32xf32, #tpu.memory_space<vmem>>, vector<1x8x32xf32>
    %40 = vector.shape_cast %39 : vector<1x8x32xf32> to vector<8x32xf32>
    %41 = arith.subf %36, %40 : vector<8x32xf32>
    %cst_22 = arith.constant 5.000000e-01 : f32
    %42 = vector.broadcast %cst_22 : f32 to vector<8x32xf32>
    %43 = arith.mulf %41, %42 : vector<8x32xf32>
    %44 = arith.addf %38, %43 : vector<8x32xf32>
    %cst_23 = arith.constant 1.000000e+00 : f32
    %45 = vector.broadcast %cst_23 : f32 to vector<8x32xf32>
    %46 = arith.cmpf oge, %44, %45 : vector<8x32xf32>
    %47 = arith.extui %46 : vector<8x32xi1> to vector<8x32xi32>
    %48 = arith.sitofp %47 : vector<8x32xi32> to vector<8x32xf32>
    %cst_24 = arith.constant 1.000000e+00 : f32
    %49 = vector.broadcast %cst_24 : f32 to vector<8x32xf32>
    %50 = arith.subf %49, %48 : vector<8x32xf32>
    %51 = arith.mulf %44, %50 : vector<8x32xf32>
    %c0_25 = arith.constant 0 : index
    %c0_26 = arith.constant 0 : index
    %c0_27 = arith.constant 0 : index
    %52 = vector.load %arg8[%c0_25, %c0_26, %c0_27] : memref<3x8x32xf32, #tpu.memory_space<vmem>>, vector<1x8x32xf32>
    %53 = vector.shape_cast %52 : vector<1x8x32xf32> to vector<8x32xf32>
    %54 = vector.shape_cast %51 : vector<8x32xf32> to vector<1x8x32xf32>
    tpu.vector_store %arg8[%c0_25, %c0_26, %c0_27], %54 {strides = array<i32>} : memref<3x8x32xf32, #tpu.memory_space<vmem>>, vector<1x8x32xf32>,
    %55 = vector.extract_strided_slice %9 {offsets = [0, 32], sizes = [8, 32], strides = [1, 1]} : vector<8x96xf32> to vector<8x32xf32>
    %cst_28 = arith.constant dense<0.000000e+00> : vector<8xf32>
    %56 = vector.multi_reduction <add>, %55, %cst_28 [1] : vector<8x32xf32> to vector<8xf32>
    %57 = vector.shape_cast %56 : vector<8xf32> to vector<8x1xf32>
    %cst_29 = arith.constant 3.200000e+01 : f32
    %58 = vector.broadcast %cst_29 : f32 to vector<8x1xf32>
    %59 = arith.divf %57, %58 : vector<8x1xf32>
    %60 = vector.broadcast %59 : vector<8x1xf32> to vector<8x32xf32>
    %61 = arith.subf %55, %60 : vector<8x32xf32>
    %62 = arith.mulf %61, %61 : vector<8x32xf32>
    %cst_30 = arith.constant dense<0.000000e+00> : vector<8xf32>
    %63 = vector.multi_reduction <add>, %62, %cst_30 [1] : vector<8x32xf32> to vector<8xf32>
    %64 = vector.shape_cast %63 : vector<8xf32> to vector<8x1xf32>
    %cst_31 = arith.constant 3.200000e+01 : f32
    %65 = vector.broadcast %cst_31 : f32 to vector<8x1xf32>
    %66 = arith.divf %64, %65 : vector<8x1xf32>
    %67 = vector.broadcast %59 : vector<8x1xf32> to vector<8x32xf32>
    %68 = arith.subf %55, %67 : vector<8x32xf32>
    %cst_32 = arith.constant 9.99999974E-6 : f32
    %69 = vector.broadcast %cst_32 : f32 to vector<8x1xf32>
    %70 = arith.addf %66, %69 : vector<8x1xf32>
    %71 = math.rsqrt %70 : vector<8x1xf32>
    %72 = vector.broadcast %71 : vector<8x1xf32> to vector<8x32xf32>
    %73 = arith.mulf %68, %72 : vector<8x32xf32>
    %74 = vector.extract_strided_slice %10 {offsets = [0, 32], sizes = [1, 32], strides = [1, 1]} : vector<1x96xf32> to vector<1x32xf32>
    %75 = vector.broadcast %74 : vector<1x32xf32> to vector<8x32xf32>
    %76 = arith.mulf %73, %75 : vector<8x32xf32>
    %77 = vector.extract_strided_slice %11 {offsets = [0, 32], sizes = [1, 32], strides = [1, 1]} : vector<1x96xf32> to vector<1x32xf32>
    %78 = vector.broadcast %77 : vector<1x32xf32> to vector<8x32xf32>
    %79 = arith.addf %76, %78 : vector<8x32xf32>
    %c1 = arith.constant 1 : index
    %c0_33 = arith.constant 0 : index
    %c0_34 = arith.constant 0 : index
    %80 = vector.load %arg8[%c1, %c0_33, %c0_34] : memref<3x8x32xf32, #tpu.memory_space<vmem>>, vector<1x8x32xf32>
    %81 = vector.shape_cast %80 : vector<1x8x32xf32> to vector<8x32xf32>
    %c1_35 = arith.constant 1 : index
    %c0_36 = arith.constant 0 : index
    %c0_37 = arith.constant 0 : index
    %82 = vector.load %arg8[%c1_35, %c0_36, %c0_37] : memref<3x8x32xf32, #tpu.memory_space<vmem>>, vector<1x8x32xf32>
    %83 = vector.shape_cast %82 : vector<1x8x32xf32> to vector<8x32xf32>
    %84 = arith.subf %79, %83 : vector<8x32xf32>
    %cst_38 = arith.constant 5.000000e-01 : f32
    %85 = vector.broadcast %cst_38 : f32 to vector<8x32xf32>
    %86 = arith.mulf %84, %85 : vector<8x32xf32>
    %87 = arith.addf %81, %86 : vector<8x32xf32>
    %cst_39 = arith.constant 1.000000e+00 : f32
    %88 = vector.broadcast %cst_39 : f32 to vector<8x32xf32>
    %89 = arith.cmpf oge, %87, %88 : vector<8x32xf32>
    %90 = arith.extui %89 : vector<8x32xi1> to vector<8x32xi32>
    %91 = arith.sitofp %90 : vector<8x32xi32> to vector<8x32xf32>
    %cst_40 = arith.constant 1.000000e+00 : f32
    %92 = vector.broadcast %cst_40 : f32 to vector<8x32xf32>
    %93 = arith.subf %92, %91 : vector<8x32xf32>
    %94 = arith.mulf %87, %93 : vector<8x32xf32>
    %c1_41 = arith.constant 1 : index
    %c0_42 = arith.constant 0 : index
    %c0_43 = arith.constant 0 : index
    %95 = vector.load %arg8[%c1_41, %c0_42, %c0_43] : memref<3x8x32xf32, #tpu.memory_space<vmem>>, vector<1x8x32xf32>
    %96 = vector.shape_cast %95 : vector<1x8x32xf32> to vector<8x32xf32>
    %97 = vector.shape_cast %94 : vector<8x32xf32> to vector<1x8x32xf32>
    tpu.vector_store %arg8[%c1_41, %c0_42, %c0_43], %97 {strides = array<i32>} : memref<3x8x32xf32, #tpu.memory_space<vmem>>, vector<1x8x32xf32>,
    %98 = vector.extract_strided_slice %9 {offsets = [0, 64], sizes = [8, 32], strides = [1, 1]} : vector<8x96xf32> to vector<8x32xf32>
    %cst_44 = arith.constant dense<0.000000e+00> : vector<8xf32>
    %99 = vector.multi_reduction <add>, %98, %cst_44 [1] : vector<8x32xf32> to vector<8xf32>
    %100 = vector.shape_cast %99 : vector<8xf32> to vector<8x1xf32>
    %cst_45 = arith.constant 3.200000e+01 : f32
    %101 = vector.broadcast %cst_45 : f32 to vector<8x1xf32>
    %102 = arith.divf %100, %101 : vector<8x1xf32>
    %103 = vector.broadcast %102 : vector<8x1xf32> to vector<8x32xf32>
    %104 = arith.subf %98, %103 : vector<8x32xf32>
    %105 = arith.mulf %104, %104 : vector<8x32xf32>
    %cst_46 = arith.constant dense<0.000000e+00> : vector<8xf32>
    %106 = vector.multi_reduction <add>, %105, %cst_46 [1] : vector<8x32xf32> to vector<8xf32>
    %107 = vector.shape_cast %106 : vector<8xf32> to vector<8x1xf32>
    %cst_47 = arith.constant 3.200000e+01 : f32
    %108 = vector.broadcast %cst_47 : f32 to vector<8x1xf32>
    %109 = arith.divf %107, %108 : vector<8x1xf32>
    %110 = vector.broadcast %102 : vector<8x1xf32> to vector<8x32xf32>
    %111 = arith.subf %98, %110 : vector<8x32xf32>
    %cst_48 = arith.constant 9.99999974E-6 : f32
    %112 = vector.broadcast %cst_48 : f32 to vector<8x1xf32>
    %113 = arith.addf %109, %112 : vector<8x1xf32>
    %114 = math.rsqrt %113 : vector<8x1xf32>
    %115 = vector.broadcast %114 : vector<8x1xf32> to vector<8x32xf32>
    %116 = arith.mulf %111, %115 : vector<8x32xf32>
    %117 = vector.extract_strided_slice %10 {offsets = [0, 64], sizes = [1, 32], strides = [1, 1]} : vector<1x96xf32> to vector<1x32xf32>
    %118 = vector.broadcast %117 : vector<1x32xf32> to vector<8x32xf32>
    %119 = arith.mulf %116, %118 : vector<8x32xf32>
    %120 = vector.extract_strided_slice %11 {offsets = [0, 64], sizes = [1, 32], strides = [1, 1]} : vector<1x96xf32> to vector<1x32xf32>
    %121 = vector.broadcast %120 : vector<1x32xf32> to vector<8x32xf32>
    %122 = arith.addf %119, %121 : vector<8x32xf32>
    %c2 = arith.constant 2 : index
    %c0_49 = arith.constant 0 : index
    %c0_50 = arith.constant 0 : index
    %123 = vector.load %arg8[%c2, %c0_49, %c0_50] : memref<3x8x32xf32, #tpu.memory_space<vmem>>, vector<1x8x32xf32>
    %124 = vector.shape_cast %123 : vector<1x8x32xf32> to vector<8x32xf32>
    %c2_51 = arith.constant 2 : index
    %c0_52 = arith.constant 0 : index
    %c0_53 = arith.constant 0 : index
    %125 = vector.load %arg8[%c2_51, %c0_52, %c0_53] : memref<3x8x32xf32, #tpu.memory_space<vmem>>, vector<1x8x32xf32>
    %126 = vector.shape_cast %125 : vector<1x8x32xf32> to vector<8x32xf32>
    %127 = arith.subf %122, %126 : vector<8x32xf32>
    %cst_54 = arith.constant 5.000000e-01 : f32
    %128 = vector.broadcast %cst_54 : f32 to vector<8x32xf32>
    %129 = arith.mulf %127, %128 : vector<8x32xf32>
    %130 = arith.addf %124, %129 : vector<8x32xf32>
    %cst_55 = arith.constant 1.000000e+00 : f32
    %131 = vector.broadcast %cst_55 : f32 to vector<8x32xf32>
    %132 = arith.cmpf oge, %130, %131 : vector<8x32xf32>
    %133 = arith.extui %132 : vector<8x32xi1> to vector<8x32xi32>
    %134 = arith.sitofp %133 : vector<8x32xi32> to vector<8x32xf32>
    %cst_56 = arith.constant 1.000000e+00 : f32
    %135 = vector.broadcast %cst_56 : f32 to vector<8x32xf32>
    %136 = arith.subf %135, %134 : vector<8x32xf32>
    %137 = arith.mulf %130, %136 : vector<8x32xf32>
    %c2_57 = arith.constant 2 : index
    %c0_58 = arith.constant 0 : index
    %c0_59 = arith.constant 0 : index
    %138 = vector.load %arg8[%c2_57, %c0_58, %c0_59] : memref<3x8x32xf32, #tpu.memory_space<vmem>>, vector<1x8x32xf32>
    %139 = vector.shape_cast %138 : vector<1x8x32xf32> to vector<8x32xf32>
    %140 = vector.shape_cast %137 : vector<8x32xf32> to vector<1x8x32xf32>
    tpu.vector_store %arg8[%c2_57, %c0_58, %c0_59], %140 {strides = array<i32>} : memref<3x8x32xf32, #tpu.memory_space<vmem>>, vector<1x8x32xf32>,
    %141 = tpu.concatenate %48, %91, %134 in 1 : vector<8x32xf32>, vector<8x32xf32>, vector<8x32xf32> -> vector<8x96xf32>
    %142 = arith.truncf %141 : vector<8x96xf32> to vector<8x96xbf16>
    %c0_60 = arith.constant 0 : index
    %c0_61 = arith.constant 0 : index
    %c0_62 = arith.constant 0 : index
    %143 = vector.load %arg7[%c0_60, %c0_61, %c0_62] : memref<1x8x96xbf16, #tpu.memory_space<vmem>>, vector<1x8x96xbf16>
    %144 = vector.shape_cast %143 : vector<1x8x96xbf16> to vector<8x96xbf16>
    %145 = vector.shape_cast %142 : vector<8x96xbf16> to vector<1x8x96xbf16>
    tpu.vector_store %arg7[%c0_60, %c0_61, %c0_62], %145 {strides = array<i32>} : memref<1x8x96xbf16, #tpu.memory_space<vmem>>, vector<1x8x96xbf16>,
    return
  }
  func.func @transform_0(%arg0: i32, %arg1: i32) -> (i32, i32, i32) {
    %c0_i32 = arith.constant 0 : i32
    %c0_i32_0 = arith.constant 0 : i32
    return %arg1, %arg0, %c0_i32 : i32, i32, i32
  }
  func.func @transform_1(%arg0: i32, %arg1: i32) -> (i32, i32) {
    %c0_i32 = arith.constant 0 : i32
    %c0_i32_0 = arith.constant 0 : i32
    %c0_i32_1 = arith.constant 0 : i32
    return %c0_i32, %c0_i32_0 : i32, i32
  }
  func.func @transform_2(%arg0: i32, %arg1: i32) -> (i32, i32) {
    %c0_i32 = arith.constant 0 : i32
    %c0_i32_0 = arith.constant 0 : i32
    %c0_i32_1 = arith.constant 0 : i32
    return %c0_i32, %c0_i32_0 : i32, i32
  }
  func.func @transform_3(%arg0: i32, %arg1: i32) -> (i32, i32) {
    %c0_i32 = arith.constant 0 : i32
    %c0_i32_0 = arith.constant 0 : i32
    %c0_i32_1 = arith.constant 0 : i32
    return %c0_i32, %c0_i32_0 : i32, i32
  }
  func.func @transform_4(%arg0: i32, %arg1: i32) -> (i32, i32) {
    %c0_i32 = arith.constant 0 : i32
    %c0_i32_0 = arith.constant 0 : i32
    %c0_i32_1 = arith.constant 0 : i32
    return %c0_i32, %c0_i32_0 : i32, i32
  }
  func.func @transform_5(%arg0: i32, %arg1: i32) -> (i32, i32, i32) {
    %c0_i32 = arith.constant 0 : i32
    %c0_i32_0 = arith.constant 0 : i32
    return %arg1, %arg0, %c0_i32 : i32, i32, i32
  }
}

module attributes {stable_mosaic.version = 11 : i64} {
  func.func @_ln_mean_kernel(%arg0: i32, %arg1: i32, %arg2: memref<1x8x32xbf16, #tpu.memory_space<vmem>>, %arg3: memref<1x32xf32, #tpu.memory_space<vmem>>, %arg4: memref<1x32xf32, #tpu.memory_space<vmem>>, %arg5: memref<8x32xf32, #tpu.memory_space<vmem>>) attributes {dimension_semantics = [#tpu.dimension_semantics<parallel>, #tpu.dimension_semantics<arbitrary>], iteration_bounds = array<i64: 2, 4>, scalar_prefetch = 0 : i64, scratch_operands = 0 : i64, tpu.core_type = #tpu.core_type<tc>, window_params = [{transform_indices = @transform_0, window_bounds = array<i64: 1, 8, 32>}, {pipeline_mode = #tpu.pipeline_mode<synchronous>, transform_indices = @transform_1, window_bounds = array<i64: 1, 32>}, {pipeline_mode = #tpu.pipeline_mode<synchronous>, transform_indices = @transform_2, window_bounds = array<i64: 1, 32>}, {transform_indices = @transform_3, window_bounds = array<i64: 8, 32>}]} {
    %c0_i32 = arith.constant 0 : i32
    %0 = arith.cmpi eq, %arg1, %c0_i32 : i32
    %1 = arith.extui %0 : i1 to i32
    %c0_i32_0 = arith.constant 0 : i32
    %2 = arith.cmpi ne, %1, %c0_i32_0 : i32
    scf.if %2 {
      %cst_16 = arith.constant 0.000000e+00 : f32
      %36 = vector.broadcast %cst_16 : f32 to vector<8x32xf32>
      %c0_17 = arith.constant 0 : index
      %c0_18 = arith.constant 0 : index
      %37 = vector.load %arg5[%c0_17, %c0_18] : memref<8x32xf32, #tpu.memory_space<vmem>>, vector<8x32xf32>
      tpu.vector_store %arg5[%c0_17, %c0_18], %36 {strides = array<i32>} : memref<8x32xf32, #tpu.memory_space<vmem>>, vector<8x32xf32>,
    } else {
    }
    %c0 = arith.constant 0 : index
    %c0_1 = arith.constant 0 : index
    %c0_2 = arith.constant 0 : index
    %3 = vector.load %arg2[%c0, %c0_1, %c0_2] : memref<1x8x32xbf16, #tpu.memory_space<vmem>>, vector<1x8x32xbf16>
    %4 = vector.shape_cast %3 : vector<1x8x32xbf16> to vector<8x32xbf16>
    %5 = arith.extf %4 : vector<8x32xbf16> to vector<8x32xf32>
    %cst = arith.constant dense<0.000000e+00> : vector<8xf32>
    %6 = vector.multi_reduction <add>, %5, %cst [1] : vector<8x32xf32> to vector<8xf32>
    %7 = vector.shape_cast %6 : vector<8xf32> to vector<8x1xf32>
    %cst_3 = arith.constant 3.200000e+01 : f32
    %8 = vector.broadcast %cst_3 : f32 to vector<8x1xf32>
    %9 = arith.divf %7, %8 : vector<8x1xf32>
    %10 = vector.broadcast %9 : vector<8x1xf32> to vector<8x32xf32>
    %11 = arith.subf %5, %10 : vector<8x32xf32>
    %12 = arith.mulf %11, %11 : vector<8x32xf32>
    %cst_4 = arith.constant dense<0.000000e+00> : vector<8xf32>
    %13 = vector.multi_reduction <add>, %12, %cst_4 [1] : vector<8x32xf32> to vector<8xf32>
    %14 = vector.shape_cast %13 : vector<8xf32> to vector<8x1xf32>
    %cst_5 = arith.constant 3.200000e+01 : f32
    %15 = vector.broadcast %cst_5 : f32 to vector<8x1xf32>
    %16 = arith.divf %14, %15 : vector<8x1xf32>
    %c0_6 = arith.constant 0 : index
    %c0_7 = arith.constant 0 : index
    %17 = vector.load %arg5[%c0_6, %c0_7] : memref<8x32xf32, #tpu.memory_space<vmem>>, vector<8x32xf32>
    %18 = vector.broadcast %9 : vector<8x1xf32> to vector<8x32xf32>
    %19 = arith.subf %5, %18 : vector<8x32xf32>
    %cst_8 = arith.constant 9.99999974E-6 : f32
    %20 = vector.broadcast %cst_8 : f32 to vector<8x1xf32>
    %21 = arith.addf %16, %20 : vector<8x1xf32>
    %22 = math.rsqrt %21 : vector<8x1xf32>
    %23 = vector.broadcast %22 : vector<8x1xf32> to vector<8x32xf32>
    %24 = arith.mulf %19, %23 : vector<8x32xf32>
    %c0_9 = arith.constant 0 : index
    %c0_10 = arith.constant 0 : index
    %25 = vector.load %arg3[%c0_9, %c0_10] : memref<1x32xf32, #tpu.memory_space<vmem>>, vector<1x32xf32>
    %26 = vector.broadcast %25 : vector<1x32xf32> to vector<8x32xf32>
    %27 = arith.mulf %24, %26 : vector<8x32xf32>
    %c0_11 = arith.constant 0 : index
    %c0_12 = arith.constant 0 : index
    %28 = vector.load %arg4[%c0_11, %c0_12] : memref<1x32xf32, #tpu.memory_space<vmem>>, vector<1x32xf32>
    %29 = vector.broadcast %28 : vector<1x32xf32> to vector<8x32xf32>
    %30 = arith.addf %27, %29 : vector<8x32xf32>
    %31 = arith.addf %17, %30 : vector<8x32xf32>
    %c0_13 = arith.constant 0 : index
    %c0_14 = arith.constant 0 : index
    %32 = vector.load %arg5[%c0_13, %c0_14] : memref<8x32xf32, #tpu.memory_space<vmem>>, vector<8x32xf32>
    tpu.vector_store %arg5[%c0_13, %c0_14], %31 {strides = array<i32>} : memref<8x32xf32, #tpu.memory_space<vmem>>, vector<8x32xf32>,
    %c3_i32 = arith.constant 3 : i32
    %33 = arith.cmpi eq, %arg1, %c3_i32 : i32
    %34 = arith.extui %33 : i1 to i32
    %c0_i32_15 = arith.constant 0 : i32
    %35 = arith.cmpi ne, %34, %c0_i32_15 : i32
    scf.if %35 {
      %c0_16 = arith.constant 0 : index
      %c0_17 = arith.constant 0 : index
      %36 = vector.load %arg5[%c0_16, %c0_17] : memref<8x32xf32, #tpu.memory_space<vmem>>, vector<8x32xf32>
      %cst_18 = arith.constant 2.500000e-01 : f32
      %37 = vector.broadcast %cst_18 : f32 to vector<8x32xf32>
      %38 = arith.mulf %36, %37 : vector<8x32xf32>
      %c0_19 = arith.constant 0 : index
      %c0_20 = arith.constant 0 : index
      %39 = vector.load %arg5[%c0_19, %c0_20] : memref<8x32xf32, #tpu.memory_space<vmem>>, vector<8x32xf32>
      tpu.vector_store %arg5[%c0_19, %c0_20], %38 {strides = array<i32>} : memref<8x32xf32, #tpu.memory_space<vmem>>, vector<8x32xf32>,
    } else {
    }
    return
  }
  func.func @transform_0(%arg0: i32, %arg1: i32) -> (i32, i32, i32) {
    %c0_i32 = arith.constant 0 : i32
    %c0_i32_0 = arith.constant 0 : i32
    return %arg1, %arg0, %c0_i32 : i32, i32, i32
  }
  func.func @transform_1(%arg0: i32, %arg1: i32) -> (i32, i32) {
    %c0_i32 = arith.constant 0 : i32
    %c0_i32_0 = arith.constant 0 : i32
    %c0_i32_1 = arith.constant 0 : i32
    return %c0_i32, %c0_i32_0 : i32, i32
  }
  func.func @transform_2(%arg0: i32, %arg1: i32) -> (i32, i32) {
    %c0_i32 = arith.constant 0 : i32
    %c0_i32_0 = arith.constant 0 : i32
    %c0_i32_1 = arith.constant 0 : i32
    return %c0_i32, %c0_i32_0 : i32, i32
  }
  func.func @transform_3(%arg0: i32, %arg1: i32) -> (i32, i32) {
    %c0_i32 = arith.constant 0 : i32
    %c0_i32_0 = arith.constant 0 : i32
    return %arg0, %c0_i32 : i32, i32
  }
}

</mosaic_0001>

<bundles_post_ra>
// kernel: spikformer_forward.14
= control target key start
LH: loop header
LB: loop body
LE: loop exit
PB: predicated region body
PF: predicated region fallthrough
CT: control target
= control target key end

     0   :  { %s606_s18 = smov 0   ;;  %s608_s19 = smov 0   ;;  %s675_s0 = inlined_call_operand.vmem [shape: bf16[4,16,32], index: 0, kind: input, shape index: {}]   ;;  %s676_s1 = inlined_call_operand.vmem [shape: bf16[32,128], index: 1, kind: input, shape index: {}]   ;;  %s677_s2 = inlined_call_operand.vmem [shape: f32[1,128], index: 2, kind: input, shape index: {}]   ;;  %s678_s3 = inlined_call_operand.vmem [shape: f32[1,128], index: 3, kind: input, shape index: {}]   ;;  %s679_s4 = inlined_call_operand.vmem [shape: f32[1,128], index: 4, kind: input, shape index: {}]   ;;  %s680_s5 = inlined_call_operand.vmem [shape: bf16[4,16,128], index: 5, kind: output, shape index: {}]  }
   0x1   :  { %s610_s20 = smov 0   ;;  %s612_s21 = smov 0  }
   0x2   :  { %s614_s22 = smov 0  }
   0x3 LB: > { %s24_s23 = sadd.s32 1, %s563_s20  ;;  %s27_s24 = sadd.s32 1, %s567_s21  ;;  %s571_s22 = sphi %s614_s22, %s15_s22   ;;  %s567_s21 = sphi %s612_s21, %s684_s21   ;;  %s563_s20 = sphi %s610_s20, %s683_s20   ;;  %s559_s19 = sphi %s608_s19, %s682_s19   ;;  %s555_s18 = sphi %s606_s18, %s681_s18  }
   0x4   : > { %p25_p0 = scmp.ge.s32.totalorder %s24_s23, 4  ;;  %p460_p1 = scmp.ge.s32.totalorder %s571_s22, 1 }
   0x5   : > { %p206_p2 = scmp.lt.s32.totalorder %s571_s22, 9 }
   0x6   : > { %s686_s23 = smov (%p25_p0, %s24_s23), 0  ;;  %s688_s24 = smov (!%p25_p0, %s27_s24), %s567_s21 }
   0x7   : > { %p207_p3 = pnand %p460_p1, %p206_p2  ;;  %p29_p4 = scmp.ge.s32.totalorder %s688_s24, 2 }
   0x8   : > { %p240_p5 = scmp.lt.s32.totalorder (!%p207_p3), %s555_s18, 3  ;;  %p242_p6 = scmp.lt.s32.totalorder (!%p207_p3), %s559_s19, 1 }
   0x9   : > { %s690_s24 = smov (%p29_p4, %s688_s24), 0  ;;  %210 = sbr.rel (%p207_p3) target bundleno = 545 (0x221), region = 40 }
   0xa   : > { %p465_p7 = scmp.ne.s32.totalorder (!%p207_p3), %s555_s18, 0 }
   0xe   : > { %s241_s25 = scalar_select %p240_p5, %s555_s18, 3 }
   0xf   : > { %s692_s19 = smov (!%p242_p6, %s559_s19), 1  ;;  %260 = sbr.rel (%p465_p7) target bundleno = 22 (0x16), region = 44 }
  0x10   : > { %s461_s26 = sshll.u32 %s241_s25, 1 }
  0x11   : > { %s245_s27 = sadd.s32 %s461_s26, %s692_s19 }
  0x12   : > { %s462_s28 = sshll.u32 %s245_s27, 2 }
  0x13   : > { %s247_s6 = scalar_lea.vmem %s675_s0, %s462_s28  ;;  %s642_s9 = scalar_lea.vmem %s680_s5, %s462_s28 }
  0x14   : > { %v573_v0 = vmov 0.0  }
  0x15   : > { %261 = vst [vmem:[#allocation2] sm:$0xff] %v573_v0 }
  0x16 PF: > { %v529_v1 = vld [vmem:[%s676_s1 + $0x8] sm:$0xff]   ;;  %v574_v2 = vmov 0.0   ;;  %v530_v3 = vld [vmem:[%s676_s1] sm:$0xff]   ;;  %vm575_vm0 = vmmov 0   ;;  %vm286_vm1 = vcmask 261120  }
  0x17   : > { %478 = vmatprep.subr.bf16.mxu0 %v574_v2  ;;  %482 = vmatprep.mubr.msk.bf16.mxu0 %vm575_vm0, %v574_v2  ;;  %v262_v4 = vld [vmem:[%s247_s6] sm:$0xf] }
  0x18   : > { %479 = vmatpush3.bf16.msra.mxu0 %v529_v1  ;;  %v466_v5 = vld [vmem:[%s677_s2] ss:$0 sm:$0xff] }
  0x19   : > { %480 = vmatprep.subr.bf16.mxu0 %v574_v2  ;;  %v470_v19 = vld [vmem:[%s678_s3] ss:$0 sm:$0xff] }
  0x1a   : > { %v471_v21 = vld [vmem:[%s679_s4] ss:$0 sm:$0xff] }
  0x1c   : > { %481 = vmatpush3.bf16.msra.mxu0 %v530_v3  ;;  %v358_v23 = vld [vmem:[#allocation2] sm:$0xff] }
  0x1f   : > { %483 = vmatmul.mubr.msk.bf16.vlgmr.msra.gmra.mxu0 %vm286_vm1, %v262_v4 }
  0xdf   : > { %v324_v6 = vpop.f32.mrf.mxu0 }
  0xe0   : > { %v325_v7 = vadd.f32 %v466_v5, %v324_v6 }
  0xe1   : > { %v484_v8 = vpop.f32.mrf.mxu0 }
  0xe2   : > { %332 = vadd.xlane.f32.xlu0 %v325_v7 }
  0xe3   : > { %v327_v9 = vpop.f32.mrf.mxu0 }
  0xe5   : > { %v485_v10 = vpop.f32.mrf.mxu0 }
 0x16b   : > { %v333_v11 = vpop.xlane.xlu0 %332 }
 0x16c   : > { %v335_v12 = vmul.f32 0.0078125, %v333_v11 }
 0x16e   : > { %v336_v13 = vsub.f32 %v325_v7, %v335_v12 }
 0x170   : > { %v337_v14 = vmul.f32 %v336_v13, %v336_v13 }
 0x172   : > { %338 = vadd.xlane.f32.xlu0 %v337_v14 }
 0x1fb   : > { %v339_v15 = vpop.xlane.xlu0 %338 }
 0x1fc   : > { %v340_v16 = vmul.f32 0.0078125, %v339_v15 }
 0x1fe   : > { %v341_v17 = vadd.f32 1e-05, %v340_v16 }
 0x200   : > { %531 = vrsqrt.f32 %v341_v17 }
 0x20d   : > { %v532_v18 = vpop.eup %531 }
 0x20e   : > { %v343_v20 = vmul.f32 %v532_v18, %v336_v13 }
 0x210   : > { %v350_v22 = vmul.f32 %v470_v19, %v343_v20 }
 0x212   : > { %v357_v24 = vadd.f32 %v471_v21, %v350_v22 }
 0x214   : > { %v359_v25 = vsub.f32 %v357_v24, %v358_v23 }
 0x216   : > { %v360_v26 = vmul.f32 0.5, %v359_v25 }
 0x218   : > { %v361_v27 = vadd.f32 %v360_v26, %v358_v23 }
 0x21a   : > { %vm362_vm2 = vcmp.ge.f32.partialorder %v361_v27, 1.0 }
 0x21b   : > { %v472_v28 = vsel %vm362_vm2, 1.0, %v574_v2 }
 0x21c   : > { %v365_v29 = vsub.f32 1.0, %v472_v28  ;;  %v368_v30 = vpack.c.bf16 %v472_v28, %v472_v28 }
 0x21e   : > { %v366_v31 = vmul.f32 %v365_v29, %v361_v27  ;;  %369 = vst [vmem:[%s642_s9] sm:$0xf] %v368_v30 }
 0x220   : > { %367 = vst [vmem:[#allocation2] sm:$0xff] %v366_v31 }
 0x221 PF: > { %s15_s22 = sadd.s32 1, %s571_s22   ;;  %s681_s18 = smov %s563_s20 }
 0x222   : > { %p12_p8 = scmp.ge.s32.totalorder %s15_s22, 10   ;;  %s682_s19 = smov %s567_s21 }
 0x223   : > { %s683_s20 = smov %s686_s23  ;;  %s684_s21 = smov %s690_s24 }
 0x224   :  { %14 = sbr.rel (!%p12_p8) target bundleno = 3 (0x3), region = 74 }

// kernel: spikformer_forward.11
= control target key start
LH: loop header
LB: loop body
LE: loop exit
PB: predicated region body
PF: predicated region fallthrough
CT: control target
= control target key end

     0   :  { %s697_s18 = smov 0   ;;  %s699_s19 = smov 0   ;;  %s801_s0 = inlined_call_operand.vmem [shape: bf16[1,16,32], index: 0, kind: input, shape index: {}]   ;;  %s802_s1 = inlined_call_operand.vmem [shape: bf16[32,96], index: 1, kind: input, shape index: {}]   ;;  %s803_s2 = inlined_call_operand.vmem [shape: f32[1,96], index: 2, kind: input, shape index: {}]   ;;  %s804_s3 = inlined_call_operand.vmem [shape: f32[1,96], index: 3, kind: input, shape index: {}]   ;;  %s805_s4 = inlined_call_operand.vmem [shape: f32[1,96], index: 4, kind: input, shape index: {}]   ;;  %s806_s5 = inlined_call_operand.vmem [shape: bf16[4,16,96], index: 5, kind: output, shape index: {}]  }
   0x1   :  { %s701_s20 = smov 0   ;;  %s703_s21 = smov 0  }
   0x2   :  { %s705_s22 = smov 0  }
   0x3 LB: > { %s24_s23 = sadd.s32 1, %s651_s20  ;;  %s27_s24 = sadd.s32 1, %s655_s21  ;;  %s659_s22 = sphi %s705_s22, %s15_s22   ;;  %s655_s21 = sphi %s703_s21, %s810_s21   ;;  %s651_s20 = sphi %s701_s20, %s809_s20   ;;  %s647_s19 = sphi %s699_s19, %s808_s19   ;;  %s643_s18 = sphi %s697_s18, %s807_s18  }
   0x4   : > { %p25_p0 = scmp.ge.s32.totalorder %s24_s23, 4  ;;  %p540_p1 = scmp.ge.s32.totalorder %s659_s22, 1 }
   0x5   : > { %p200_p2 = scmp.lt.s32.totalorder %s659_s22, 9 }
   0x6   : > { %s812_s23 = smov (%p25_p0, %s24_s23), 0  ;;  %s814_s24 = smov (!%p25_p0, %s27_s24), %s655_s21 }
   0x7   : > { %p201_p3 = pnand %p540_p1, %p200_p2  ;;  %p29_p4 = scmp.ge.s32.totalorder %s814_s24, 2 }
   0x8   : > { %p230_p5 = scmp.lt.s32.totalorder (!%p201_p3), %s647_s19, 1  ;;  %p234_p6 = scmp.lt.s32.totalorder (!%p201_p3), %s643_s18, 3 }
   0x9   : > { %s816_s24 = smov (%p29_p4, %s814_s24), 0  ;;  %204 = sbr.rel (%p201_p3) target bundleno = 1012 (0x3f4), region = 40 }
   0xa   : > { %p544_p7 = scmp.ne.s32.totalorder (!%p201_p3), %s643_s18, 0 }
   0xe   : > { %s818_s19 = smov (!%p230_p5, %s647_s19), 1 }
   0xf   : > { %s235_s25 = scalar_select %p234_p6, %s643_s18, 3 }
  0x10   : > { %s541_s26 = sshll.u32 %s818_s19, 2  ;;  %246 = sbr.rel (%p544_p7) target bundleno = 24 (0x18), region = 44 }
  0x11   : > { %s233_s29 = scalar_lea.vmem %s801_s0, %s541_s26  ;;  %s542_s30 = sshll.u32 %s235_s25, 1 }
  0x12   : > { %s239_s6 = sadd.s32 %s542_s30, %s818_s19 }
  0x13   : > { %s543_s7 = sshll.u32 %s239_s6, 2 }
  0x14   : > { %s733_s10 = scalar_lea.vmem %s806_s5, %s543_s7 }
  0x15   : > { %vm247_vm0 = vcmask 261120   ;;  %v661_v0 = vmov 0.0  }
  0x16   : > { %248 = vst.msk [vmem:[#allocation2] sm:$0xff] %vm247_vm0, %v661_v0  ;;  %249 = vst.msk [vmem:[#allocation2 + $0x8] sm:$0xff] %vm247_vm0, %v661_v0 }
  0x17   : > { %250 = vst.msk [vmem:[#allocation2 + $0x10] sm:$0xff] %vm247_vm0, %v661_v0 }
  0x18 PF: > { %v613_v1 = vld [vmem:[%s802_s1 + $0x8] sm:$0xff]   ;;  %v662_v2 = vmov 0.0   ;;  %v614_v3 = vld [vmem:[%s802_s1] sm:$0xff]   ;;  %vm663_vm1 = vmmov 0   ;;  %vm275_vm2 = vcmask 261120   ;;  %s664_s17 = smov 96  }
  0x19   : > { %559 = vmatprep.subr.bf16.mxu0 %v662_v2  ;;  %563 = vmatprep.mubr.msk.bf16.mxu0 %vm663_vm1, %v662_v2  ;;  %v251_v4 = vld [vmem:[%s233_s29] sm:$0xf]  ;;  %s665_s18 = smov 64   ;;  %s666_s19 = smov 32   ;;  %vm451_vm6 = vcmask 523264   ;;  %vm454_vm7 = vcmask 781312  }
  0x1a   : > { %560 = vmatpush3.bf16.msra.mxu0 %v613_v1  ;;  %v545_v5 = vld [vmem:[%s803_s2] ss:$0 sm:$0xff] }
  0x1b   : > { %561 = vmatprep.subr.bf16.mxu0 %v662_v2  ;;  %v549_v37 = vld [vmem:[%s804_s3] ss:$0 sm:$0xff] }
  0x1c   : > { %v550_v39 = vld [vmem:[%s805_s4] ss:$0 sm:$0xff] }
  0x1d   : > { %v383_v28 = vld [vmem:[#allocation2 + $0x8] sm:$0xff] }
  0x1e   : > { %562 = vmatpush3.bf16.msra.mxu0 %v614_v3  ;;  %v424_v27 = vld [vmem:[#allocation2 + $0x10] sm:$0xff] }
  0x21   : > { %564 = vmatmul.mubr.msk.bf16.vlgmr.msra.gmra.mxu0 %vm275_vm2, %v251_v4 }
  0xe1   : > { %v313_v6 = vpop.f32.mrf.mxu0 }
  0xe2   : > { %v748_v7 = vadd.f32 %v545_v5, %v313_v6 }
  0xe3   : > { %v565_v8 = vpop.f32.mrf.mxu0 }
  0xe4   : > { %360 = vrot.lane.b32.xlu0 %v748_v7, %s664_s17  ;;  %v321_v29 = vsel %vm275_vm2, %v748_v7, 0.0 }
  0xe5   : > { %v316_v9 = vpop.f32.mrf.mxu0 }
  0xe7   : > { %v566_v10 = vpop.f32.mrf.mxu0 }
  0xe8   : > { %401 = vrot.lane.b32.xlu0 %v748_v7, %s665_s18  ;;  %v349_v10 = vld [vmem:[#allocation2] sm:$0xff] }
 0x156   : > { %v361_v11 = vpop.permute.xlu0 %360 }
 0x157   : > { %v363_v12 = vsel %vm275_vm2, %v361_v11, 0.0 }
 0x158   : > { %364 = vadd.xlane.f32.xlu1 %v363_v12 }
 0x15a   : > { %v402_v13 = vpop.permute.xlu0 %401 }
 0x15b   : > { %v404_v14 = vsel %vm275_vm2, %v402_v13, 0.0 }
 0x15c   : > { %405 = vadd.xlane.f32.xlu1 %v404_v14 }
 0x1e1   : > { %v365_v15 = vpop.xlane.xlu1 %364 }
 0x1e2   : > { %v366_v16 = vmul.f32 0.03125, %v365_v15 }
 0x1e4   : > { %v367_v17 = vsub.f32 %v748_v7, %v366_v16 }
 0x1e5   : > { %v406_v18 = vpop.xlane.xlu1 %405 }
 0x1e6   : > { %v407_v19 = vmul.f32 0.03125, %v406_v18  ;;  %v368_v20 = vmul.f32 %v367_v17, %v367_v17 }
 0x1e8   : > { %v408_v21 = vsub.f32 %v748_v7, %v407_v19  ;;  %370 = vrot.lane.b32.xlu0 %v368_v20, %s664_s17 }
 0x1ea   : > { %v409_v22 = vmul.f32 %v408_v21, %v408_v21 }
 0x1ec   : > { %411 = vrot.lane.b32.xlu1 %v409_v22, %s665_s18 }
 0x25a   : > { %v371_v23 = vpop.permute.xlu0 %370 }
 0x25b   : > { %v373_v24 = vsel %vm275_vm2, %v371_v23, 0.0 }
 0x25c   : > { %374 = vadd.xlane.f32.xlu0 %v373_v24 }
 0x25e   : > { %v412_v25 = vpop.permute.xlu1 %411 }
 0x25f   : > { %v414_v26 = vsel %vm275_vm2, %v412_v25, 0.0 }
 0x260   : > { %415 = vadd.xlane.f32.xlu1 %v414_v26 }
 0x271   : > { %426 = vrot.lane.b32.xlu1 %v424_v27, %s665_s18 }
 0x272   : > { %385 = vrot.lane.b32.xlu0 %v383_v28, %s666_s19 }
 0x291   : > { %322 = vadd.xlane.f32.xlu0 %v321_v29 }
 0x2e5   : > { %v375_v30 = vpop.xlane.xlu0 %374 }
 0x2e6   : > { %v376_v31 = vmul.f32 0.03125, %v375_v30 }
 0x2e8   : > { %v377_v32 = vadd.f32 1e-05, %v376_v31 }
 0x2e9   : > { %v416_v33 = vpop.xlane.xlu1 %415  ;;  %v386_v42 = vpop.permute.xlu0 %385 }
 0x2ea   : > { %615 = vrsqrt.f32 %v377_v32  ;;  %v417_v34 = vmul.f32 0.03125, %v416_v33 }
 0x2ec   : > { %v418_v35 = vadd.f32 1e-05, %v417_v34 }
 0x2ed   : > { %v427_v47 = vpop.permute.xlu1 %426 }
 0x2ee   : > { %617 = vrsqrt.f32 %v418_v35 }
 0x2f7   : > { %v616_v36 = vpop.eup %615 }
 0x2f8   : > { %v379_v38 = vmul.f32 %v616_v36, %v367_v17 }
 0x2fa   : > { %v380_v40 = vmul.f32 %v549_v37, %v379_v38 }
 0x2fb   : > { %v618_v41 = vpop.eup %617 }
 0x2fc   : > { %v381_v43 = vadd.f32 %v550_v39, %v380_v40  ;;  %v420_v44 = vmul.f32 %v618_v41, %v408_v21 }
 0x2fe   : > { %v388_v45 = vsub.f32 %v381_v43, %v386_v42  ;;  %v421_v46 = vmul.f32 %v549_v37, %v420_v44 }
 0x300   : > { %v389_v48 = vmul.f32 0.5, %v388_v45  ;;  %v422_v49 = vadd.f32 %v550_v39, %v421_v46 }
 0x302   : > { %v429_v50 = vsub.f32 %v422_v49, %v427_v47  ;;  %391 = vrot.lane.b32.xlu1 %v389_v48, %s664_s17 }
 0x304   : > { %v430_v51 = vmul.f32 0.5, %v429_v50 }
 0x306   : > { %432 = vrot.lane.b32.xlu1 %v430_v51, %s665_s18 }
 0x31a   : > { %v323_v52 = vpop.xlane.xlu0 %322 }
 0x31b   : > { %v325_v53 = vmul.f32 0.03125, %v323_v52 }
 0x31d   : > { %v326_v54 = vsub.f32 %v748_v7, %v325_v53 }
 0x31f   : > { %v327_v55 = vmul.f32 %v326_v54, %v326_v54 }
 0x321   : > { %v328_v56 = vsel %vm275_vm2, %v327_v55, 0.0 }
 0x32a   : > { %329 = vadd.xlane.f32.xlu1 %v328_v56 }
 0x374   : > { %v392_v57 = vpop.permute.xlu1 %391 }
 0x375   : > { %v394_v58 = vadd.f32 %v392_v57, %v383_v28 }
 0x377   : > { %vm395_vm3 = vcmp.ge.f32.partialorder %v394_v58, 1.0 }
 0x378   : > { %v433_v59 = vpop.permute.xlu1 %432  ;;  %v552_v60 = vsel %vm395_vm3, 1.0, %v662_v2 }
 0x379   : > { %v435_v61 = vadd.f32 %v433_v59, %v424_v27  ;;  %v398_v62 = vsub.f32 1.0, %v552_v60  ;;  %443 = vrot.lane.b32.xlu0 %v552_v60, %s666_s19 }
 0x37b   : > { %vm436_vm4 = vcmp.ge.f32.partialorder %v435_v61, 1.0  ;;  %v399_v63 = vmul.f32 %v398_v62, %v394_v58 }
 0x37c   : > { %v553_v0 = vsel %vm436_vm4, 1.0, %v662_v2 }
 0x37d   : > { %400 = vst.msk [vmem:[#allocation2 + $0x8] sm:$0xff] %vm275_vm2, %v399_v63  ;;  %v439_v1 = vsub.f32 1.0, %v553_v0  ;;  %447 = vrot.lane.b32.xlu0 %v553_v0, %s665_s18 }
 0x37f   : > { %v440_v3 = vmul.f32 %v439_v1, %v435_v61 }
 0x381   : > { %441 = vst.msk [vmem:[#allocation2 + $0x10] sm:$0xff] %vm275_vm2, %v440_v3 }
 0x3b3   : > { %v330_v4 = vpop.xlane.xlu1 %329 }
 0x3b4   : > { %v331_v5 = vmul.f32 0.03125, %v330_v4 }
 0x3b6   : > { %v332_v6 = vadd.f32 1e-05, %v331_v5 }
 0x3b8   : > { %619 = vrsqrt.f32 %v332_v6 }
 0x3c5   : > { %v620_v7 = vpop.eup %619 }
 0x3c6   : > { %v334_v8 = vmul.f32 %v620_v7, %v326_v54 }
 0x3c8   : > { %v341_v9 = vmul.f32 %v549_v37, %v334_v8 }
 0x3ca   : > { %v348_v11 = vadd.f32 %v550_v39, %v341_v9 }
 0x3cc   : > { %v350_v12 = vsub.f32 %v348_v11, %v349_v10 }
 0x3ce   : > { %v351_v13 = vmul.f32 0.5, %v350_v12 }
 0x3d0   : > { %v352_v14 = vadd.f32 %v351_v13, %v349_v10 }
 0x3d2   : > { %vm353_vm5 = vcmp.ge.f32.partialorder %v352_v14, 1.0 }
 0x3d3   : > { %v551_v15 = vsel %vm353_vm5, 1.0, %v662_v2 }
 0x3d4   : > { %v356_v16 = vsub.f32 1.0, %v551_v15 }
 0x3d6   : > { %v357_v17 = vmul.f32 %v356_v16, %v352_v14 }
 0x3d8   : > { %358 = vst.msk [vmem:[#allocation2] sm:$0xff] %vm275_vm2, %v357_v17 }
 0x3eb   : > { %v444_v18 = vpop.permute.xlu0 %443 }
 0x3ec   : > { %v450_v19 = vsel %vm275_vm2, %v551_v15, %v444_v18 }
 0x3ef   : > { %v448_v20 = vpop.permute.xlu0 %447 }
 0x3f0   : > { %v452_v21 = vsel %vm451_vm6, %v450_v19, %v448_v20 }
 0x3f1   : > { %v453_v22 = vpack.c.bf16 %v452_v21, %v452_v21 }
 0x3f3   : > { %455 = vst.msk [vmem:[%s733_s10] sm:$0xf] %vm454_vm7, %v453_v22 }
 0x3f4 PF: > { %s15_s22 = sadd.s32 1, %s659_s22   ;;  %s807_s18 = smov %s651_s20 }
 0x3f5   : > { %p12_p8 = scmp.ge.s32.totalorder %s15_s22, 10   ;;  %s808_s19 = smov %s655_s21 }
 0x3f6   : > { %s809_s20 = smov %s812_s23  ;;  %s810_s21 = smov %s816_s24 }
 0x3f7   :  { %14 = sbr.rel (!%p12_p8) target bundleno = 3 (0x3), region = 76 }

// kernel: spikformer_forward.13
= control target key start
LH: loop header
LB: loop body
LE: loop exit
PB: predicated region body
PF: predicated region fallthrough
CT: control target
= control target key end

     0   :  { %s675_s21 = smov 0   ;;  %s677_s22 = smov 0   ;;  %s754_s0 = inlined_call_operand.vmem [shape: bf16[4,16,32], index: 0, kind: input, shape index: {}]   ;;  %s755_s1 = inlined_call_operand.vmem [shape: bf16[1,16,32], index: 1, kind: input, shape index: {}]   ;;  %s756_s2 = inlined_call_operand.vmem [shape: bf16[32,32], index: 2, kind: input, shape index: {}]   ;;  %s757_s3 = inlined_call_operand.vmem [shape: f32[1,32], index: 3, kind: input, shape index: {}]   ;;  %s758_s4 = inlined_call_operand.vmem [shape: f32[1,32], index: 4, kind: input, shape index: {}]   ;;  %s759_s5 = inlined_call_operand.vmem [shape: f32[1,32], index: 5, kind: input, shape index: {}]   ;;  %s760_s6 = inlined_call_operand.vmem [shape: bf16[4,16,32], index: 6, kind: output, shape index: {}]  }
   0x1   :  { %s679_s23 = smov 0   ;;  %s681_s24 = smov 0  }
   0x2   :  { %s683_s25 = smov 0  }
   0x3 LB: > { %s25_s26 = sadd.s32 1, %s627_s23  ;;  %s28_s27 = sadd.s32 1, %s631_s24  ;;  %s635_s25 = sphi %s683_s25, %s16_s25   ;;  %s631_s24 = sphi %s681_s24, %s764_s24   ;;  %s627_s23 = sphi %s679_s23, %s763_s23   ;;  %s623_s22 = sphi %s677_s22, %s762_s22   ;;  %s619_s21 = sphi %s675_s21, %s761_s21  }
   0x4   : > { %p26_p0 = scmp.ge.s32.totalorder %s25_s26, 4  ;;  %p523_p1 = scmp.ge.s32.totalorder %s635_s25, 1 }
   0x5   : > { %p240_p2 = scmp.lt.s32.totalorder %s635_s25, 9 }
   0x6   : > { %s766_s26 = smov (%p26_p0, %s25_s26), 0  ;;  %s768_s27 = smov (!%p26_p0, %s28_s27), %s631_s24 }
   0x7   : > { %p241_p3 = pnand %p523_p1, %p240_p2  ;;  %p30_p4 = scmp.ge.s32.totalorder %s768_s27, 2 }
   0x8   : > { %p280_p5 = scmp.lt.s32.totalorder (!%p241_p3), %s619_s21, 3  ;;  %p282_p6 = scmp.lt.s32.totalorder (!%p241_p3), %s623_s22, 1 }
   0x9   : > { %s770_s27 = smov (%p30_p4, %s768_s27), 0  ;;  %244 = sbr.rel (%p241_p3) target bundleno = 548 (0x224), region = 44 }
   0xa   : > { %p529_p7 = scmp.ne.s32.totalorder (!%p241_p3), %s619_s21, 0 }
   0xe   : > { %s281_s28 = scalar_select %p280_p5, %s619_s21, 3 }
   0xf   : > { %s772_s22 = smov (!%p282_p6, %s623_s22), 1  ;;  %304 = sbr.rel (%p529_p7) target bundleno = 22 (0x16), region = 48 }
  0x10   : > { %s524_s29 = sshll.u32 %s281_s28, 1  ;;  %s526_s7 = sshll.u32 %s772_s22, 2 }
  0x11   : > { %s285_s30 = sadd.s32 %s524_s29, %s772_s22  ;;  %s708_s11 = scalar_lea.vmem %s755_s1, %s526_s7 }
  0x12   : > { %s525_s8 = sshll.u32 %s285_s30, 2 }
  0x13   : > { %s287_s14 = scalar_lea.vmem %s754_s0, %s525_s8  ;;  %s716_s17 = scalar_lea.vmem %s760_s6, %s525_s8 }
  0x14   : > { %vm305_vm0 = vcmask 261120   ;;  %v637_v0 = vmov 0.0  }
  0x15   : > { %306 = vst.msk [vmem:[#allocation2] sm:$0xff] %vm305_vm0, %v637_v0 }
  0x16 PF: > { %v593_v1 = vld [vmem:[%s756_s2 + $0x8] sm:$0xff]   ;;  %v638_v2 = vmov 0.0   ;;  %v594_v3 = vld [vmem:[%s756_s2] sm:$0xff]   ;;  %vm639_vm1 = vmmov 0   ;;  %vm331_vm2 = vcmask 261120   ;;  %vm419_vm4 = vcmask 257024  }
  0x17   : > { %542 = vmatprep.subr.bf16.mxu0 %v638_v2  ;;  %546 = vmatprep.mubr.msk.bf16.mxu0 %vm639_vm1, %v638_v2  ;;  %v307_v4 = vld [vmem:[%s287_s14] sm:$0xf] }
  0x18   : > { %543 = vmatpush3.bf16.msra.mxu0 %v593_v1  ;;  %v530_v5 = vld [vmem:[%s757_s3] ss:$0 sm:$0xff] }
  0x19   : > { %544 = vmatprep.subr.bf16.mxu0 %v638_v2  ;;  %v534_v21 = vld [vmem:[%s758_s4] ss:$0 sm:$0xff] }
  0x1a   : > { %v535_v23 = vld [vmem:[%s759_s5] ss:$0 sm:$0xff] }
  0x1b   : > { %v415_v28 = vld [vmem:[%s708_s11] sm:$0xf] }
  0x1c   : > { %545 = vmatpush3.bf16.msra.mxu0 %v594_v3  ;;  %v405_v25 = vld [vmem:[#allocation2] sm:$0xff]  ;;  %v416_v30 = vunpack.c.l.bf16 %v415_v28 }
  0x1f   : > { %547 = vmatmul.mubr.msk.bf16.vlgmr.msra.gmra.mxu0 %vm331_vm2, %v307_v4 }
  0xdf   : > { %v369_v6 = vpop.f32.mrf.mxu0 }
  0xe0   : > { %v370_v7 = vadd.f32 %v530_v5, %v369_v6 }
  0xe1   : > { %v548_v8 = vpop.f32.mrf.mxu0 }
  0xe2   : > { %v377_v9 = vsel %vm331_vm2, %v370_v7, 0.0 }
  0xe3   : > { %378 = vadd.xlane.f32.xlu0 %v377_v9  ;;  %v372_v10 = vpop.f32.mrf.mxu0 }
  0xe5   : > { %v549_v11 = vpop.f32.mrf.mxu0 }
 0x16c   : > { %v379_v12 = vpop.xlane.xlu0 %378 }
 0x16d   : > { %v381_v13 = vmul.f32 0.03125, %v379_v12 }
 0x16f   : > { %v382_v14 = vsub.f32 %v370_v7, %v381_v13 }
 0x171   : > { %v383_v15 = vmul.f32 %v382_v14, %v382_v14 }
 0x173   : > { %v384_v16 = vsel %vm331_vm2, %v383_v15, 0.0 }
 0x174   : > { %385 = vadd.xlane.f32.xlu0 %v384_v16 }
 0x1fd   : > { %v386_v17 = vpop.xlane.xlu0 %385 }
 0x1fe   : > { %v387_v18 = vmul.f32 0.03125, %v386_v17 }
 0x200   : > { %v388_v19 = vadd.f32 1e-05, %v387_v18 }
 0x202   : > { %595 = vrsqrt.f32 %v388_v19 }
 0x20f   : > { %v596_v20 = vpop.eup %595 }
 0x210   : > { %v390_v22 = vmul.f32 %v596_v20, %v382_v14 }
 0x212   : > { %v397_v24 = vmul.f32 %v534_v21, %v390_v22 }
 0x214   : > { %v404_v26 = vadd.f32 %v535_v23, %v397_v24 }
 0x216   : > { %v406_v27 = vsub.f32 %v404_v26, %v405_v25 }
 0x218   : > { %v407_v29 = vmul.f32 0.5, %v406_v27 }
 0x21a   : > { %v408_v31 = vadd.f32 %v407_v29, %v405_v25 }
 0x21c   : > { %vm409_vm3 = vcmp.ge.f32.partialorder %v408_v31, 1.0 }
 0x21d   : > { %v536_v32 = vsel %vm409_vm3, 1.0, %v638_v2 }
 0x21e   : > { %v412_v33 = vsub.f32 1.0, %v536_v32  ;;  %v417_v34 = vadd.f32 %v536_v32, %v416_v30 }
 0x220   : > { %v413_v35 = vmul.f32 %v412_v33, %v408_v31  ;;  %v418_v36 = vpack.c.bf16 %v417_v34, %v417_v34 }
 0x222   : > { %414 = vst.msk [vmem:[#allocation2] sm:$0xff] %vm331_vm2, %v413_v35 }
 0x223   : > { %420 = vst.msk [vmem:[%s716_s17] sm:$0xf] %vm419_vm4, %v418_v36 }
 0x224 PF: > { %s16_s25 = sadd.s32 1, %s635_s25   ;;  %s761_s21 = smov %s627_s23 }
 0x225   : > { %p13_p8 = scmp.ge.s32.totalorder %s16_s25, 10   ;;  %s762_s22 = smov %s631_s24 }
 0x226   : > { %s763_s23 = smov %s766_s26  ;;  %s764_s24 = smov %s770_s27 }
 0x227   :  { %15 = sbr.rel (!%p13_p8) target bundleno = 3 (0x3), region = 81 }

// kernel: spikformer_forward.12
= control target key start
LH: loop header
LB: loop body
LE: loop exit
PB: predicated region body
PF: predicated region fallthrough
CT: control target
= control target key end

     0   :  { %s2375_s6 = smov 0   ;;  %s2377_s7 = smov 0   ;;  %s2688_s0 = inlined_call_operand.vmem [shape: bf16[4,8,2,96], index: 0, kind: input, shape index: {}]   ;;  %s2689_s1 = inlined_call_operand.vmem [shape: bf16[4,8,2,32], index: 1, kind: output, shape index: {}]  }
   0x1   :  { %s2379_s8 = smov 0   ;;  %s2381_s9 = smov 0  }
   0x2   :  { %s2383_s10 = smov 0  }
   0x3 LB: > { %s20_s11 = sadd.s32 1, %s2337_s8  ;;  %s23_s12 = sadd.s32 1, %s2341_s9  ;;  %s2345_s10 = sphi %s2383_s10, %s11_s10   ;;  %s2341_s9 = sphi %s2381_s9, %s2693_s9   ;;  %s2337_s8 = sphi %s2379_s8, %s2692_s8   ;;  %s2333_s7 = sphi %s2377_s7, %s2691_s7   ;;  %s2329_s6 = sphi %s2375_s6, %s2690_s6  }
   0x4   : > { %p21_p0 = scmp.ge.s32.totalorder %s20_s11, 4  ;;  %p1965_p1 = scmp.ge.s32.totalorder %s2345_s10, 1 }
   0x5   : > { %p107_p2 = scmp.lt.s32.totalorder %s2345_s10, 9 }
   0x6   : > { %s2695_s11 = smov (%p21_p0, %s20_s11), 0  ;;  %s2697_s12 = smov (!%p21_p0, %s23_s12), %s2341_s9 }
   0x7   : > { %p108_p3 = pnand %p1965_p1, %p107_p2  ;;  %p25_p4 = scmp.ge.s32.totalorder %s2697_s12, 2 }
   0x8   : > { %s1966_s13 = sshll.u32 (!%p108_p3), %s2333_s7, 2  ;;  %p134_p5 = scmp.lt.s32.totalorder (!%p108_p3), %s2329_s6, 3 }
   0x9   : > { %s2699_s12 = smov (%p25_p4, %s2697_s12), 0  ;;  %111 = sbr.rel (%p108_p3) target bundleno = 1321 (0x529), region = 24 }
   0xa   : > { %p136_p6 = scmp.lt.s32.totalorder (!%p108_p3), %s1966_s13, 7  ;;  %p1970_p7 = scmp.ne.s32.totalorder (!%p108_p3), %s2329_s6, 0 }
   0xe   : > { %s135_s14 = scalar_select %p134_p5, %s2329_s6, 3 }
   0xf   : > { %s2701_s13 = smov (!%p136_p6, %s1966_s13), 7  ;;  %155 = sbr.rel (%p1970_p7) target bundleno = 23 (0x17), region = 28 }
  0x10   : > { %s1967_s15 = sshll.u32 %s135_s14, 3 }
  0x11   : > { %s139_s16 = sadd.s32 %s1967_s15, %s2701_s13 }
  0x12   : > { %s140_s19 = scalar_lea.vmem %s2688_s0, %s139_s16  ;;  %s2411_s22 = scalar_lea.vmem %s2689_s1, %s139_s16 }
  0x14   : > { %vm156_vm0 = vcmask 254976   ;;  %v2347_v0 = vmov 0.0  }
  0x15   : > { %157 = vst.msk [vmem:[#allocation3] sm:$0x3] %vm156_vm0, %v2347_v0  ;;  %158 = vst.msk [vmem:[#allocation3 + $0x2] sm:$0x3] %vm156_vm0, %v2347_v0 }
  0x16   : > { %159 = vst.msk [vmem:[#allocation3 + $0x4] sm:$0x3] %vm156_vm0, %v2347_v0  ;;  %160 = vst.msk [vmem:[#allocation3 + $0x6] sm:$0x3] %vm156_vm0, %v2347_v0 }
  0x17 PF: > { %v169_v1 = vlaneseq  ;;  %v2348_v2 = vmov 1966171168   ;;  %v2349_v4 = vmov 0.0   ;;  %v161_v6 = vld [vmem:[%s140_s19] sm:$0x1]  ;;  %vm2350_vm1 = vmmov 0  }
  0x18   : > { %v167_v3 = vunpack.c.l.s4 %v2348_v2  ;;  %2073 = vmatprep.subr.bf16.mxu0 %v2349_v4  ;;  %2079 = vmatprep.subr.bf16.mxu1 %v2349_v4  ;;  %v162_v8 = vld [vmem:[%s140_s19 + $0x1] sm:$0x1]  ;;  %v163_v9 = vld [vmem:[%s140_s19 + $0x2] sm:$0x1]  ;;  %v2415_v10 = vld [vmem:[%s140_s19 + $0x3] sm:$0x1] }
  0x19   : > { %v170_v5 = vshrl.u32 %v169_v1, 7  ;;  %2075 = vmatprep.mubr.msk.bf16.mxu0 %vm2350_vm1, %v2349_v4  ;;  %2081 = vmatprep.mubr.msk.bf16.mxu1 %vm2350_vm1, %v2349_v4  ;;  %s2351_s23 = smov 96   ;;  %s2352_s24 = smov 64   ;;  %vm182_vm2 = vcmask 64512   ;;  %vm424_vm3 = vcmask 1040384   ;;  %vm420_vm4 = vcmask 15360  }
  0x1a   : > { %v168_v7 = vunpack.c.0.s8 %v167_v3  ;;  %s2353_s25 = smov 88   ;;  %s2354_s26 = smov 120   ;;  %vm1808_vm5 = vcmask 130048   ;;  %vm1813_vm6 = vcmask 195584   ;;  %vm1822_vm7 = vcmask 254976  }
  0x1b   : > { %s2355_s27 = smov 56   ;;  %s2356_s28 = smov 80   ;;  %vm1875_vm9 = vcmask 253952  }
  0x1c   : > { %v171_v11 = vsub.s32 %v168_v7, %v170_v5  ;;  %s2357_s29 = smov 112   ;;  %s2358_s30 = smov 48  }
  0x1d   : > { %s2359_s2 = smov 72   ;;  %s2360_s3 = smov 104  }
  0x1e   : > { %v172_v12 = vrot.slane %v161_v6, %v171_v11  ;;  %v236_v13 = vrot.slane %v162_v8, %v171_v11  ;;  %v299_v14 = vrot.slane %v163_v9, %v171_v11  ;;  %v362_v15 = vrot.slane %v2415_v10, %v171_v11  ;;  %s2361_s4 = smov 40   ;;  %s2362_s5 = smov 8  }
  0x1f   : > { %s2363_s6 = smov 16   ;;  %s2364_s7 = smov 24  }
  0x20   : > { %v2422_v16 = vrot.slane %v172_v12, %v171_v11  ;;  %v2424_v17 = vrot.slane %v299_v14, %v171_v11  ;;  %v2427_v18 = vrot.slane %v236_v13, %v171_v11  ;;  %v2430_v19 = vrot.slane %v362_v15, %v171_v11 }
  0x22   : > { %180 = vrot.lane.b32.xlu0 %v2422_v16, %s2351_s23  ;;  %307 = vrot.lane.b32.xlu1 %v2424_v17, %s2351_s23 }
  0x26   : > { %244 = vrot.lane.b32.xlu0 %v2427_v18, %s2351_s23  ;;  %370 = vrot.lane.b32.xlu1 %v2430_v19, %s2351_s23 }
  0x2a   : > { %418 = vrot.lane.b32.xlu0 %v2422_v16, %s2352_s24  ;;  %466 = vrot.lane.b32.xlu1 %v2427_v18, %s2352_s24 }
  0x2e   : > { %512 = vrot.lane.b32.xlu0 %v2424_v17, %s2352_s24  ;;  %558 = vrot.lane.b32.xlu1 %v2430_v19, %s2352_s24 }
  0x32   : > { %606 = vrot.lane.b32.xlu0 %v2422_v16, %s2353_s25  ;;  %656 = vrot.lane.b32.xlu1 %v2427_v18, %s2353_s25 }
  0x36   : > { %604 = vrot.lane.b32.xlu0 %v2422_v16, %s2354_s26  ;;  %654 = vrot.lane.b32.xlu1 %v2427_v18, %s2354_s26 }
  0x3a   : > { %706 = vrot.lane.b32.xlu0 %v2424_v17, %s2353_s25  ;;  %756 = vrot.lane.b32.xlu1 %v2430_v19, %s2353_s25 }
  0x3e   : > { %704 = vrot.lane.b32.xlu0 %v2424_v17, %s2354_s26  ;;  %754 = vrot.lane.b32.xlu1 %v2430_v19, %s2354_s26 }
  0x42   : > { %804 = vrot.lane.b32.xlu0 %v2422_v16, %s2355_s27  ;;  %850 = vrot.lane.b32.xlu1 %v2427_v18, %s2355_s27 }
  0x46   : > { %896 = vrot.lane.b32.xlu0 %v2424_v17, %s2355_s27  ;;  %942 = vrot.lane.b32.xlu1 %v2430_v19, %s2355_s27 }
  0x4a   : > { %990 = vrot.lane.b32.xlu0 %v2422_v16, %s2356_s28  ;;  %1040 = vrot.lane.b32.xlu1 %v2427_v18, %s2356_s28 }
  0x4e   : > { %988 = vrot.lane.b32.xlu0 %v2422_v16, %s2357_s29  ;;  %1038 = vrot.lane.b32.xlu1 %v2427_v18, %s2357_s29 }
  0x52   : > { %1090 = vrot.lane.b32.xlu0 %v2424_v17, %s2356_s28  ;;  %1140 = vrot.lane.b32.xlu1 %v2430_v19, %s2356_s28 }
  0x56   : > { %1088 = vrot.lane.b32.xlu0 %v2424_v17, %s2357_s29  ;;  %1138 = vrot.lane.b32.xlu1 %v2430_v19, %s2357_s29 }
  0x5a   : > { %1188 = vrot.lane.b32.xlu0 %v2422_v16, %s2358_s30  ;;  %1234 = vrot.lane.b32.xlu1 %v2427_v18, %s2358_s30 }
  0x5e   : > { %1280 = vrot.lane.b32.xlu0 %v2424_v17, %s2358_s30  ;;  %1326 = vrot.lane.b32.xlu1 %v2430_v19, %s2358_s30 }
  0x62   : > { %1374 = vrot.lane.b32.xlu0 %v2422_v16, %s2359_s2  ;;  %1424 = vrot.lane.b32.xlu1 %v2427_v18, %s2359_s2 }
  0x66   : > { %1372 = vrot.lane.b32.xlu0 %v2422_v16, %s2360_s3  ;;  %1422 = vrot.lane.b32.xlu1 %v2427_v18, %s2360_s3 }
  0x6a   : > { %1474 = vrot.lane.b32.xlu0 %v2424_v17, %s2359_s2  ;;  %1524 = vrot.lane.b32.xlu1 %v2430_v19, %s2359_s2 }
  0x6e   : > { %1472 = vrot.lane.b32.xlu0 %v2424_v17, %s2360_s3  ;;  %1522 = vrot.lane.b32.xlu1 %v2430_v19, %s2360_s3 }
  0x72   : > { %1572 = vrot.lane.b32.xlu0 %v2422_v16, %s2361_s4  ;;  %1618 = vrot.lane.b32.xlu1 %v2427_v18, %s2361_s4 }
  0x76   : > { %1664 = vrot.lane.b32.xlu0 %v2424_v17, %s2361_s4  ;;  %1710 = vrot.lane.b32.xlu1 %v2430_v19, %s2361_s4 }
  0x94   : > { %v181_v20 = vpop.permute.xlu0 %180  ;;  %v308_v22 = vpop.permute.xlu1 %307 }
  0x95   : > { %v187_v21 = vsel %vm182_vm2, %v181_v20, 0  ;;  %v313_v25 = vsel %vm182_vm2, %v308_v22, 0 }
  0x96   : > { %2074 = vmatpush3.bf16.xpose.msra.mxu0 %v187_v21 }
  0x97   : > { %2085 = vmatprep.subr.bf16.mxu0 %v2349_v4 }
  0x98   : > { %v245_v23 = vpop.permute.xlu0 %244  ;;  %v371_v26 = vpop.permute.xlu1 %370 }
  0x99   : > { %v250_v24 = vsel %vm182_vm2, %v245_v23, 0  ;;  %v376_v27 = vsel %vm182_vm2, %v371_v26, 0 }
  0x9a   : > { %2080 = vmatpush3.bf16.xpose.msra.mxu1 %v250_v24 }
  0x9b   : > { %2091 = vmatprep.subr.bf16.mxu1 %v2349_v4 }
  0x9c   : > { %v419_v28 = vpop.permute.xlu0 %418  ;;  %v467_v30 = vpop.permute.xlu1 %466 }
  0x9d   : > { %2076 = vmatmul.mubr.msk.bf16.vlgmr.msra.gmra.mxu0 %vm182_vm2, %v161_v6  ;;  %v426_v29 = vsel %vm424_vm3, %v419_v28, 0  ;;  %v472_v31 = vsel %vm424_vm3, %v467_v30, 0 }
  0x9e   : > { %2086 = vmatpush3.bf16.xpose.msra.mxu0 %v313_v25  ;;  %2087 = vmatprep.mubr.msk.bf16.mxu0 %vm2350_vm1, %v2349_v4 }
  0x9f   : > { %2097 = vmatprep.subr.bf16.mxu0 %v2349_v4 }
  0xa0   : > { %v513_v32 = vpop.permute.xlu0 %512  ;;  %v559_v33 = vpop.permute.xlu1 %558 }
  0xa1   : > { %2082 = vmatmul.mubr.msk.bf16.vlgmr.msra.gmra.mxu1 %vm182_vm2, %v162_v8  ;;  %v518_v34 = vsel %vm424_vm3, %v513_v32, 0  ;;  %v564_v38 = vsel %vm424_vm3, %v559_v33, 0 }
  0xa2   : > { %2092 = vmatpush3.bf16.xpose.msra.mxu1 %v376_v27  ;;  %2093 = vmatprep.mubr.msk.bf16.mxu1 %vm2350_vm1, %v2349_v4 }
  0xa3   : > { %2102 = vmatprep.subr.bf16.mxu1 %v2349_v4 }
  0xa4   : > { %v607_v35 = vpop.permute.xlu0 %606  ;;  %v657_v39 = vpop.permute.xlu1 %656 }
  0xa5   : > { %2088 = vmatmul.mubr.msk.bf16.vlgmr.msra.gmra.mxu0 %vm182_vm2, %v163_v9  ;;  %v612_v45 = vsel %vm182_vm2, %v607_v35, 0  ;;  %v662_v51 = vsel %vm182_vm2, %v657_v39, 0 }
  0xa6   : > { %2098 = vmatpush3.bf16.msra.mxu0 %v426_v29  ;;  %2099 = vmatprep.mubr.msk.f32.mxu0 %vm2350_vm1, %v2349_v4 }
  0xa7   : > { %2107 = vmatprep.subr.bf16.mxu0 %v2349_v4 }
  0xa8   : > { %v605_v42 = vpop.permute.xlu0 %604  ;;  %v655_v48 = vpop.permute.xlu1 %654 }
  0xa9   : > { %2094 = vmatmul.mubr.msk.bf16.vlgmr.msra.gmra.mxu1 %vm182_vm2, %v2415_v10 }
  0xaa   : > { %2103 = vmatpush3.bf16.msra.mxu1 %v472_v31  ;;  %2104 = vmatprep.mubr.msk.f32.mxu1 %vm2350_vm1, %v2349_v4 }
  0xab   : > { %2112 = vmatprep.subr.bf16.mxu1 %v2349_v4 }
  0xac   : > { %v707_v52 = vpop.permute.xlu0 %706  ;;  %v757_v59 = vpop.permute.xlu1 %756 }
  0xad   : > { %v712_v57 = vsel %vm182_vm2, %v707_v52, 0  ;;  %v762_v61 = vsel %vm182_vm2, %v757_v59, 0 }
  0xb0   : > { %v705_v62 = vpop.permute.xlu0 %704  ;;  %v755_v63 = vpop.permute.xlu1 %754 }
  0xb4   : > { %v805_v0 = vpop.permute.xlu0 %804  ;;  %v851_v2 = vpop.permute.xlu1 %850 }
  0xb5   : > { %v810_v1 = vsel %vm424_vm3, %v805_v0, 0  ;;  %v856_v3 = vsel %vm424_vm3, %v851_v2, 0 }
  0xb8   : > { %v897_v10 = vpop.permute.xlu0 %896  ;;  %v943_v13 = vpop.permute.xlu1 %942 }
  0xb9   : > { %v902_v15 = vsel %vm424_vm3, %v897_v10, 0  ;;  %v948_v19 = vsel %vm424_vm3, %v943_v13, 0 }
  0xbc   : > { %v991_v16 = vpop.permute.xlu0 %990  ;;  %v1041_v20 = vpop.permute.xlu1 %1040 }
  0xbd   : > { %v996_v26 = vsel %vm182_vm2, %v991_v16, 0  ;;  %v1046_v32 = vsel %vm182_vm2, %v1041_v20, 0 }
  0xc0   : > { %v989_v23 = vpop.permute.xlu0 %988  ;;  %v1039_v29 = vpop.permute.xlu1 %1038 }
  0xc4   : > { %v1091_v33 = vpop.permute.xlu0 %1090 }
 0x15d   : > { %v223_v36 = vpop.f32.mrf.mxu0 }
 0x15e   : > { %2100 = vmatmul.mubr.msk.f32.vlgmr.msra.gmra.mxu0 %vm420_vm4, %v223_v36 }
 0x15f   : > { %v2077_v37 = vpop.f32.mrf.mxu0  ;;  %2108 = vmatpush3.bf16.msra.mxu0 %v518_v34  ;;  %2109 = vmatprep.mubr.msk.f32.mxu0 %vm2350_vm1, %v2349_v4 }
 0x160   : > { %2117 = vmatprep.subr.bf16.mxu0 %v2349_v4 }
 0x161   : > { %v226_v40 = vpop.f32.mrf.mxu0  ;;  %v286_v41 = vpop.f32.mrf.mxu1 }
 0x162   : > { %2105 = vmatmul.mubr.msk.f32.vlgmr.msra.gmra.mxu1 %vm420_vm4, %v286_v41  ;;  %v1141_v40 = vpop.permute.xlu1 %1140 }
 0x163   : > { %v2078_v43 = vpop.f32.mrf.mxu0  ;;  %v2083_v44 = vpop.f32.mrf.mxu1  ;;  %2113 = vmatpush3.bf16.msra.mxu1 %v564_v38  ;;  %2114 = vmatprep.mubr.msk.f32.mxu1 %vm2350_vm1, %v2349_v4  ;;  %v1096_v38 = vsel %vm182_vm2, %v1091_v33, 0 }
 0x164   : > { %2123 = vmatprep.subr.bf16.mxu1 %v2349_v4  ;;  %v1089_v43 = vpop.permute.xlu0 %1088 }
 0x165   : > { %v289_v46 = vpop.f32.mrf.mxu1  ;;  %v349_v47 = vpop.f32.mrf.mxu0 }
 0x166   : > { %2110 = vmatmul.mubr.msk.f32.vlgmr.msra.gmra.mxu0 %vm420_vm4, %v349_v47  ;;  %v1139_v44 = vpop.permute.xlu1 %1138 }
 0x167   : > { %2118 = vmatpush3.bf16.xpose.msra.mxu0 %v612_v45  ;;  %v2084_v49 = vpop.f32.mrf.mxu1  ;;  %v2089_v50 = vpop.f32.mrf.mxu0  ;;  %2119 = vmatprep.mubr.msk.bf16.mxu0 %vm2350_vm1, %v2349_v4 }
 0x168   : > { %2129 = vmatprep.subr.bf16.mxu0 %v2349_v4  ;;  %v1189_v45 = vpop.permute.xlu0 %1188 }
 0x169   : > { %v352_v53 = vpop.f32.mrf.mxu0  ;;  %v412_v54 = vpop.f32.mrf.mxu1  ;;  %v1194_v46 = vsel %vm424_vm3, %v1189_v45, 0 }
 0x16a   : > { %2115 = vmatmul.mubr.msk.f32.vlgmr.msra.gmra.mxu1 %vm420_vm4, %v412_v54  ;;  %v1235_v47 = vpop.permute.xlu1 %1234 }
 0x16b   : > { %2124 = vmatpush3.bf16.xpose.msra.mxu1 %v662_v51  ;;  %v2090_v55 = vpop.f32.mrf.mxu0  ;;  %v2095_v56 = vpop.f32.mrf.mxu1  ;;  %2125 = vmatprep.mubr.msk.bf16.mxu1 %vm2350_vm1, %v2349_v4 }
 0x16c   : > { %2135 = vmatprep.subr.bf16.mxu1 %v2349_v4  ;;  %v1281_v54 = vpop.permute.xlu0 %1280 }
 0x16d   : > { %v415_v58 = vpop.f32.mrf.mxu1  ;;  %v1286_v59 = vsel %vm424_vm3, %v1281_v54, 0 }
 0x16e   : > { %2120 = vmatmul.mubr.msk.bf16.vlgmr.msra.gmra.mxu0 %vm182_vm2, %v605_v42  ;;  %v1146_v42 = vsel %vm182_vm2, %v1141_v40, 0 }
 0x16f   : > { %2130 = vmatpush3.bf16.xpose.msra.mxu0 %v712_v57  ;;  %v2096_v60 = vpop.f32.mrf.mxu1  ;;  %2131 = vmatprep.mubr.msk.bf16.mxu0 %vm2350_vm1, %v2349_v4  ;;  %v1327_v57 = vpop.permute.xlu1 %1326 }
 0x170   : > { %2141 = vmatprep.subr.bf16.mxu0 %v2349_v4  ;;  %v1375_v60 = vpop.permute.xlu0 %1374 }
 0x171   : > { %v1380_v10 = vsel %vm182_vm2, %v1375_v60, 0 }
 0x172   : > { %2126 = vmatmul.mubr.msk.bf16.vlgmr.msra.gmra.mxu1 %vm182_vm2, %v655_v48  ;;  %v1240_v48 = vsel %vm424_vm3, %v1235_v47, 0 }
 0x173   : > { %2136 = vmatpush3.bf16.xpose.msra.mxu1 %v762_v61  ;;  %2137 = vmatprep.mubr.msk.bf16.mxu1 %vm2350_vm1, %v2349_v4  ;;  %v1425_v0 = vpop.permute.xlu1 %1424 }
 0x174   : > { %2146 = vmatprep.subr.bf16.mxu1 %v2349_v4 }
 0x176   : > { %2132 = vmatmul.mubr.msk.bf16.vlgmr.msra.gmra.mxu0 %vm182_vm2, %v705_v62 }
 0x177   : > { %2143 = vmatprep.mubr.msk.f32.mxu0 %vm2350_vm1, %v2349_v4  ;;  %2142 = vmatpush3.bf16.msra.mxu0 %v810_v1 }
 0x178   : > { %2151 = vmatprep.subr.bf16.mxu0 %v2349_v4 }
 0x17a   : > { %2138 = vmatmul.mubr.msk.bf16.vlgmr.msra.gmra.mxu1 %vm182_vm2, %v755_v63  ;;  %v1332_v63 = vsel %vm424_vm3, %v1327_v57, 0 }
 0x17b   : > { %2148 = vmatprep.mubr.msk.f32.mxu1 %vm2350_vm1, %v2349_v4  ;;  %2147 = vmatpush3.bf16.msra.mxu1 %v856_v3  ;;  %v1373_v3 = vpop.permute.xlu0 %1372 }
 0x17c   : > { %2156 = vmatprep.subr.bf16.mxu1 %v2349_v4 }
 0x21e   : > { %v2539_v5 = vpop.f32.mrf.mxu0 }
 0x220   : > { %v2101_v6 = vpop.f32.mrf.mxu0 }
 0x222   : > { %v2541_v7 = vpop.f32.mrf.mxu1 }
 0x224   : > { %v2106_v8 = vpop.f32.mrf.mxu1 }
 0x226   : > { %v2543_v9 = vpop.f32.mrf.mxu0 }
 0x228   : > { %v2111_v11 = vpop.f32.mrf.mxu0 }
 0x22a   : > { %v2545_v12 = vpop.f32.mrf.mxu1 }
 0x22c   : > { %v2116_v14 = vpop.f32.mrf.mxu1 }
 0x22d   : > { %v1423_v14 = vpop.permute.xlu1 %1422 }
 0x22e   : > { %v648_v17 = vpop.f32.mrf.mxu0 }
 0x22f   : > { %2144 = vmatmul.mubr.msk.f32.vlgmr.msra.gmra.mxu0 %vm420_vm4, %v648_v17  ;;  %v1430_v17 = vsel %vm182_vm2, %v1425_v0, 0 }
 0x230   : > { %v2121_v18 = vpop.f32.mrf.mxu0  ;;  %2152 = vmatpush3.bf16.msra.mxu0 %v902_v15  ;;  %2153 = vmatprep.mubr.msk.f32.mxu0 %vm2350_vm1, %v2349_v4 }
 0x231   : > { %2161 = vmatprep.subr.bf16.mxu0 %v2349_v4  ;;  %v1475_v18 = vpop.permute.xlu0 %1474 }
 0x232   : > { %v651_v21 = vpop.f32.mrf.mxu0  ;;  %v698_v22 = vpop.f32.mrf.mxu1 }
 0x233   : > { %2149 = vmatmul.mubr.msk.f32.vlgmr.msra.gmra.mxu1 %vm420_vm4, %v698_v22 }
 0x234   : > { %v2122_v24 = vpop.f32.mrf.mxu0  ;;  %v2127_v25 = vpop.f32.mrf.mxu1  ;;  %2157 = vmatpush3.bf16.msra.mxu1 %v948_v19  ;;  %2158 = vmatprep.mubr.msk.f32.mxu1 %vm2350_vm1, %v2349_v4 }
 0x235   : > { %2167 = vmatprep.subr.bf16.mxu1 %v2349_v4  ;;  %v1525_v25 = vpop.permute.xlu1 %1524 }
 0x236   : > { %v701_v27 = vpop.f32.mrf.mxu1  ;;  %v748_v28 = vpop.f32.mrf.mxu0 }
 0x237   : > { %2154 = vmatmul.mubr.msk.f32.vlgmr.msra.gmra.mxu0 %vm420_vm4, %v748_v28  ;;  %v1473_v27 = vpop.permute.xlu0 %1472  ;;  %v1530_v28 = vsel %vm182_vm2, %v1525_v25, 0 }
 0x238   : > { %2162 = vmatpush3.bf16.xpose.msra.mxu0 %v996_v26  ;;  %v2128_v30 = vpop.f32.mrf.mxu1  ;;  %v2133_v31 = vpop.f32.mrf.mxu0  ;;  %2163 = vmatprep.mubr.msk.bf16.mxu0 %vm2350_vm1, %v2349_v4 }
 0x239   : > { %2173 = vmatprep.subr.bf16.mxu0 %v2349_v4 }
 0x23a   : > { %v751_v34 = vpop.f32.mrf.mxu0  ;;  %v798_v35 = vpop.f32.mrf.mxu1 }
 0x23b   : > { %2159 = vmatmul.mubr.msk.f32.vlgmr.msra.gmra.mxu1 %vm420_vm4, %v798_v35  ;;  %v1573_v30 = vpop.permute.xlu0 %1572 }
 0x23c   : > { %2168 = vmatpush3.bf16.xpose.msra.mxu1 %v1046_v32  ;;  %v2134_v36 = vpop.f32.mrf.mxu0  ;;  %v2139_v37 = vpop.f32.mrf.mxu1  ;;  %2169 = vmatprep.mubr.msk.bf16.mxu1 %vm2350_vm1, %v2349_v4  ;;  %v1578_v31 = vsel %vm424_vm3, %v1573_v30, 0 }
 0x23d   : > { %2179 = vmatprep.subr.bf16.mxu1 %v2349_v4 }
 0x23e   : > { %v801_v39 = vpop.f32.mrf.mxu1 }
 0x23f   : > { %2164 = vmatmul.mubr.msk.bf16.vlgmr.msra.gmra.mxu0 %vm182_vm2, %v989_v23  ;;  %v1480_v23 = vsel %vm182_vm2, %v1475_v18, 0 }
 0x240   : > { %2174 = vmatpush3.bf16.xpose.msra.mxu0 %v1096_v38  ;;  %v2140_v41 = vpop.f32.mrf.mxu1  ;;  %2175 = vmatprep.mubr.msk.bf16.mxu0 %vm2350_vm1, %v2349_v4 }
 0x241   : > { %2185 = vmatprep.subr.bf16.mxu0 %v2349_v4  ;;  %v1665_v41 = vpop.permute.xlu0 %1664 }
 0x243   : > { %2170 = vmatmul.mubr.msk.bf16.vlgmr.msra.gmra.mxu1 %vm182_vm2, %v1039_v29  ;;  %v1523_v29 = vpop.permute.xlu1 %1522 }
 0x244   : > { %2180 = vmatpush3.bf16.xpose.msra.mxu1 %v1146_v42  ;;  %2181 = vmatprep.mubr.msk.bf16.mxu1 %vm2350_vm1, %v2349_v4 }
 0x245   : > { %2190 = vmatprep.subr.bf16.mxu1 %v2349_v4 }
 0x247   : > { %2176 = vmatmul.mubr.msk.bf16.vlgmr.msra.gmra.mxu0 %vm182_vm2, %v1089_v43  ;;  %v1619_v32 = vpop.permute.xlu1 %1618  ;;  %v1670_v43 = vsel %vm424_vm3, %v1665_v41, 0 }
 0x248   : > { %2187 = vmatprep.mubr.msk.f32.mxu0 %vm2350_vm1, %v2349_v4  ;;  %2186 = vmatpush3.bf16.msra.mxu0 %v1194_v46  ;;  %v1624_v33 = vsel %vm424_vm3, %v1619_v32, 0 }
 0x249   : > { %2195 = vmatprep.subr.bf16.mxu0 %v2349_v4 }
 0x24b   : > { %2182 = vmatmul.mubr.msk.bf16.vlgmr.msra.gmra.mxu1 %vm182_vm2, %v1139_v44  ;;  %v1711_v45 = vpop.permute.xlu1 %1710 }
 0x24c   : > { %2192 = vmatprep.mubr.msk.f32.mxu1 %vm2350_vm1, %v2349_v4  ;;  %2191 = vmatpush3.bf16.msra.mxu1 %v1240_v48  ;;  %v1716_v47 = vsel %vm424_vm3, %v1711_v45, 0 }
 0x24d   : > { %2200 = vmatprep.subr.bf16.mxu1 %v2349_v4 }
 0x2ef   : > { %v846_v49 = vpop.f32.mrf.mxu0 }
 0x2f0   : > { %1760 = vrot.lane.b32.xlu0 %v846_v49, %s2362_s5 }
 0x2f1   : > { %v2145_v50 = vpop.f32.mrf.mxu0 }
 0x2f3   : > { %v892_v51 = vpop.f32.mrf.mxu1 }
 0x2f4   : > { %1762 = vrot.lane.b32.xlu1 %v892_v51, %s2362_s5 }
 0x2f5   : > { %v2150_v52 = vpop.f32.mrf.mxu1 }
 0x2f7   : > { %v938_v53 = vpop.f32.mrf.mxu0 }
 0x2f8   : > { %1764 = vrot.lane.b32.xlu0 %v938_v53, %s2362_s5 }
 0x2f9   : > { %v2155_v55 = vpop.f32.mrf.mxu0 }
 0x2fb   : > { %v984_v56 = vpop.f32.mrf.mxu1 }
 0x2fc   : > { %1766 = vrot.lane.b32.xlu1 %v984_v56, %s2362_s5 }
 0x2fd   : > { %v2160_v58 = vpop.f32.mrf.mxu1 }
 0x2ff   : > { %v1032_v61 = vpop.f32.mrf.mxu0 }
 0x300   : > { %2188 = vmatmul.mubr.msk.f32.vlgmr.msra.gmra.mxu0 %vm420_vm4, %v1032_v61 }
 0x301   : > { %v2165_v62 = vpop.f32.mrf.mxu0  ;;  %2196 = vmatpush3.bf16.msra.mxu0 %v1286_v59  ;;  %2197 = vmatprep.mubr.msk.f32.mxu0 %vm2350_vm1, %v2349_v4 }
 0x302   : > { %2205 = vmatprep.subr.bf16.mxu0 %v2349_v4 }
 0x303   : > { %v1035_v1 = vpop.f32.mrf.mxu0  ;;  %v1082_v2 = vpop.f32.mrf.mxu1 }
 0x304   : > { %2193 = vmatmul.mubr.msk.f32.vlgmr.msra.gmra.mxu1 %vm420_vm4, %v1082_v2 }
 0x305   : > { %v2166_v6 = vpop.f32.mrf.mxu0  ;;  %v2171_v8 = vpop.f32.mrf.mxu1  ;;  %2201 = vmatpush3.bf16.msra.mxu1 %v1332_v63  ;;  %2202 = vmatprep.mubr.msk.f32.mxu1 %vm2350_vm1, %v2349_v4 }
 0x306   : > { %2211 = vmatprep.subr.bf16.mxu1 %v2349_v4 }
 0x307   : > { %v1085_v11 = vpop.f32.mrf.mxu1  ;;  %v1132_v13 = vpop.f32.mrf.mxu0 }
 0x308   : > { %2198 = vmatmul.mubr.msk.f32.vlgmr.msra.gmra.mxu0 %vm420_vm4, %v1132_v13 }
 0x309   : > { %2206 = vmatpush3.bf16.xpose.msra.mxu0 %v1380_v10  ;;  %v2172_v15 = vpop.f32.mrf.mxu1  ;;  %v2177_v16 = vpop.f32.mrf.mxu0  ;;  %2207 = vmatprep.mubr.msk.bf16.mxu0 %vm2350_vm1, %v2349_v4 }
 0x30a   : > { %2217 = vmatprep.subr.bf16.mxu0 %v2349_v4 }
 0x30b   : > { %v1135_v19 = vpop.f32.mrf.mxu0  ;;  %v1182_v20 = vpop.f32.mrf.mxu1 }
 0x30c   : > { %2203 = vmatmul.mubr.msk.f32.vlgmr.msra.gmra.mxu1 %vm420_vm4, %v1182_v20 }
 0x30d   : > { %2212 = vmatpush3.bf16.xpose.msra.mxu1 %v1430_v17  ;;  %v2178_v21 = vpop.f32.mrf.mxu0  ;;  %v2183_v22 = vpop.f32.mrf.mxu1  ;;  %2213 = vmatprep.mubr.msk.bf16.mxu1 %vm2350_vm1, %v2349_v4 }
 0x30e   : > { %2223 = vmatprep.subr.bf16.mxu1 %v2349_v4 }
 0x30f   : > { %v1185_v24 = vpop.f32.mrf.mxu1 }
 0x310   : > { %2208 = vmatmul.mubr.msk.bf16.vlgmr.msra.gmra.mxu0 %vm182_vm2, %v1373_v3 }
 0x311   : > { %2218 = vmatpush3.bf16.xpose.msra.mxu0 %v1480_v23  ;;  %v2184_v26 = vpop.f32.mrf.mxu1  ;;  %2219 = vmatprep.mubr.msk.bf16.mxu0 %vm2350_vm1, %v2349_v4 }
 0x312   : > { %2229 = vmatprep.subr.bf16.mxu0 %v2349_v4 }
 0x314   : > { %2214 = vmatmul.mubr.msk.bf16.vlgmr.msra.gmra.mxu1 %vm182_vm2, %v1423_v14 }
 0x315   : > { %2224 = vmatpush3.bf16.xpose.msra.mxu1 %v1530_v28  ;;  %2225 = vmatprep.mubr.msk.bf16.mxu1 %vm2350_vm1, %v2349_v4 }
 0x316   : > { %2234 = vmatprep.subr.bf16.mxu1 %v2349_v4 }
 0x318   : > { %2220 = vmatmul.mubr.msk.bf16.vlgmr.msra.gmra.mxu0 %vm182_vm2, %v1473_v27 }
 0x319   : > { %2230 = vmatpush3.bf16.msra.mxu0 %v1578_v31  ;;  %2231 = vmatprep.mubr.msk.f32.mxu0 %vm2350_vm1, %v2349_v4  ;;  %v1831_v31 = vld [vmem:[#allocation3] sm:$0x3] }
 0x31a   : > { %2239 = vmatprep.subr.bf16.mxu0 %v2349_v4 }
 0x31c   : > { %2226 = vmatmul.mubr.msk.bf16.vlgmr.msra.gmra.mxu1 %vm182_vm2, %v1523_v29 }
 0x31d   : > { %2235 = vmatpush3.bf16.msra.mxu1 %v1624_v33  ;;  %2236 = vmatprep.mubr.msk.f32.mxu1 %vm2350_vm1, %v2349_v4 }
 0x31e   : > { %2244 = vmatprep.subr.bf16.mxu1 %v2349_v4 }
 0x362   : > { %v1761_v10 = vpop.permute.xlu0 %1760 }
 0x363   : > { %v1804_v18 = vsel %vm182_vm2, %v2539_v5, %v1761_v10 }
 0x366   : > { %v1763_v11 = vpop.permute.xlu1 %1762 }
 0x367   : > { %v1805_v24 = vsel %vm182_vm2, %v2541_v7, %v1763_v11 }
 0x36a   : > { %v1765_v13 = vpop.permute.xlu0 %1764 }
 0x36b   : > { %v1806_v5 = vsel %vm182_vm2, %v2543_v9, %v1765_v13  ;;  %v1832_v9 = vld [vmem:[#allocation3 + $0x2] sm:$0x3] }
 0x36e   : > { %v1767_v14 = vpop.permute.xlu1 %1766 }
 0x36f   : > { %v1807_v33 = vsel %vm182_vm2, %v2545_v12, %v1767_v14 }
 0x3c0   : > { %v1230_v34 = vpop.f32.mrf.mxu0 }
 0x3c1   : > { %1776 = vrot.lane.b32.xlu0 %v1230_v34, %s2363_s6 }
 0x3c2   : > { %v2189_v35 = vpop.f32.mrf.mxu0 }
 0x3c4   : > { %v1276_v36 = vpop.f32.mrf.mxu1 }
 0x3c5   : > { %1778 = vrot.lane.b32.xlu1 %v1276_v36, %s2363_s6 }
 0x3c6   : > { %v2194_v37 = vpop.f32.mrf.mxu1 }
 0x3c8   : > { %v1322_v38 = vpop.f32.mrf.mxu0 }
 0x3c9   : > { %1780 = vrot.lane.b32.xlu0 %v1322_v38, %s2363_s6 }
 0x3ca   : > { %v2199_v39 = vpop.f32.mrf.mxu0 }
 0x3cc   : > { %v1368_v40 = vpop.f32.mrf.mxu1 }
 0x3cd   : > { %1782 = vrot.lane.b32.xlu1 %v1368_v40, %s2363_s6 }
 0x3ce   : > { %v2204_v42 = vpop.f32.mrf.mxu1 }
 0x3d0   : > { %v1416_v44 = vpop.f32.mrf.mxu0 }
 0x3d1   : > { %2232 = vmatmul.mubr.msk.f32.vlgmr.msra.gmra.mxu0 %vm420_vm4, %v1416_v44  ;;  %v1833_v44 = vld [vmem:[#allocation3 + $0x4] sm:$0x3] }
 0x3d2   : > { %v2209_v46 = vpop.f32.mrf.mxu0  ;;  %2240 = vmatpush3.bf16.msra.mxu0 %v1670_v43  ;;  %2241 = vmatprep.mubr.msk.f32.mxu0 %vm2350_vm1, %v2349_v4 }
 0x3d4   : > { %v1419_v48 = vpop.f32.mrf.mxu0  ;;  %v1466_v49 = vpop.f32.mrf.mxu1 }
 0x3d5   : > { %2237 = vmatmul.mubr.msk.f32.vlgmr.msra.gmra.mxu1 %vm420_vm4, %v1466_v49 }
 0x3d6   : > { %v2210_v50 = vpop.f32.mrf.mxu0  ;;  %v2215_v51 = vpop.f32.mrf.mxu1  ;;  %2245 = vmatpush3.bf16.msra.mxu1 %v1716_v47  ;;  %2246 = vmatprep.mubr.msk.f32.mxu1 %vm2350_vm1, %v2349_v4 }
 0x3d7   : > { %v1834_v51 = vld [vmem:[#allocation3 + $0x6] sm:$0x3] }
 0x3d8   : > { %v1469_v52 = vpop.f32.mrf.mxu1  ;;  %v1516_v53 = vpop.f32.mrf.mxu0 }
 0x3d9   : > { %2242 = vmatmul.mubr.msk.f32.vlgmr.msra.gmra.mxu0 %vm420_vm4, %v1516_v53 }
 0x3da   : > { %v2216_v54 = vpop.f32.mrf.mxu1  ;;  %v2221_v55 = vpop.f32.mrf.mxu0 }
 0x3dc   : > { %v1519_v56 = vpop.f32.mrf.mxu0  ;;  %v1566_v57 = vpop.f32.mrf.mxu1 }
 0x3dd   : > { %2247 = vmatmul.mubr.msk.f32.vlgmr.msra.gmra.mxu1 %vm420_vm4, %v1566_v57 }
 0x3de   : > { %v2222_v58 = vpop.f32.mrf.mxu0  ;;  %v2227_v59 = vpop.f32.mrf.mxu1 }
 0x3e0   : > { %v1569_v60 = vpop.f32.mrf.mxu1 }
 0x3e2   : > { %v2228_v61 = vpop.f32.mrf.mxu1 }
 0x433   : > { %v1777_v15 = vpop.permute.xlu0 %1776 }
 0x434   : > { %v1809_v19 = vsel %vm1808_vm5, %v1804_v18, %v1777_v15 }
 0x437   : > { %v1779_v16 = vpop.permute.xlu1 %1778 }
 0x438   : > { %v1810_v25 = vsel %vm1808_vm5, %v1805_v24, %v1779_v16 }
 0x43b   : > { %v1781_v17 = vpop.permute.xlu0 %1780 }
 0x43c   : > { %v1811_v29 = vsel %vm1808_vm5, %v1806_v5, %v1781_v17 }
 0x43f   : > { %v1783_v20 = vpop.permute.xlu1 %1782 }
 0x440   : > { %v1812_v35 = vsel %vm1808_vm5, %v1807_v33, %v1783_v20 }
 0x491   : > { %v1614_v62 = vpop.f32.mrf.mxu0 }
 0x492   : > { %1792 = vrot.lane.b32.xlu0 %v1614_v62, %s2364_s7 }
 0x493   : > { %v2233_v63 = vpop.f32.mrf.mxu0 }
 0x495   : > { %v1660_v0 = vpop.f32.mrf.mxu1 }
 0x496   : > { %1794 = vrot.lane.b32.xlu1 %v1660_v0, %s2364_s7 }
 0x497   : > { %v2238_v1 = vpop.f32.mrf.mxu1 }
 0x499   : > { %v1706_v2 = vpop.f32.mrf.mxu0 }
 0x49a   : > { %1796 = vrot.lane.b32.xlu0 %v1706_v2, %s2364_s7 }
 0x49b   : > { %v2243_v3 = vpop.f32.mrf.mxu0 }
 0x49d   : > { %v1752_v6 = vpop.f32.mrf.mxu1 }
 0x49e   : > { %1798 = vrot.lane.b32.xlu1 %v1752_v6, %s2364_s7 }
 0x49f   : > { %v2248_v8 = vpop.f32.mrf.mxu1 }
 0x504   : > { %v1793_v21 = vpop.permute.xlu0 %1792 }
 0x505   : > { %v1814_v22 = vsel %vm1813_vm6, %v1809_v19, %v1793_v21 }
 0x506   : > { %v1818_v23 = vmul.f32 0.125, %v1814_v22 }
 0x508   : > { %1823 = vst.msk [vmem:[#allocation2] sm:$0x3] %vm1822_vm7, %v1818_v23  ;;  %v1795_v26 = vpop.permute.xlu1 %1794 }
 0x509   : > { %v1815_v27 = vsel %vm1813_vm6, %v1810_v25, %v1795_v26 }
 0x50a   : > { %v1819_v28 = vmul.f32 0.125, %v1815_v27 }
 0x50c   : > { %1824 = vst.msk [vmem:[#allocation2 + $0x2] sm:$0x3] %vm1822_vm7, %v1819_v28  ;;  %v1797_v30 = vpop.permute.xlu0 %1796 }
 0x50d   : > { %v1816_v32 = vsel %vm1813_vm6, %v1811_v29, %v1797_v30 }
 0x50e   : > { %v1820_v7 = vmul.f32 0.125, %v1816_v32 }
 0x50f   : > { %v1827_v34 = vld [vmem:[#allocation2] sm:$0x3] }
 0x510   : > { %v1835_v36 = vsub.f32 %v1827_v34, %v1831_v31  ;;  %1825 = vst.msk [vmem:[#allocation2 + $0x4] sm:$0x3] %vm1822_vm7, %v1820_v7  ;;  %v1799_v37 = vpop.permute.xlu1 %1798 }
 0x511   : > { %v1817_v38 = vsel %vm1813_vm6, %v1812_v35, %v1799_v37 }
 0x512   : > { %v1839_v39 = vmul.f32 0.5, %v1835_v36  ;;  %v1821_v40 = vmul.f32 0.125, %v1817_v38 }
 0x513   : > { %v1828_v41 = vld [vmem:[#allocation2 + $0x2] sm:$0x3] }
 0x514   : > { %v1843_v42 = vadd.f32 %v1839_v39, %v1831_v31  ;;  %v1836_v43 = vsub.f32 %v1828_v41, %v1832_v9  ;;  %1826 = vst.msk [vmem:[#allocation2 + $0x6] sm:$0x3] %vm1822_vm7, %v1821_v40 }
 0x516   : > { %vm1847_vm8 = vcmp.ge.f32.partialorder %v1843_v42, 0.5  ;;  %v1840_v12 = vmul.f32 0.5, %v1836_v43 }
 0x517   : > { %v2003_v45 = vsel %vm1847_vm8, 1.0, %v2349_v4  ;;  %v1829_v46 = vld [vmem:[#allocation2 + $0x4] sm:$0x3] }
 0x518   : > { %v1859_v47 = vsub.f32 1.0, %v2003_v45  ;;  %v1871_v48 = vpack.c.bf16 %v2003_v45, %v2003_v45  ;;  %v1844_v49 = vadd.f32 %v1840_v12, %v1832_v9  ;;  %v1837_v50 = vsub.f32 %v1829_v46, %v1833_v44 }
 0x51a   : > { %v1863_v52 = vmul.f32 %v1859_v47, %v1843_v42  ;;  %1876 = vst.msk [vmem:[%s2411_s22] sm:$0x1] %vm1875_vm9, %v1871_v48  ;;  %vm1848_vm10 = vcmp.ge.f32.partialorder %v1844_v49, 0.5  ;;  %v1841_v53 = vmul.f32 0.5, %v1837_v50 }
 0x51b   : > { %v2004_v54 = vsel %vm1848_vm10, 1.0, %v2349_v4  ;;  %v1830_v55 = vld [vmem:[#allocation2 + $0x6] sm:$0x3] }
 0x51c   : > { %1867 = vst.msk [vmem:[#allocation3] sm:$0x3] %vm1822_vm7, %v1863_v52  ;;  %v1860_v56 = vsub.f32 1.0, %v2004_v54  ;;  %v1872_v57 = vpack.c.bf16 %v2004_v54, %v2004_v54  ;;  %v1845_v58 = vadd.f32 %v1841_v53, %v1833_v44  ;;  %v1838_v59 = vsub.f32 %v1830_v55, %v1834_v51 }
 0x51e   : > { %v1864_v60 = vmul.f32 %v1860_v56, %v1844_v49  ;;  %1877 = vst.msk [vmem:[%s2411_s22 + $0x1] sm:$0x1] %vm1875_vm9, %v1872_v57  ;;  %vm1849_vm11 = vcmp.ge.f32.partialorder %v1845_v58, 0.5  ;;  %v1842_v61 = vmul.f32 0.5, %v1838_v59 }
 0x51f   : > { %v2005_v62 = vsel %vm1849_vm11, 1.0, %v2349_v4 }
 0x520   : > { %1868 = vst.msk [vmem:[#allocation3 + $0x2] sm:$0x3] %vm1822_vm7, %v1864_v60  ;;  %v1861_v63 = vsub.f32 1.0, %v2005_v62  ;;  %v1873_v0 = vpack.c.bf16 %v2005_v62, %v2005_v62  ;;  %v1846_v1 = vadd.f32 %v1842_v61, %v1834_v51 }
 0x522   : > { %v1865_v2 = vmul.f32 %v1861_v63, %v1845_v58  ;;  %1878 = vst.msk [vmem:[%s2411_s22 + $0x2] sm:$0x1] %vm1875_vm9, %v1873_v0  ;;  %vm1850_vm12 = vcmp.ge.f32.partialorder %v1846_v1, 0.5 }
 0x523   : > { %v2006_v3 = vsel %vm1850_vm12, 1.0, %v2349_v4 }
 0x524   : > { %1869 = vst.msk [vmem:[#allocation3 + $0x4] sm:$0x3] %vm1822_vm7, %v1865_v2  ;;  %v1862_v6 = vsub.f32 1.0, %v2006_v3  ;;  %v1874_v8 = vpack.c.bf16 %v2006_v3, %v2006_v3 }
 0x526   : > { %v1866_v10 = vmul.f32 %v1862_v6, %v1846_v1  ;;  %1879 = vst.msk [vmem:[%s2411_s22 + $0x3] sm:$0x1] %vm1875_vm9, %v1874_v8 }
 0x528   : > { %1870 = vst.msk [vmem:[#allocation3 + $0x6] sm:$0x3] %vm1822_vm7, %v1866_v10 }
 0x529 PF: > { %s11_s10 = sadd.s32 1, %s2345_s10   ;;  %s2690_s6 = smov %s2337_s8 }
 0x52a   : > { %p8_p8 = scmp.ge.s32.totalorder %s11_s10, 10   ;;  %s2691_s7 = smov %s2341_s9 }
 0x52b   : > { %s2692_s8 = smov %s2695_s11  ;;  %s2693_s9 = smov %s2699_s12 }
 0x52c   :  { %10 = sbr.rel (!%p8_p8) target bundleno = 3 (0x3), region = 58 }

// kernel: spikformer_forward.15
= control target key start
LH: loop header
LB: loop body
LE: loop exit
PB: predicated region body
PF: predicated region fallthrough
CT: control target
= control target key end

     0   :  { %s770_s21 = smov 0   ;;  %s772_s22 = smov 0   ;;  %s880_s0 = inlined_call_operand.vmem [shape: bf16[4,16,128], index: 0, kind: input, shape index: {}]   ;;  %s881_s1 = inlined_call_operand.vmem [shape: bf16[4,16,32], index: 1, kind: input, shape index: {}]   ;;  %s882_s2 = inlined_call_operand.vmem [shape: bf16[128,32], index: 2, kind: input, shape index: {}]   ;;  %s883_s3 = inlined_call_operand.vmem [shape: f32[1,32], index: 3, kind: input, shape index: {}]   ;;  %s884_s4 = inlined_call_operand.vmem [shape: f32[1,32], index: 4, kind: input, shape index: {}]   ;;  %s885_s5 = inlined_call_operand.vmem [shape: f32[1,32], index: 5, kind: input, shape index: {}]   ;;  %s886_s6 = inlined_call_operand.vmem [shape: bf16[4,16,32], index: 6, kind: output, shape index: {}]  }
   0x1   :  { %s774_s23 = smov 0   ;;  %s776_s24 = smov 0  }
   0x2   :  { %s778_s25 = smov 0  }
   0x3 LB: > { %s25_s26 = sadd.s32 1, %s722_s23  ;;  %s28_s27 = sadd.s32 1, %s726_s24  ;;  %s730_s25 = sphi %s778_s25, %s16_s25   ;;  %s726_s24 = sphi %s776_s24, %s890_s24   ;;  %s722_s23 = sphi %s774_s23, %s889_s23   ;;  %s718_s22 = sphi %s772_s22, %s888_s22   ;;  %s714_s21 = sphi %s770_s21, %s887_s21  }
   0x4   : > { %p26_p0 = scmp.ge.s32.totalorder %s25_s26, 4  ;;  %p588_p1 = scmp.ge.s32.totalorder %s730_s25, 1 }
   0x5   : > { %p246_p2 = scmp.lt.s32.totalorder %s730_s25, 9 }
   0x6   : > { %s892_s26 = smov (%p26_p0, %s25_s26), 0  ;;  %s894_s27 = smov (!%p26_p0, %s28_s27), %s726_s24 }
   0x7   : > { %p247_p3 = pnand %p588_p1, %p246_p2  ;;  %p30_p4 = scmp.ge.s32.totalorder %s894_s27, 2 }
   0x8   : > { %p290_p5 = scmp.lt.s32.totalorder (!%p247_p3), %s714_s21, 3  ;;  %p292_p6 = scmp.lt.s32.totalorder (!%p247_p3), %s718_s22, 1 }
   0x9   : > { %s896_s27 = smov (%p30_p4, %s894_s27), 0  ;;  %250 = sbr.rel (%p247_p3) target bundleno = 573 (0x23d), region = 44 }
   0xa   : > { %p595_p7 = scmp.ne.s32.totalorder (!%p247_p3), %s714_s21, 0 }
   0xe   : > { %s291_s28 = scalar_select %p290_p5, %s714_s21, 3 }
   0xf   : > { %s898_s22 = smov (!%p292_p6, %s718_s22), 1 }
  0x10   : > { %s589_s29 = sshll.u32 %s291_s28, 1  ;;  %318 = sbr.rel (%p595_p7) target bundleno = 23 (0x17), region = 48 }
  0x11   : > { %s295_s30 = sadd.s32 %s589_s29, %s898_s22 }
  0x12   : > { %s800_s7 = sshll.u32 %s295_s30, 2 }
  0x13   : > { %s297_s10 = scalar_lea.vmem %s880_s0, %s800_s7  ;;  %s305_s13 = scalar_lea.vmem %s881_s1, %s800_s7 }
  0x14   : > { %s313_s16 = scalar_lea.vmem %s886_s6, %s800_s7 }
  0x15   : > { %vm319_vm0 = vcmask 261120   ;;  %v732_v0 = vmov 0.0  }
  0x16   : > { %320 = vst.msk [vmem:[#allocation2] sm:$0xff] %vm319_vm0, %v732_v0 }
  0x17 PF: > { %v682_v1 = vld [vmem:[%s882_s2 + $0x38] sm:$0xff]   ;;  %v733_v2 = vmov 0.0   ;;  %v683_v3 = vld [vmem:[%s882_s2 + $0x30] sm:$0xff]   ;;  %vm734_vm1 = vmmov 0   ;;  %v684_v4 = vld [vmem:[%s882_s2 + $0x28] sm:$0xff]   ;;  %vm435_vm2 = vcmask 261120  }
  0x18   : > { %619 = vmatprep.subr.bf16.mxu0 %v733_v2  ;;  %635 = vmatprep.mubr.msk.bf16.mxu0 %vm734_vm1, %v733_v2  ;;  %v685_v5 = vld [vmem:[%s882_s2 + $0x20] sm:$0xff]   ;;  %v686_v6 = vld [vmem:[%s882_s2 + $0x18] sm:$0xff]   ;;  %v687_v7 = vld [vmem:[%s882_s2 + $0x10] sm:$0xff]   ;;  %vm478_vm4 = vcmask 257024  }
  0x19   : > { %620 = vmatpush3.bf16.msra.mxu0 %v682_v1  ;;  %v688_v8 = vld [vmem:[%s882_s2 + $0x8] sm:$0xff]   ;;  %v689_v9 = vld [vmem:[%s882_s2] sm:$0xff]  }
  0x1a   : > { %621 = vmatprep.subr.bf16.mxu0 %v733_v2  ;;  %v321_v10 = vld [vmem:[%s297_s10] sm:$0xf] }
  0x1b   : > { %v596_v11 = vld [vmem:[%s883_s3] ss:$0 sm:$0xff] }
  0x1c   : > { %v605_v27 = vld [vmem:[%s884_s4] ss:$0 sm:$0xff] }
  0x1d   : > { %622 = vmatpush3.bf16.msra.mxu0 %v683_v3  ;;  %v606_v29 = vld [vmem:[%s885_s5] ss:$0 sm:$0xff] }
  0x1e   : > { %623 = vmatprep.subr.bf16.mxu0 %v733_v2  ;;  %v464_v31 = vld [vmem:[#allocation2] sm:$0xff] }
  0x1f   : > { %v474_v34 = vld [vmem:[%s305_s13] sm:$0xf] }
  0x20   : > { %v475_v36 = vunpack.c.l.bf16 %v474_v34 }
  0x21   : > { %624 = vmatpush3.bf16.msra.mxu0 %v684_v4 }
  0x22   : > { %625 = vmatprep.subr.bf16.mxu0 %v733_v2 }
  0x25   : > { %626 = vmatpush3.bf16.msra.mxu0 %v685_v5 }
  0x26   : > { %627 = vmatprep.subr.bf16.mxu0 %v733_v2 }
  0x29   : > { %628 = vmatpush3.bf16.msra.mxu0 %v686_v6 }
  0x2a   : > { %629 = vmatprep.subr.bf16.mxu0 %v733_v2 }
  0x2d   : > { %630 = vmatpush3.bf16.msra.mxu0 %v687_v7 }
  0x2e   : > { %631 = vmatprep.subr.bf16.mxu0 %v733_v2 }
  0x31   : > { %632 = vmatpush3.bf16.msra.mxu0 %v688_v8 }
  0x32   : > { %633 = vmatprep.subr.bf16.mxu0 %v733_v2 }
  0x35   : > { %634 = vmatpush3.bf16.msra.mxu0 %v689_v9 }
  0x38   : > { %636 = vmatmul.mubr.bf16.vlgmr.msra.gmra.mxu0 %v321_v10 }
  0xf8   : > { %v427_v12 = vpop.f32.mrf.mxu0 }
  0xf9   : > { %v428_v13 = vadd.f32 %v596_v11, %v427_v12 }
  0xfa   : > { %v637_v14 = vpop.f32.mrf.mxu0 }
  0xfb   : > { %v436_v15 = vsel %vm435_vm2, %v428_v13, 0.0 }
  0xfc   : > { %437 = vadd.xlane.f32.xlu0 %v436_v15  ;;  %v430_v16 = vpop.f32.mrf.mxu0 }
  0xfe   : > { %v638_v17 = vpop.f32.mrf.mxu0 }
 0x185   : > { %v438_v18 = vpop.xlane.xlu0 %437 }
 0x186   : > { %v440_v19 = vmul.f32 0.03125, %v438_v18 }
 0x188   : > { %v441_v20 = vsub.f32 %v428_v13, %v440_v19 }
 0x18a   : > { %v442_v21 = vmul.f32 %v441_v20, %v441_v20 }
 0x18c   : > { %v443_v22 = vsel %vm435_vm2, %v442_v21, 0.0 }
 0x18d   : > { %444 = vadd.xlane.f32.xlu0 %v443_v22 }
 0x216   : > { %v445_v23 = vpop.xlane.xlu0 %444 }
 0x217   : > { %v446_v24 = vmul.f32 0.03125, %v445_v23 }
 0x219   : > { %v447_v25 = vadd.f32 1e-05, %v446_v24 }
 0x21b   : > { %690 = vrsqrt.f32 %v447_v25 }
 0x228   : > { %v691_v26 = vpop.eup %690 }
 0x229   : > { %v449_v28 = vmul.f32 %v691_v26, %v441_v20 }
 0x22b   : > { %v456_v30 = vmul.f32 %v605_v27, %v449_v28 }
 0x22d   : > { %v463_v32 = vadd.f32 %v606_v29, %v456_v30 }
 0x22f   : > { %v465_v33 = vsub.f32 %v463_v32, %v464_v31 }
 0x231   : > { %v466_v35 = vmul.f32 0.5, %v465_v33 }
 0x233   : > { %v467_v37 = vadd.f32 %v466_v35, %v464_v31 }
 0x235   : > { %vm468_vm3 = vcmp.ge.f32.partialorder %v467_v37, 1.0 }
 0x236   : > { %v607_v38 = vsel %vm468_vm3, 1.0, %v733_v2 }
 0x237   : > { %v471_v39 = vsub.f32 1.0, %v607_v38  ;;  %v476_v40 = vadd.f32 %v607_v38, %v475_v36 }
 0x239   : > { %v472_v41 = vmul.f32 %v471_v39, %v467_v37  ;;  %v477_v42 = vpack.c.bf16 %v476_v40, %v476_v40 }
 0x23b   : > { %473 = vst.msk [vmem:[#allocation2] sm:$0xff] %vm435_vm2, %v472_v41 }
 0x23c   : > { %479 = vst.msk [vmem:[%s313_s16] sm:$0xf] %vm478_vm4, %v477_v42 }
 0x23d PF: > { %s16_s25 = sadd.s32 1, %s730_s25   ;;  %s887_s21 = smov %s722_s23 }
 0x23e   : > { %p13_p8 = scmp.ge.s32.totalorder %s16_s25, 10   ;;  %s888_s22 = smov %s726_s24 }
 0x23f   : > { %s889_s23 = smov %s892_s26  ;;  %s890_s24 = smov %s896_s27 }
 0x240   :  { %15 = sbr.rel (!%p13_p8) target bundleno = 3 (0x3), region = 81 }

// kernel: spikformer_forward.18
= control target key start
LH: loop header
LB: loop body
LE: loop exit
PB: predicated region body
PF: predicated region fallthrough
CT: control target
= control target key end

     0   :  { %s696_s21 = smov 0   ;;  %s698_s22 = smov 0   ;;  %s784_s0 = inlined_call_operand.vmem [shape: bf16[4,16,32], index: 0, kind: input, shape index: {}]   ;;  %s785_s1 = inlined_call_operand.vmem [shape: bf16[4,16,32], index: 1, kind: input, shape index: {}]   ;;  %s786_s2 = inlined_call_operand.vmem [shape: bf16[32,32], index: 2, kind: input, shape index: {}]   ;;  %s787_s3 = inlined_call_operand.vmem [shape: f32[1,32], index: 3, kind: input, shape index: {}]   ;;  %s788_s4 = inlined_call_operand.vmem [shape: f32[1,32], index: 4, kind: input, shape index: {}]   ;;  %s789_s5 = inlined_call_operand.vmem [shape: f32[1,32], index: 5, kind: input, shape index: {}]   ;;  %s790_s6 = inlined_call_operand.vmem [shape: bf16[4,16,32], index: 6, kind: output, shape index: {}]  }
   0x1   :  { %s700_s23 = smov 0   ;;  %s702_s24 = smov 0  }
   0x2   :  { %s704_s25 = smov 0  }
   0x3 LB: > { %s25_s26 = sadd.s32 1, %s648_s23  ;;  %s28_s27 = sadd.s32 1, %s652_s24  ;;  %s656_s25 = sphi %s704_s25, %s16_s25   ;;  %s652_s24 = sphi %s702_s24, %s794_s24   ;;  %s648_s23 = sphi %s700_s23, %s793_s23   ;;  %s644_s22 = sphi %s698_s22, %s792_s22   ;;  %s640_s21 = sphi %s696_s21, %s791_s21  }
   0x4   : > { %p26_p0 = scmp.ge.s32.totalorder %s25_s26, 4  ;;  %p543_p1 = scmp.ge.s32.totalorder %s656_s25, 1 }
   0x5   : > { %p246_p2 = scmp.lt.s32.totalorder %s656_s25, 9 }
   0x6   : > { %s796_s26 = smov (%p26_p0, %s25_s26), 0  ;;  %s798_s27 = smov (!%p26_p0, %s28_s27), %s652_s24 }
   0x7   : > { %p247_p3 = pnand %p543_p1, %p246_p2  ;;  %p30_p4 = scmp.ge.s32.totalorder %s798_s27, 2 }
   0x8   : > { %p290_p5 = scmp.lt.s32.totalorder (!%p247_p3), %s640_s21, 3  ;;  %p292_p6 = scmp.lt.s32.totalorder (!%p247_p3), %s644_s22, 1 }
   0x9   : > { %s800_s27 = smov (%p30_p4, %s798_s27), 0  ;;  %250 = sbr.rel (%p247_p3) target bundleno = 549 (0x225), region = 44 }
   0xa   : > { %p550_p7 = scmp.ne.s32.totalorder (!%p247_p3), %s640_s21, 0 }
   0xe   : > { %s291_s28 = scalar_select %p290_p5, %s640_s21, 3 }
   0xf   : > { %s802_s22 = smov (!%p292_p6, %s644_s22), 1 }
  0x10   : > { %s544_s29 = sshll.u32 %s291_s28, 1  ;;  %318 = sbr.rel (%p550_p7) target bundleno = 23 (0x17), region = 48 }
  0x11   : > { %s295_s30 = sadd.s32 %s544_s29, %s802_s22 }
  0x12   : > { %s726_s7 = sshll.u32 %s295_s30, 2 }
  0x13   : > { %s297_s10 = scalar_lea.vmem %s784_s0, %s726_s7  ;;  %s305_s13 = scalar_lea.vmem %s785_s1, %s726_s7 }
  0x14   : > { %s313_s16 = scalar_lea.vmem %s790_s6, %s726_s7 }
  0x15   : > { %vm319_vm0 = vcmask 261120   ;;  %v658_v0 = vmov 0.0  }
  0x16   : > { %320 = vst.msk [vmem:[#allocation2] sm:$0xff] %vm319_vm0, %v658_v0 }
  0x17 PF: > { %v614_v1 = vld [vmem:[%s786_s2 + $0x8] sm:$0xff]   ;;  %v659_v2 = vmov 0.0   ;;  %v615_v3 = vld [vmem:[%s786_s2] sm:$0xff]   ;;  %vm660_vm1 = vmmov 0   ;;  %vm345_vm2 = vcmask 261120   ;;  %vm433_vm4 = vcmask 257024  }
  0x18   : > { %563 = vmatprep.subr.bf16.mxu0 %v659_v2  ;;  %567 = vmatprep.mubr.msk.bf16.mxu0 %vm660_vm1, %v659_v2  ;;  %v321_v4 = vld [vmem:[%s297_s10] sm:$0xf] }
  0x19   : > { %564 = vmatpush3.bf16.msra.mxu0 %v614_v1  ;;  %v551_v5 = vld [vmem:[%s787_s3] ss:$0 sm:$0xff] }
  0x1a   : > { %565 = vmatprep.subr.bf16.mxu0 %v659_v2  ;;  %v555_v21 = vld [vmem:[%s788_s4] ss:$0 sm:$0xff] }
  0x1b   : > { %v556_v23 = vld [vmem:[%s789_s5] ss:$0 sm:$0xff] }
  0x1c   : > { %v429_v28 = vld [vmem:[%s305_s13] sm:$0xf] }
  0x1d   : > { %566 = vmatpush3.bf16.msra.mxu0 %v615_v3  ;;  %v419_v25 = vld [vmem:[#allocation2] sm:$0xff]  ;;  %v430_v30 = vunpack.c.l.bf16 %v429_v28 }
  0x20   : > { %568 = vmatmul.mubr.msk.bf16.vlgmr.msra.gmra.mxu0 %vm345_vm2, %v321_v4 }
  0xe0   : > { %v383_v6 = vpop.f32.mrf.mxu0 }
  0xe1   : > { %v384_v7 = vadd.f32 %v551_v5, %v383_v6 }
  0xe2   : > { %v569_v8 = vpop.f32.mrf.mxu0 }
  0xe3   : > { %v391_v9 = vsel %vm345_vm2, %v384_v7, 0.0 }
  0xe4   : > { %392 = vadd.xlane.f32.xlu0 %v391_v9  ;;  %v386_v10 = vpop.f32.mrf.mxu0 }
  0xe6   : > { %v570_v11 = vpop.f32.mrf.mxu0 }
 0x16d   : > { %v393_v12 = vpop.xlane.xlu0 %392 }
 0x16e   : > { %v395_v13 = vmul.f32 0.03125, %v393_v12 }
 0x170   : > { %v396_v14 = vsub.f32 %v384_v7, %v395_v13 }
 0x172   : > { %v397_v15 = vmul.f32 %v396_v14, %v396_v14 }
 0x174   : > { %v398_v16 = vsel %vm345_vm2, %v397_v15, 0.0 }
 0x175   : > { %399 = vadd.xlane.f32.xlu0 %v398_v16 }
 0x1fe   : > { %v400_v17 = vpop.xlane.xlu0 %399 }
 0x1ff   : > { %v401_v18 = vmul.f32 0.03125, %v400_v17 }
 0x201   : > { %v402_v19 = vadd.f32 1e-05, %v401_v18 }
 0x203   : > { %616 = vrsqrt.f32 %v402_v19 }
 0x210   : > { %v617_v20 = vpop.eup %616 }
 0x211   : > { %v404_v22 = vmul.f32 %v617_v20, %v396_v14 }
 0x213   : > { %v411_v24 = vmul.f32 %v555_v21, %v404_v22 }
 0x215   : > { %v418_v26 = vadd.f32 %v556_v23, %v411_v24 }
 0x217   : > { %v420_v27 = vsub.f32 %v418_v26, %v419_v25 }
 0x219   : > { %v421_v29 = vmul.f32 0.5, %v420_v27 }
 0x21b   : > { %v422_v31 = vadd.f32 %v421_v29, %v419_v25 }
 0x21d   : > { %vm423_vm3 = vcmp.ge.f32.partialorder %v422_v31, 1.0 }
 0x21e   : > { %v557_v32 = vsel %vm423_vm3, 1.0, %v659_v2 }
 0x21f   : > { %v426_v33 = vsub.f32 1.0, %v557_v32  ;;  %v431_v34 = vadd.f32 %v557_v32, %v430_v30 }
 0x221   : > { %v427_v35 = vmul.f32 %v426_v33, %v422_v31  ;;  %v432_v36 = vpack.c.bf16 %v431_v34, %v431_v34 }
 0x223   : > { %428 = vst.msk [vmem:[#allocation2] sm:$0xff] %vm345_vm2, %v427_v35 }
 0x224   : > { %434 = vst.msk [vmem:[%s313_s16] sm:$0xf] %vm433_vm4, %v432_v36 }
 0x225 PF: > { %s16_s25 = sadd.s32 1, %s656_s25   ;;  %s791_s21 = smov %s648_s23 }
 0x226   : > { %p13_p8 = scmp.ge.s32.totalorder %s16_s25, 10   ;;  %s792_s22 = smov %s652_s24 }
 0x227   : > { %s793_s23 = smov %s796_s26  ;;  %s794_s24 = smov %s800_s27 }
 0x228   :  { %15 = sbr.rel (!%p13_p8) target bundleno = 3 (0x3), region = 81 }

// kernel: spikformer_forward.16
= control target key start
LH: loop header
LB: loop body
LE: loop exit
PB: predicated region body
PF: predicated region fallthrough
CT: control target
= control target key end

     0   :  { %s718_s18 = smov 0   ;;  %s720_s19 = smov 0   ;;  %s822_s0 = inlined_call_operand.vmem [shape: bf16[4,16,32], index: 0, kind: input, shape index: {}]   ;;  %s823_s1 = inlined_call_operand.vmem [shape: bf16[32,96], index: 1, kind: input, shape index: {}]   ;;  %s824_s2 = inlined_call_operand.vmem [shape: f32[1,96], index: 2, kind: input, shape index: {}]   ;;  %s825_s3 = inlined_call_operand.vmem [shape: f32[1,96], index: 3, kind: input, shape index: {}]   ;;  %s826_s4 = inlined_call_operand.vmem [shape: f32[1,96], index: 4, kind: input, shape index: {}]   ;;  %s827_s5 = inlined_call_operand.vmem [shape: bf16[4,16,96], index: 5, kind: output, shape index: {}]  }
   0x1   :  { %s722_s20 = smov 0   ;;  %s724_s21 = smov 0  }
   0x2   :  { %s726_s22 = smov 0  }
   0x3 LB: > { %s24_s23 = sadd.s32 1, %s672_s20  ;;  %s27_s24 = sadd.s32 1, %s676_s21  ;;  %s680_s22 = sphi %s726_s22, %s15_s22   ;;  %s676_s21 = sphi %s724_s21, %s831_s21   ;;  %s672_s20 = sphi %s722_s20, %s830_s20   ;;  %s668_s19 = sphi %s720_s19, %s829_s19   ;;  %s664_s18 = sphi %s718_s18, %s828_s18  }
   0x4   : > { %p25_p0 = scmp.ge.s32.totalorder %s24_s23, 4  ;;  %p560_p1 = scmp.ge.s32.totalorder %s680_s22, 1 }
   0x5   : > { %p206_p2 = scmp.lt.s32.totalorder %s680_s22, 9 }
   0x6   : > { %s833_s23 = smov (%p25_p0, %s24_s23), 0  ;;  %s835_s24 = smov (!%p25_p0, %s27_s24), %s676_s21 }
   0x7   : > { %p207_p3 = pnand %p560_p1, %p206_p2  ;;  %p29_p4 = scmp.ge.s32.totalorder %s835_s24, 2 }
   0x8   : > { %p240_p5 = scmp.lt.s32.totalorder (!%p207_p3), %s664_s18, 3  ;;  %p242_p6 = scmp.lt.s32.totalorder (!%p207_p3), %s668_s19, 1 }
   0x9   : > { %s837_s24 = smov (%p29_p4, %s835_s24), 0  ;;  %210 = sbr.rel (%p207_p3) target bundleno = 1011 (0x3f3), region = 40 }
   0xa   : > { %p565_p7 = scmp.ne.s32.totalorder (!%p207_p3), %s664_s18, 0 }
   0xe   : > { %s241_s25 = scalar_select %p240_p5, %s664_s18, 3 }
   0xf   : > { %s839_s19 = smov (!%p242_p6, %s668_s19), 1  ;;  %260 = sbr.rel (%p565_p7) target bundleno = 23 (0x17), region = 44 }
  0x10   : > { %s561_s26 = sshll.u32 %s241_s25, 1 }
  0x11   : > { %s245_s27 = sadd.s32 %s561_s26, %s839_s19 }
  0x12   : > { %s562_s28 = sshll.u32 %s245_s27, 2 }
  0x13   : > { %s247_s6 = scalar_lea.vmem %s822_s0, %s562_s28  ;;  %s754_s9 = scalar_lea.vmem %s827_s5, %s562_s28 }
  0x14   : > { %vm261_vm0 = vcmask 261120   ;;  %v682_v0 = vmov 0.0  }
  0x15   : > { %262 = vst.msk [vmem:[#allocation2] sm:$0xff] %vm261_vm0, %v682_v0  ;;  %263 = vst.msk [vmem:[#allocation2 + $0x8] sm:$0xff] %vm261_vm0, %v682_v0 }
  0x16   : > { %264 = vst.msk [vmem:[#allocation2 + $0x10] sm:$0xff] %vm261_vm0, %v682_v0 }
  0x17 PF: > { %v634_v1 = vld [vmem:[%s823_s1 + $0x8] sm:$0xff]   ;;  %v683_v2 = vmov 0.0   ;;  %v635_v3 = vld [vmem:[%s823_s1] sm:$0xff]   ;;  %vm684_vm1 = vmmov 0   ;;  %vm289_vm2 = vcmask 261120   ;;  %s685_s16 = smov 96  }
  0x18   : > { %580 = vmatprep.subr.bf16.mxu0 %v683_v2  ;;  %584 = vmatprep.mubr.msk.bf16.mxu0 %vm684_vm1, %v683_v2  ;;  %v265_v4 = vld [vmem:[%s247_s6] sm:$0xf]  ;;  %s686_s17 = smov 64   ;;  %s687_s18 = smov 32   ;;  %vm465_vm6 = vcmask 523264   ;;  %vm468_vm7 = vcmask 781312  }
  0x19   : > { %581 = vmatpush3.bf16.msra.mxu0 %v634_v1  ;;  %v566_v5 = vld [vmem:[%s824_s2] ss:$0 sm:$0xff] }
  0x1a   : > { %582 = vmatprep.subr.bf16.mxu0 %v683_v2  ;;  %v570_v37 = vld [vmem:[%s825_s3] ss:$0 sm:$0xff] }
  0x1b   : > { %v571_v39 = vld [vmem:[%s826_s4] ss:$0 sm:$0xff] }
  0x1c   : > { %v397_v28 = vld [vmem:[#allocation2 + $0x8] sm:$0xff] }
  0x1d   : > { %583 = vmatpush3.bf16.msra.mxu0 %v635_v3  ;;  %v438_v27 = vld [vmem:[#allocation2 + $0x10] sm:$0xff] }
  0x20   : > { %585 = vmatmul.mubr.msk.bf16.vlgmr.msra.gmra.mxu0 %vm289_vm2, %v265_v4 }
  0xe0   : > { %v327_v6 = vpop.f32.mrf.mxu0 }
  0xe1   : > { %v769_v7 = vadd.f32 %v566_v5, %v327_v6 }
  0xe2   : > { %v586_v8 = vpop.f32.mrf.mxu0 }
  0xe3   : > { %374 = vrot.lane.b32.xlu0 %v769_v7, %s685_s16  ;;  %v335_v29 = vsel %vm289_vm2, %v769_v7, 0.0 }
  0xe4   : > { %v330_v9 = vpop.f32.mrf.mxu0 }
  0xe6   : > { %v587_v10 = vpop.f32.mrf.mxu0 }
  0xe7   : > { %415 = vrot.lane.b32.xlu0 %v769_v7, %s686_s17  ;;  %v363_v10 = vld [vmem:[#allocation2] sm:$0xff] }
 0x155   : > { %v375_v11 = vpop.permute.xlu0 %374 }
 0x156   : > { %v377_v12 = vsel %vm289_vm2, %v375_v11, 0.0 }
 0x157   : > { %378 = vadd.xlane.f32.xlu1 %v377_v12 }
 0x159   : > { %v416_v13 = vpop.permute.xlu0 %415 }
 0x15a   : > { %v418_v14 = vsel %vm289_vm2, %v416_v13, 0.0 }
 0x15b   : > { %419 = vadd.xlane.f32.xlu1 %v418_v14 }
 0x1e0   : > { %v379_v15 = vpop.xlane.xlu1 %378 }
 0x1e1   : > { %v380_v16 = vmul.f32 0.03125, %v379_v15 }
 0x1e3   : > { %v381_v17 = vsub.f32 %v769_v7, %v380_v16 }
 0x1e4   : > { %v420_v18 = vpop.xlane.xlu1 %419 }
 0x1e5   : > { %v421_v19 = vmul.f32 0.03125, %v420_v18  ;;  %v382_v20 = vmul.f32 %v381_v17, %v381_v17 }
 0x1e7   : > { %v422_v21 = vsub.f32 %v769_v7, %v421_v19  ;;  %384 = vrot.lane.b32.xlu0 %v382_v20, %s685_s16 }
 0x1e9   : > { %v423_v22 = vmul.f32 %v422_v21, %v422_v21 }
 0x1eb   : > { %425 = vrot.lane.b32.xlu1 %v423_v22, %s686_s17 }
 0x259   : > { %v385_v23 = vpop.permute.xlu0 %384 }
 0x25a   : > { %v387_v24 = vsel %vm289_vm2, %v385_v23, 0.0 }
 0x25b   : > { %388 = vadd.xlane.f32.xlu0 %v387_v24 }
 0x25d   : > { %v426_v25 = vpop.permute.xlu1 %425 }
 0x25e   : > { %v428_v26 = vsel %vm289_vm2, %v426_v25, 0.0 }
 0x25f   : > { %429 = vadd.xlane.f32.xlu1 %v428_v26 }
 0x270   : > { %440 = vrot.lane.b32.xlu1 %v438_v27, %s686_s17 }
 0x271   : > { %399 = vrot.lane.b32.xlu0 %v397_v28, %s687_s18 }
 0x290   : > { %336 = vadd.xlane.f32.xlu0 %v335_v29 }
 0x2e4   : > { %v389_v30 = vpop.xlane.xlu0 %388 }
 0x2e5   : > { %v390_v31 = vmul.f32 0.03125, %v389_v30 }
 0x2e7   : > { %v391_v32 = vadd.f32 1e-05, %v390_v31 }
 0x2e8   : > { %v430_v33 = vpop.xlane.xlu1 %429  ;;  %v400_v42 = vpop.permute.xlu0 %399 }
 0x2e9   : > { %636 = vrsqrt.f32 %v391_v32  ;;  %v431_v34 = vmul.f32 0.03125, %v430_v33 }
 0x2eb   : > { %v432_v35 = vadd.f32 1e-05, %v431_v34 }
 0x2ec   : > { %v441_v47 = vpop.permute.xlu1 %440 }
 0x2ed   : > { %638 = vrsqrt.f32 %v432_v35 }
 0x2f6   : > { %v637_v36 = vpop.eup %636 }
 0x2f7   : > { %v393_v38 = vmul.f32 %v637_v36, %v381_v17 }
 0x2f9   : > { %v394_v40 = vmul.f32 %v570_v37, %v393_v38 }
 0x2fa   : > { %v639_v41 = vpop.eup %638 }
 0x2fb   : > { %v395_v43 = vadd.f32 %v571_v39, %v394_v40  ;;  %v434_v44 = vmul.f32 %v639_v41, %v422_v21 }
 0x2fd   : > { %v402_v45 = vsub.f32 %v395_v43, %v400_v42  ;;  %v435_v46 = vmul.f32 %v570_v37, %v434_v44 }
 0x2ff   : > { %v403_v48 = vmul.f32 0.5, %v402_v45  ;;  %v436_v49 = vadd.f32 %v571_v39, %v435_v46 }
 0x301   : > { %v443_v50 = vsub.f32 %v436_v49, %v441_v47  ;;  %405 = vrot.lane.b32.xlu1 %v403_v48, %s685_s16 }
 0x303   : > { %v444_v51 = vmul.f32 0.5, %v443_v50 }
 0x305   : > { %446 = vrot.lane.b32.xlu1 %v444_v51, %s686_s17 }
 0x319   : > { %v337_v52 = vpop.xlane.xlu0 %336 }
 0x31a   : > { %v339_v53 = vmul.f32 0.03125, %v337_v52 }
 0x31c   : > { %v340_v54 = vsub.f32 %v769_v7, %v339_v53 }
 0x31e   : > { %v341_v55 = vmul.f32 %v340_v54, %v340_v54 }
 0x320   : > { %v342_v56 = vsel %vm289_vm2, %v341_v55, 0.0 }
 0x329   : > { %343 = vadd.xlane.f32.xlu1 %v342_v56 }
 0x373   : > { %v406_v57 = vpop.permute.xlu1 %405 }
 0x374   : > { %v408_v58 = vadd.f32 %v406_v57, %v397_v28 }
 0x376   : > { %vm409_vm3 = vcmp.ge.f32.partialorder %v408_v58, 1.0 }
 0x377   : > { %v447_v59 = vpop.permute.xlu1 %446  ;;  %v573_v60 = vsel %vm409_vm3, 1.0, %v683_v2 }
 0x378   : > { %v449_v61 = vadd.f32 %v447_v59, %v438_v27  ;;  %v412_v62 = vsub.f32 1.0, %v573_v60  ;;  %457 = vrot.lane.b32.xlu0 %v573_v60, %s687_s18 }
 0x37a   : > { %vm450_vm4 = vcmp.ge.f32.partialorder %v449_v61, 1.0  ;;  %v413_v63 = vmul.f32 %v412_v62, %v408_v58 }
 0x37b   : > { %v574_v0 = vsel %vm450_vm4, 1.0, %v683_v2 }
 0x37c   : > { %414 = vst.msk [vmem:[#allocation2 + $0x8] sm:$0xff] %vm289_vm2, %v413_v63  ;;  %v453_v1 = vsub.f32 1.0, %v574_v0  ;;  %461 = vrot.lane.b32.xlu0 %v574_v0, %s686_s17 }
 0x37e   : > { %v454_v3 = vmul.f32 %v453_v1, %v449_v61 }
 0x380   : > { %455 = vst.msk [vmem:[#allocation2 + $0x10] sm:$0xff] %vm289_vm2, %v454_v3 }
 0x3b2   : > { %v344_v4 = vpop.xlane.xlu1 %343 }
 0x3b3   : > { %v345_v5 = vmul.f32 0.03125, %v344_v4 }
 0x3b5   : > { %v346_v6 = vadd.f32 1e-05, %v345_v5 }
 0x3b7   : > { %640 = vrsqrt.f32 %v346_v6 }
 0x3c4   : > { %v641_v7 = vpop.eup %640 }
 0x3c5   : > { %v348_v8 = vmul.f32 %v641_v7, %v340_v54 }
 0x3c7   : > { %v355_v9 = vmul.f32 %v570_v37, %v348_v8 }
 0x3c9   : > { %v362_v11 = vadd.f32 %v571_v39, %v355_v9 }
 0x3cb   : > { %v364_v12 = vsub.f32 %v362_v11, %v363_v10 }
 0x3cd   : > { %v365_v13 = vmul.f32 0.5, %v364_v12 }
 0x3cf   : > { %v366_v14 = vadd.f32 %v365_v13, %v363_v10 }
 0x3d1   : > { %vm367_vm5 = vcmp.ge.f32.partialorder %v366_v14, 1.0 }
 0x3d2   : > { %v572_v15 = vsel %vm367_vm5, 1.0, %v683_v2 }
 0x3d3   : > { %v370_v16 = vsub.f32 1.0, %v572_v15 }
 0x3d5   : > { %v371_v17 = vmul.f32 %v370_v16, %v366_v14 }
 0x3d7   : > { %372 = vst.msk [vmem:[#allocation2] sm:$0xff] %vm289_vm2, %v371_v17 }
 0x3ea   : > { %v458_v18 = vpop.permute.xlu0 %457 }
 0x3eb   : > { %v464_v19 = vsel %vm289_vm2, %v572_v15, %v458_v18 }
 0x3ee   : > { %v462_v20 = vpop.permute.xlu0 %461 }
 0x3ef   : > { %v466_v21 = vsel %vm465_vm6, %v464_v19, %v462_v20 }
 0x3f0   : > { %v467_v22 = vpack.c.bf16 %v466_v21, %v466_v21 }
 0x3f2   : > { %469 = vst.msk [vmem:[%s754_s9] sm:$0xf] %vm468_vm7, %v467_v22 }
 0x3f3 PF: > { %s15_s22 = sadd.s32 1, %s680_s22   ;;  %s828_s18 = smov %s672_s20 }
 0x3f4   : > { %p12_p8 = scmp.ge.s32.totalorder %s15_s22, 10   ;;  %s829_s19 = smov %s676_s21 }
 0x3f5   : > { %s830_s20 = smov %s833_s23  ;;  %s831_s21 = smov %s837_s24 }
 0x3f6   :  { %14 = sbr.rel (!%p12_p8) target bundleno = 3 (0x3), region = 76 }

// kernel: spikformer_forward.21
= control target key start
LH: loop header
LB: loop body
LE: loop exit
PB: predicated region body
PF: predicated region fallthrough
CT: control target
= control target key end

     0   :  { %s429_s12 = smov 0   ;;  %s431_s13 = smov 0   ;;  %s503_s0 = inlined_call_operand.vmem [shape: bf16[4,16,32], index: 0, kind: input, shape index: {}]   ;;  %s504_s1 = inlined_call_operand.vmem [shape: f32[1,32], index: 1, kind: input, shape index: {}]   ;;  %s505_s2 = inlined_call_operand.vmem [shape: f32[1,32], index: 2, kind: input, shape index: {}]   ;;  %s506_s3 = inlined_call_operand.vmem [shape: f32[16,32], index: 3, kind: output, shape index: {}]  }
   0x1   :  { %s433_s14 = smov 0   ;;  %s435_s15 = smov 0  }
   0x2   :  { %s437_s16 = smov 0  }
   0x3 LB: > { %s22_s17 = sadd.s32 1, %s398_s14  ;;  %s25_s18 = sadd.s32 1, %s402_s15  ;;  %s406_s16 = sphi %s437_s16, %s13_s16   ;;  %s402_s15 = sphi %s435_s15, %s510_s15   ;;  %s398_s14 = sphi %s433_s14, %s509_s14   ;;  %s394_s13 = sphi %s431_s13, %s508_s13   ;;  %s390_s12 = sphi %s429_s12, %s507_s12  }
   0x4   : > { %p23_p0 = scmp.ge.s32.totalorder %s22_s17, 4  ;;  %p315_p1 = scmp.ge.s32.totalorder %s406_s16, 1 }
   0x5   : > { %p154_p2 = scmp.lt.s32.totalorder %s406_s16, 9 }
   0x6   : > { %s512_s17 = smov (%p23_p0, %s22_s17), 0  ;;  %s514_s18 = smov (!%p23_p0, %s25_s18), %s402_s15 }
   0x7   : > { %p155_p3 = pnand %p315_p1, %p154_p2  ;;  %p27_p4 = scmp.ge.s32.totalorder %s514_s18, 2 }
   0x8   : > { %p180_p5 = scmp.lt.s32.totalorder (!%p155_p3), %s390_s12, 3  ;;  %p182_p6 = scmp.lt.s32.totalorder (!%p155_p3), %s394_s13, 1 }
   0x9   : > { %s516_s18 = smov (%p27_p4, %s514_s18), 0  ;;  %158 = sbr.rel (%p155_p3) target bundleno = 346 (0x15a), region = 32 }
   0xa   : > { %p319_p7 = scmp.ne.s32.totalorder (!%p155_p3), %s390_s12, 0 }
   0xe   : > { %s181_s19 = scalar_select %p180_p5, %s390_s12, 3 }
   0xf   : > { %s518_s13 = smov (!%p182_p6, %s394_s13), 1  ;;  %195 = sbr.rel (%p319_p7) target bundleno = 22 (0x16), region = 36 }
  0x10   : > { %s316_s20 = sshll.u32 %s181_s19, 1  ;;  %s318_s22 = sshll.u32 %s518_s13, 3 }
  0x11   : > { %s185_s21 = sadd.s32 %s316_s20, %s518_s13  ;;  %s466_s26 = scalar_lea.vmem %s506_s3, %s318_s22 }
  0x12   : > { %s317_s23 = sshll.u32 %s185_s21, 2 }
  0x13   : > { %s187_s29 = scalar_lea.vmem %s503_s0, %s317_s23 }
  0x14   : > { %vm196_vm0 = vcmask 261120   ;;  %v408_v0 = vmov 0.0  }
  0x15   : > { %197 = vst.msk [vmem:[%s466_s26] sm:$0xff] %vm196_vm0, %v408_v0 }
  0x16 PF: > { %v198_v1 = vld [vmem:[%s187_s29] sm:$0xf]  ;;  %vm200_vm1 = vcmask 261120   ;;  %p322_p8 = scmp.ne.s32.totalorder %s390_s12, 3 }
  0x17   : > { %v199_v2 = vunpack.c.l.bf16 %v198_v1  ;;  %v320_v13 = vld [vmem:[%s504_s1] ss:$0 sm:$0xff] }
  0x18   : > { %v321_v15 = vld [vmem:[%s505_s2] ss:$0 sm:$0xff] }
  0x19   : > { %v201_v3 = vsel %vm200_vm1, %v199_v2, 0.0 }
  0x1a   : > { %202 = vadd.xlane.f32.xlu0 %v201_v3 }
  0x1c   : > { %v212_v17 = vld [vmem:[%s466_s26] sm:$0xff] }
  0xa3   : > { %v203_v4 = vpop.xlane.xlu0 %202 }
  0xa4   : > { %v205_v5 = vmul.f32 0.03125, %v203_v4 }
  0xa6   : > { %v206_v6 = vsub.f32 %v199_v2, %v205_v5 }
  0xa8   : > { %v207_v7 = vmul.f32 %v206_v6, %v206_v6 }
  0xaa   : > { %v208_v8 = vsel %vm200_vm1, %v207_v7, 0.0 }
  0xab   : > { %209 = vadd.xlane.f32.xlu0 %v208_v8 }
 0x134   : > { %v210_v9 = vpop.xlane.xlu0 %209 }
 0x135   : > { %v211_v10 = vmul.f32 0.03125, %v210_v9 }
 0x137   : > { %v213_v11 = vadd.f32 1e-05, %v211_v10 }
 0x139   : > { %366 = vrsqrt.f32 %v213_v11 }
 0x146   : > { %v367_v12 = vpop.eup %366 }
 0x147   : > { %v215_v14 = vmul.f32 %v367_v12, %v206_v6 }
 0x149   : > { %v223_v16 = vmul.f32 %v320_v13, %v215_v14 }
 0x14b   : > { %v231_v18 = vadd.f32 %v321_v15, %v223_v16  ;;  %237 = sbr.rel (%p322_p8) target bundleno = 346 (0x15a), region = 40 }
 0x14d   : > { %v232_v19 = vadd.f32 %v231_v18, %v212_v17 }
 0x14f   : > { %233 = vst.msk [vmem:[%s466_s26] sm:$0xff] %vm200_vm1, %v232_v19 }
 0x156   : > { %v238_v20 = vld [vmem:[%s466_s26] sm:$0xff] }
 0x157   : > { %v239_v21 = vmul.f32 0.25, %v238_v20 }
 0x159   : > { %240 = vst.msk [vmem:[%s466_s26] sm:$0xff] %vm200_vm1, %v239_v21 }
 0x15a PF: > { %s13_s16 = sadd.s32 1, %s406_s16   ;;  %s507_s12 = smov %s398_s14 }
 0x15b   : > { %p10_p9 = scmp.ge.s32.totalorder %s13_s16, 10   ;;  %s508_s13 = smov %s402_s15 }
 0x15c   : > { %s509_s14 = smov %s512_s17  ;;  %s510_s15 = smov %s516_s18 }
 0x15d   :  { %12 = sbr.rel (!%p10_p9) target bundleno = 3 (0x3), region = 70 }

</bundles_post_ra>
